<compile_context>
chip_gen: v7x
topology: tpu7x:2x2x1
jax: 0.10.0
libtpu: 0.0.40
codegen_flags: <defaults>
</compile_context>

<pallas_src>
import math

import jax
import jax.numpy as jnp
from jax.experimental import pallas as pl
from jax.experimental.pallas import tpu as pltpu


# ----------------------------------------------------------------------------
# Fused Pallas kernel: GraphEncoder + MLP adjacency decoder + FeatureDecoder
# ----------------------------------------------------------------------------

def graph_vae_kernel(x_ref, a_ref, mask_ref, eps_ref,
                     w1_ref, w2_ref, wh_ref, hvec_ref, hb_ref,
                     aw1_ref, ab1_ref, aw2_ref, ab2_ref,
                     xw1_ref, xw2_ref, xw3_ref, xb3_ref,
                     small_ref, aout_ref):
    """Whole GraphVAE forward on full-array VMEM tiles.

    hvec_ref rows: [enc_b1, enc_g1, enc_be1, enc_b2, enc_g2, enc_be2,
                    xdec_b1, xdec_b2]                     (8, H)  f32
    hb_ref:   packed head bias [enc_bm | enc_bs]          (1, 2L) f32
    aw1_ref:  packed adjacency MLP layer-1 [W1a | W1b]    (L, 2Hd) bf16
    small_ref: packed output [q_z | q_m | q_s | pred_x]   (N, 3L + D_in) f32
    """
    bf = jnp.bfloat16
    f32 = jnp.float32

    A = a_ref[...]          # bf16 (N, N)
    x = x_ref[...]          # bf16 (N, D_in)
    hv = hvec_ref[...]      # f32  (8, H)

    def batchnorm(h, gamma, beta):
        # training-mode BatchNorm1d, single-pass batch statistics
        mean = jnp.mean(h, axis=0, keepdims=True)
        ex2 = jnp.mean(h * h, axis=0, keepdims=True)
        var = ex2 - mean * mean
        return (h - mean) * jax.lax.rsqrt(var + 1e-5) * gamma + beta

    # ---------------- GraphEncoder ----------------
    # layer 0: (A @ X) @ W1  -- aggregate first since D_in < hidden
    ax = jnp.dot(A, x, preferred_element_type=f32)
    h1 = jnp.dot(ax.astype(bf), w1_ref[...], preferred_element_type=f32) + hv[0:1, :]
    h1 = jnp.maximum(batchnorm(h1, hv[1:2, :], hv[2:3, :]), 0.0)
    # TODO(synk): dropout omitted (identity)

    # layer 1: A @ (h1 @ W2)
    hw = jnp.dot(h1.astype(bf), w2_ref[...], preferred_element_type=f32)
    h2 = jnp.dot(A, hw.astype(bf), preferred_element_type=f32) + hv[3:4, :]
    h2 = jnp.maximum(batchnorm(h2, hv[4:5, :], hv[5:6, :]), 0.0)

    # residual connection (residual saved after layer 0)
    h = h2 + h1

    # fused mean/logvar heads: t = h @ [Wm|Ws], then a single aggregation A @ t
    t = jnp.dot(h.astype(bf), wh_ref[...], preferred_element_type=f32)        # (N, 2L)
    qms = jnp.dot(A, t.astype(bf), preferred_element_type=f32) + hb_ref[...]  # (N, 2L)
    L = qms.shape[1] // 2
    q_m = qms[:, :L]
    q_s = qms[:, L:]

    s = jax.nn.softplus(q_s) + 1e-6
    q_z = q_m + s * eps_ref[...]

    # packed small-output slab: one HBM writeback instead of four
    small_ref[:, 0:L] = q_z
    small_ref[:, L:2 * L] = q_m
    small_ref[:, 2 * L:3 * L] = q_s

    # ---------------- MLP adjacency decoder (dense all-pairs, masked) --------
    # mlp(concat(z_i, z_j)): concat(z_i,z_j)@W1 = z_i@W1a + z_j@W1b.
    # One lane-dense dot gives [u | v]; per output column j we ReLU the 2-D pair
    # block and contract over Hd on the MXU.  No (N, N, Hd) tensor is built.
    qzb = q_z.astype(bf)
    uv = jnp.dot(qzb, aw1_ref[...], preferred_element_type=f32)   # (N, 2*Hd)
    Hd = uv.shape[1] // 2
    u = uv[:, :Hd] + ab1_ref[...]                                 # (N, Hd)
    v = uv[:, Hd:]                                                # (N, Hd)
    w2col = aw2_ref[...]                                          # bf16 (Hd, 1)
    b2 = ab2_ref[...]                                             # f32  (1, 1)
    m_all = mask_ref[...].astype(f32)                             # (N, N)

    N = u.shape[0]
    for j in range(N):                                            # static unroll
        pair = jnp.maximum(u + v[j:j + 1, :], 0.0)                # (N, Hd)
        colj = jnp.dot(pair.astype(bf), w2col,
                       preferred_element_type=f32)                # (N, 1) on MXU
        aout_ref[:, j:j + 1] = m_all[:, j:j + 1] * jax.nn.sigmoid(colj + b2)

    # ---------------- FeatureDecoder ----------------
    fh = jnp.maximum(
        jnp.dot(qzb, xw1_ref[...], preferred_element_type=f32) + hv[6:7, :], 0.0)
    fh = jnp.maximum(
        jnp.dot(fh.astype(bf), xw2_ref[...], preferred_element_type=f32) + hv[7:8, :],
        0.0)
    fl = jnp.dot(fh.astype(bf), xw3_ref[...], preferred_element_type=f32) + xb3_ref[...]
    small_ref[:, 3 * L:] = jax.nn.softmax(fl, axis=-1)


# ----------------------------------------------------------------------------
# Parameter init (deterministic, mirrors the module __init__ shapes, packed)
# ----------------------------------------------------------------------------

def xavier_uniform(key, fan_in, fan_out):
    bound = math.sqrt(6.0 / (fan_in + fan_out))
    return jax.random.uniform(key, (fan_in, fan_out), jnp.float32, -bound, bound)


def init_params(key, input_dim, hidden_dim, latent_dim, decoder_hidden_dim):
    ks = jax.random.split(key, 12)
    p = {}
    # GraphEncoder (GCN): conv weights stored as (in, out)
    p["enc_w1"] = xavier_uniform(ks[0], input_dim, hidden_dim)
    p["enc_w2"] = xavier_uniform(ks[1], hidden_dim, hidden_dim)
    wm = xavier_uniform(ks[2], hidden_dim, latent_dim)
    ws = xavier_uniform(ks[3], hidden_dim, latent_dim)
    p["enc_wheads"] = jnp.concatenate([wm, ws], axis=1)               # (H, 2L)
    # packed hidden-width vectors:
    # rows [enc_b1, enc_g1, enc_be1, enc_b2, enc_g2, enc_be2, xdec_b1, xdec_b2]
    p["hvec"] = (jnp.zeros((8, hidden_dim), jnp.float32)
                 .at[1].set(1.0)     # enc gamma1
                 .at[4].set(1.0))    # enc gamma2
    p["head_bias"] = jnp.zeros((1, 2 * latent_dim), jnp.float32)      # [bm | bs]
    # MLP adjacency decoder: Linear(2L, Hd) -> ReLU -> Linear(Hd, 1) -> Sigmoid
    adec_w1 = xavier_uniform(ks[4], 2 * latent_dim, decoder_hidden_dim)
    p["adec_w1p"] = jnp.concatenate(                                  # (L, 2Hd)
        [adec_w1[:latent_dim, :], adec_w1[latent_dim:, :]], axis=1)
    p["adec_b1"] = jnp.zeros((1, decoder_hidden_dim), jnp.float32)
    p["adec_w2"] = xavier_uniform(ks[5], decoder_hidden_dim, 1)       # (Hd, 1)
    p["adec_b2"] = jnp.zeros((1, 1), jnp.float32)
    # Feature decoder: Linear(L,H)->ReLU->Linear(H,H)->ReLU->Linear(H,D_in)->Softmax
    p["xdec_w1"] = xavier_uniform(ks[6], latent_dim, hidden_dim)
    p["xdec_w2"] = xavier_uniform(ks[7], hidden_dim, hidden_dim)
    p["xdec_w3"] = xavier_uniform(ks[8], hidden_dim, input_dim)
    p["xdec_b3"] = jnp.zeros((1, input_dim), jnp.float32)
    # (FeatureDecoder.disp is a parameter but unused in forward)
    return p


# ----------------------------------------------------------------------------
# Glue: gcn_norm (dense) + edge mask, forward wrapper
# ----------------------------------------------------------------------------

def gcn_norm_dense(edge_index, edge_weight, num_nodes):
    """Dense D^-1/2 (A + I) D^-1/2 with A_norm[dst, src] (PyG GCNConv semantics)."""
    src = edge_index[0]
    dst = edge_index[1]
    w = edge_weight.astype(jnp.float32)
    deg = jnp.zeros((num_nodes,), jnp.float32).at[dst].add(w) + 1.0  # +1 self loop
    dinv = jnp.where(deg > 0, 1.0 / jnp.sqrt(deg), 0.0)
    norm = dinv[dst] * w * dinv[src]
    A = jnp.zeros((num_nodes, num_nodes), jnp.float32).at[dst, src].add(norm)
    A = A + jnp.diag(dinv * dinv)  # self loops (weight 1)
    return A


@jax.jit
def graph_vae_forward(params, x, edge_index, edge_weight, eps):
    N, D_in = x.shape
    L = params["enc_wheads"].shape[1] // 2
    bf = jnp.bfloat16

    # sparse -> dense graph glue (plain JAX: scatter has no clean Pallas form)
    A_norm = gcn_norm_dense(edge_index, edge_weight, N).astype(bf)
    row, col = edge_index[0], edge_index[1]
    emask = jnp.zeros((N, N), bf).at[row, col].set(1.0)

    inputs = (
        x.astype(bf), A_norm, emask, eps,
        params["enc_w1"].astype(bf), params["enc_w2"].astype(bf),
        params["enc_wheads"].astype(bf), params["hvec"], params["head_bias"],
        params["adec_w1p"].astype(bf), params["adec_b1"],
        params["adec_w2"].astype(bf), params["adec_b2"],
        params["xdec_w1"].astype(bf), params["xdec_w2"].astype(bf),
        params["xdec_w3"].astype(bf), params["xdec_b3"],
    )
    vmem = pl.BlockSpec(memory_space=pltpu.MemorySpace.VMEM)

    small, pred_a = pl.pallas_call(
        graph_vae_kernel,
        out_shape=(
            jax.ShapeDtypeStruct((N, 3 * L + D_in), jnp.float32),  # [q_z|q_m|q_s|x]
            jax.ShapeDtypeStruct((N, N), jnp.float32),
        ),
        in_specs=[vmem] * len(inputs),
        out_specs=(vmem, vmem),
        compiler_params=pltpu.CompilerParams(
            vmem_limit_bytes=32 * 1024 * 1024),
    )(*inputs)

    q_z = small[:, 0:L]
    q_m = small[:, L:2 * L]
    q_s = small[:, 2 * L:3 * L]
    pred_x = small[:, 3 * L:]
    return q_z, q_m, q_s, pred_a, pred_x


# ----------------------------------------------------------------------------
# Main
# ----------------------------------------------------------------------------

if __name__ == "__main__":
    N = 32            # num_nodes
    D_IN = 16         # input feature dim
    HIDDEN = 32       # encoder / feature-decoder hidden dim
    LATENT = 8        # latent dim
    DEC_HIDDEN = 128  # MLP adjacency decoder hidden dim

    key = jax.random.PRNGKey(0)
    k_param, k_x, k_eps = jax.random.split(key, 3)

    params = init_params(k_param, D_IN, HIDDEN, LATENT, DEC_HIDDEN)

    # node features
    x = jax.random.normal(k_x, (N, D_IN), jnp.float32)

    # simple bidirectional ring graph: E = 2N edges, unit weights
    idx = jnp.arange(N, dtype=jnp.int32)
    src = jnp.concatenate([idx, (idx + 1) % N])
    dst = jnp.concatenate([(idx + 1) % N, idx])
    edge_index = jnp.stack([src, dst], axis=0)       # (2, 64)
    edge_weight = jnp.ones((2 * N,), jnp.float32)    # (64,)

    # reparameterization noise (deterministic)
    eps = jax.random.normal(k_eps, (N, LATENT), jnp.float32)

    q_z, q_m, q_s, pred_a, pred_x = graph_vae_forward(
        params, x, edge_index, edge_weight, eps)
    jax.block_until_ready((q_z, q_m, q_s, pred_a, pred_x))

    assert q_z.shape == (N, LATENT)
    assert q_m.shape == (N, LATENT)
    assert q_s.shape == (N, LATENT)
    assert pred_a.shape == (N, N)
    assert pred_x.shape == (N, D_IN)
    assert bool(jnp.all(jnp.isfinite(pred_a))) and bool(jnp.all(jnp.isfinite(pred_x)))

    print("KERNEL_OK")
</pallas_src>

<mosaic_0001>
module attributes {stable_mosaic.version = 11 : i64} {
  func.func private @main(%arg0: i32) attributes {dimension_semantics = [#tpu.dimension_semantics<core_parallel>], iteration_bounds = array<i64: 2>, tpu.core_type = #tpu.core_type<sc_scalar_subcore>, window_params = []} {
    return
  }
}

module attributes {stable_mosaic.version = 11 : i64} {
  func.func private @main(%arg0: i32) attributes {dimension_semantics = [#tpu.dimension_semantics<core_parallel>], iteration_bounds = array<i64: 2>, tpu.core_type = #tpu.core_type<sc_scalar_subcore>, window_params = []} {
    return
  }
}

module attributes {stable_mosaic.version = 11 : i64} {
  func.func @graph_vae_kernel(%arg0: memref<32x16xbf16, #tpu.memory_space<vmem>>, %arg1: memref<32x32xbf16, #tpu.memory_space<vmem>>, %arg2: memref<32x32xbf16, #tpu.memory_space<vmem>>, %arg3: memref<32x8xf32, #tpu.memory_space<vmem>>, %arg4: memref<16x32xbf16, #tpu.memory_space<vmem>>, %arg5: memref<32x32xbf16, #tpu.memory_space<vmem>>, %arg6: memref<32x16xbf16, #tpu.memory_space<vmem>>, %arg7: memref<8x32xf32, #tpu.memory_space<vmem>>, %arg8: memref<1x16xf32, #tpu.memory_space<vmem>>, %arg9: memref<8x256xbf16, #tpu.memory_space<vmem>>, %arg10: memref<1x128xf32, #tpu.memory_space<vmem>>, %arg11: memref<128x1xbf16, #tpu.memory_space<vmem>>, %arg12: memref<1x1xf32, #tpu.memory_space<vmem>>, %arg13: memref<8x32xbf16, #tpu.memory_space<vmem>>, %arg14: memref<32x32xbf16, #tpu.memory_space<vmem>>, %arg15: memref<32x16xbf16, #tpu.memory_space<vmem>>, %arg16: memref<1x16xf32, #tpu.memory_space<vmem>>, %arg17: memref<32x40xf32, #tpu.memory_space<vmem>>, %arg18: memref<32x32xf32, #tpu.memory_space<vmem>>) attributes {dimension_semantics = [], scalar_prefetch = 0 : i64, scratch_operands = 0 : i64, tpu.core_type = #tpu.core_type<tc>} {
    %c0 = arith.constant 0 : index
    %c0_0 = arith.constant 0 : index
    %0 = vector.load %arg1[%c0, %c0_0] : memref<32x32xbf16, #tpu.memory_space<vmem>>, vector<32x32xbf16>
    %c0_1 = arith.constant 0 : index
    %c0_2 = arith.constant 0 : index
    %1 = vector.load %arg0[%c0_1, %c0_2] : memref<32x16xbf16, #tpu.memory_space<vmem>>, vector<32x16xbf16>
    %c0_3 = arith.constant 0 : index
    %c0_4 = arith.constant 0 : index
    %2 = vector.load %arg7[%c0_3, %c0_4] : memref<8x32xf32, #tpu.memory_space<vmem>>, vector<8x32xf32>
    %cst = arith.constant dense<0.000000e+00> : vector<32x16xf32>
    %3 = tpu.matmul %0, %1, %cst {dimension_numbers = #tpu.dot_dimension_numbers<[1], [0], [0], [1], [0, 0, 1, 1], [], []>} : vector<32x32xbf16>, vector<32x16xbf16>, vector<32x16xf32> -> vector<32x16xf32>
    %4 = arith.truncf %3 : vector<32x16xf32> to vector<32x16xbf16>
    %c0_5 = arith.constant 0 : index
    %c0_6 = arith.constant 0 : index
    %5 = vector.load %arg4[%c0_5, %c0_6] : memref<16x32xbf16, #tpu.memory_space<vmem>>, vector<16x32xbf16>
    %cst_7 = arith.constant dense<0.000000e+00> : vector<32x32xf32>
    %6 = tpu.matmul %4, %5, %cst_7 {dimension_numbers = #tpu.dot_dimension_numbers<[1], [0], [0], [1], [0, 0, 1, 1], [], []>} : vector<32x16xbf16>, vector<16x32xbf16>, vector<32x32xf32> -> vector<32x32xf32>
    %7 = vector.extract_strided_slice %2 {offsets = [0, 0], sizes = [1, 32], strides = [1, 1]} : vector<8x32xf32> to vector<1x32xf32>
    %8 = vector.broadcast %7 : vector<1x32xf32> to vector<32x32xf32>
    %9 = arith.addf %6, %8 : vector<32x32xf32>
    %10 = vector.extract_strided_slice %2 {offsets = [1, 0], sizes = [1, 32], strides = [1, 1]} : vector<8x32xf32> to vector<1x32xf32>
    %11 = vector.extract_strided_slice %2 {offsets = [2, 0], sizes = [1, 32], strides = [1, 1]} : vector<8x32xf32> to vector<1x32xf32>
    %cst_8 = arith.constant dense<0.000000e+00> : vector<32xf32>
    %12 = vector.multi_reduction <add>, %9, %cst_8 [0] : vector<32x32xf32> to vector<32xf32>
    %13 = vector.shape_cast %12 : vector<32xf32> to vector<1x32xf32>
    %cst_9 = arith.constant 3.200000e+01 : f32
    %14 = vector.broadcast %cst_9 : f32 to vector<1x32xf32>
    %15 = arith.divf %13, %14 : vector<1x32xf32>
    %16 = arith.mulf %9, %9 : vector<32x32xf32>
    %cst_10 = arith.constant dense<0.000000e+00> : vector<32xf32>
    %17 = vector.multi_reduction <add>, %16, %cst_10 [0] : vector<32x32xf32> to vector<32xf32>
    %18 = vector.shape_cast %17 : vector<32xf32> to vector<1x32xf32>
    %cst_11 = arith.constant 3.200000e+01 : f32
    %19 = vector.broadcast %cst_11 : f32 to vector<1x32xf32>
    %20 = arith.divf %18, %19 : vector<1x32xf32>
    %21 = arith.mulf %15, %15 : vector<1x32xf32>
    %22 = arith.subf %20, %21 : vector<1x32xf32>
    %23 = vector.broadcast %15 : vector<1x32xf32> to vector<32x32xf32>
    %24 = arith.subf %9, %23 : vector<32x32xf32>
    %cst_12 = arith.constant 9.99999974E-6 : f32
    %25 = vector.broadcast %cst_12 : f32 to vector<1x32xf32>
    %26 = arith.addf %22, %25 : vector<1x32xf32>
    %27 = math.rsqrt %26 : vector<1x32xf32>
    %28 = vector.broadcast %27 : vector<1x32xf32> to vector<32x32xf32>
    %29 = arith.mulf %24, %28 : vector<32x32xf32>
    %30 = vector.broadcast %10 : vector<1x32xf32> to vector<32x32xf32>
    %31 = arith.mulf %29, %30 : vector<32x32xf32>
    %32 = vector.broadcast %11 : vector<1x32xf32> to vector<32x32xf32>
    %33 = arith.addf %31, %32 : vector<32x32xf32>
    %cst_13 = arith.constant 0.000000e+00 : f32
    %34 = vector.broadcast %cst_13 : f32 to vector<32x32xf32>
    %35 = arith.maximumf %33, %34 : vector<32x32xf32>
    %36 = arith.truncf %35 : vector<32x32xf32> to vector<32x32xbf16>
    %c0_14 = arith.constant 0 : index
    %c0_15 = arith.constant 0 : index
    %37 = vector.load %arg5[%c0_14, %c0_15] : memref<32x32xbf16, #tpu.memory_space<vmem>>, vector<32x32xbf16>
    %cst_16 = arith.constant dense<0.000000e+00> : vector<32x32xf32>
    %38 = tpu.matmul %36, %37, %cst_16 {dimension_numbers = #tpu.dot_dimension_numbers<[1], [0], [0], [1], [0, 0, 1, 1], [], []>} : vector<32x32xbf16>, vector<32x32xbf16>, vector<32x32xf32> -> vector<32x32xf32>
    %39 = arith.truncf %38 : vector<32x32xf32> to vector<32x32xbf16>
    %cst_17 = arith.constant dense<0.000000e+00> : vector<32x32xf32>
    %40 = tpu.matmul %0, %39, %cst_17 {dimension_numbers = #tpu.dot_dimension_numbers<[1], [0], [0], [1], [0, 0, 1, 1], [], []>} : vector<32x32xbf16>, vector<32x32xbf16>, vector<32x32xf32> -> vector<32x32xf32>
    %41 = vector.extract_strided_slice %2 {offsets = [3, 0], sizes = [1, 32], strides = [1, 1]} : vector<8x32xf32> to vector<1x32xf32>
    %42 = vector.broadcast %41 : vector<1x32xf32> to vector<32x32xf32>
    %43 = arith.addf %40, %42 : vector<32x32xf32>
    %44 = vector.extract_strided_slice %2 {offsets = [4, 0], sizes = [1, 32], strides = [1, 1]} : vector<8x32xf32> to vector<1x32xf32>
    %45 = vector.extract_strided_slice %2 {offsets = [5, 0], sizes = [1, 32], strides = [1, 1]} : vector<8x32xf32> to vector<1x32xf32>
    %cst_18 = arith.constant dense<0.000000e+00> : vector<32xf32>
    %46 = vector.multi_reduction <add>, %43, %cst_18 [0] : vector<32x32xf32> to vector<32xf32>
    %47 = vector.shape_cast %46 : vector<32xf32> to vector<1x32xf32>
    %cst_19 = arith.constant 3.200000e+01 : f32
    %48 = vector.broadcast %cst_19 : f32 to vector<1x32xf32>
    %49 = arith.divf %47, %48 : vector<1x32xf32>
    %50 = arith.mulf %43, %43 : vector<32x32xf32>
    %cst_20 = arith.constant dense<0.000000e+00> : vector<32xf32>
    %51 = vector.multi_reduction <add>, %50, %cst_20 [0] : vector<32x32xf32> to vector<32xf32>
    %52 = vector.shape_cast %51 : vector<32xf32> to vector<1x32xf32>
    %cst_21 = arith.constant 3.200000e+01 : f32
    %53 = vector.broadcast %cst_21 : f32 to vector<1x32xf32>
    %54 = arith.divf %52, %53 : vector<1x32xf32>
    %55 = arith.mulf %49, %49 : vector<1x32xf32>
    %56 = arith.subf %54, %55 : vector<1x32xf32>
    %57 = vector.broadcast %49 : vector<1x32xf32> to vector<32x32xf32>
    %58 = arith.subf %43, %57 : vector<32x32xf32>
    %cst_22 = arith.constant 9.99999974E-6 : f32
    %59 = vector.broadcast %cst_22 : f32 to vector<1x32xf32>
    %60 = arith.addf %56, %59 : vector<1x32xf32>
    %61 = math.rsqrt %60 : vector<1x32xf32>
    %62 = vector.broadcast %61 : vector<1x32xf32> to vector<32x32xf32>
    %63 = arith.mulf %58, %62 : vector<32x32xf32>
    %64 = vector.broadcast %44 : vector<1x32xf32> to vector<32x32xf32>
    %65 = arith.mulf %63, %64 : vector<32x32xf32>
    %66 = vector.broadcast %45 : vector<1x32xf32> to vector<32x32xf32>
    %67 = arith.addf %65, %66 : vector<32x32xf32>
    %cst_23 = arith.constant 0.000000e+00 : f32
    %68 = vector.broadcast %cst_23 : f32 to vector<32x32xf32>
    %69 = arith.maximumf %67, %68 : vector<32x32xf32>
    %70 = arith.addf %69, %35 : vector<32x32xf32>
    %71 = arith.truncf %70 : vector<32x32xf32> to vector<32x32xbf16>
    %c0_24 = arith.constant 0 : index
    %c0_25 = arith.constant 0 : index
    %72 = vector.load %arg6[%c0_24, %c0_25] : memref<32x16xbf16, #tpu.memory_space<vmem>>, vector<32x16xbf16>
    %cst_26 = arith.constant dense<0.000000e+00> : vector<32x16xf32>
    %73 = tpu.matmul %71, %72, %cst_26 {dimension_numbers = #tpu.dot_dimension_numbers<[1], [0], [0], [1], [0, 0, 1, 1], [], []>} : vector<32x32xbf16>, vector<32x16xbf16>, vector<32x16xf32> -> vector<32x16xf32>
    %74 = arith.truncf %73 : vector<32x16xf32> to vector<32x16xbf16>
    %cst_27 = arith.constant dense<0.000000e+00> : vector<32x16xf32>
    %75 = tpu.matmul %0, %74, %cst_27 {dimension_numbers = #tpu.dot_dimension_numbers<[1], [0], [0], [1], [0, 0, 1, 1], [], []>} : vector<32x32xbf16>, vector<32x16xbf16>, vector<32x16xf32> -> vector<32x16xf32>
    %c0_28 = arith.constant 0 : index
    %c0_29 = arith.constant 0 : index
    %76 = vector.load %arg8[%c0_28, %c0_29] : memref<1x16xf32, #tpu.memory_space<vmem>>, vector<1x16xf32>
    %77 = vector.broadcast %76 : vector<1x16xf32> to vector<32x16xf32>
    %78 = arith.addf %75, %77 : vector<32x16xf32>
    %79 = vector.extract_strided_slice %78 {offsets = [0, 0], sizes = [32, 8], strides = [1, 1]} : vector<32x16xf32> to vector<32x8xf32>
    %80 = vector.extract_strided_slice %78 {offsets = [0, 8], sizes = [32, 8], strides = [1, 1]} : vector<32x16xf32> to vector<32x8xf32>
    %cst_30 = arith.constant 0.000000e+00 : f32
    %81 = vector.broadcast %cst_30 : f32 to vector<32x8xf32>
    %82 = arith.maximumf %80, %81 : vector<32x8xf32>
    %83 = vector.broadcast %cst_30 : f32 to vector<32x8xf32>
    %84 = arith.subf %80, %83 : vector<32x8xf32>
    %85 = arith.cmpf one, %84, %84 : vector<32x8xf32>
    %86 = vector.broadcast %cst_30 : f32 to vector<32x8xf32>
    %87 = arith.addf %80, %86 : vector<32x8xf32>
    %88 = math.absf %84 : vector<32x8xf32>
    %cst_31 = arith.constant 0.000000e+00 : f32
    %89 = vector.broadcast %cst_31 : f32 to vector<32x8xf32>
    %90 = arith.subf %89, %88 : vector<32x8xf32>
    %91 = math.exp %90 : vector<32x8xf32>
    %92 = math.log1p %91 : vector<32x8xf32>
    %93 = arith.addf %82, %92 : vector<32x8xf32>
    %94 = arith.select %85, %87, %93 : vector<32x8xi1>, vector<32x8xf32>
    %cst_32 = arith.constant 9.99999997E-7 : f32
    %95 = vector.broadcast %cst_32 : f32 to vector<32x8xf32>
    %96 = arith.addf %94, %95 : vector<32x8xf32>
    %c0_33 = arith.constant 0 : index
    %c0_34 = arith.constant 0 : index
    %97 = vector.load %arg3[%c0_33, %c0_34] : memref<32x8xf32, #tpu.memory_space<vmem>>, vector<32x8xf32>
    %98 = arith.mulf %96, %97 : vector<32x8xf32>
    %99 = arith.addf %79, %98 : vector<32x8xf32>
    %c0_35 = arith.constant 0 : index
    %c0_36 = arith.constant 0 : index
    %100 = vector.load %arg17[%c0_35, %c0_36] : memref<32x40xf32, #tpu.memory_space<vmem>>, vector<32x8xf32>
    tpu.vector_store %arg17[%c0_35, %c0_36], %99 {strides = array<i32>} : memref<32x40xf32, #tpu.memory_space<vmem>>, vector<32x8xf32>,
    %c0_37 = arith.constant 0 : index
    %c8 = arith.constant 8 : index
    %101 = vector.load %arg17[%c0_37, %c8] : memref<32x40xf32, #tpu.memory_space<vmem>>, vector<32x8xf32>
    tpu.vector_store %arg17[%c0_37, %c8], %79 {strides = array<i32>} : memref<32x40xf32, #tpu.memory_space<vmem>>, vector<32x8xf32>,
    %c0_38 = arith.constant 0 : index
    %c16 = arith.constant 16 : index
    %102 = vector.load %arg17[%c0_38, %c16] : memref<32x40xf32, #tpu.memory_space<vmem>>, vector<32x8xf32>
    tpu.vector_store %arg17[%c0_38, %c16], %80 {strides = array<i32>} : memref<32x40xf32, #tpu.memory_space<vmem>>, vector<32x8xf32>,
    %103 = arith.truncf %99 : vector<32x8xf32> to vector<32x8xbf16>
    %c0_39 = arith.constant 0 : index
    %c0_40 = arith.constant 0 : index
    %104 = vector.load %arg9[%c0_39, %c0_40] : memref<8x256xbf16, #tpu.memory_space<vmem>>, vector<8x256xbf16>
    %cst_41 = arith.constant dense<0.000000e+00> : vector<32x256xf32>
    %105 = tpu.matmul %103, %104, %cst_41 {dimension_numbers = #tpu.dot_dimension_numbers<[1], [0], [0], [1], [0, 0, 1, 1], [], []>} : vector<32x8xbf16>, vector<8x256xbf16>, vector<32x256xf32> -> vector<32x256xf32>
    %106 = vector.extract_strided_slice %105 {offsets = [0, 0], sizes = [32, 128], strides = [1, 1]} : vector<32x256xf32> to vector<32x128xf32>
    %c0_42 = arith.constant 0 : index
    %c0_43 = arith.constant 0 : index
    %107 = vector.load %arg10[%c0_42, %c0_43] : memref<1x128xf32, #tpu.memory_space<vmem>>, vector<1x128xf32>
    %108 = vector.broadcast %107 : vector<1x128xf32> to vector<32x128xf32>
    %109 = arith.addf %106, %108 : vector<32x128xf32>
    %110 = vector.extract_strided_slice %105 {offsets = [0, 128], sizes = [32, 128], strides = [1, 1]} : vector<32x256xf32> to vector<32x128xf32>
    %c0_44 = arith.constant 0 : index
    %c0_45 = arith.constant 0 : index
    %111 = vector.load %arg11[%c0_44, %c0_45] : memref<128x1xbf16, #tpu.memory_space<vmem>>, vector<128x1xbf16>
    %c0_46 = arith.constant 0 : index
    %c0_47 = arith.constant 0 : index
    %112 = vector.load %arg12[%c0_46, %c0_47] : memref<1x1xf32, #tpu.memory_space<vmem>>, vector<1x1xf32>
    %c0_48 = arith.constant 0 : index
    %c0_49 = arith.constant 0 : index
    %113 = vector.load %arg2[%c0_48, %c0_49] : memref<32x32xbf16, #tpu.memory_space<vmem>>, vector<32x32xbf16>
    %114 = arith.extf %113 : vector<32x32xbf16> to vector<32x32xf32>
    %115 = vector.extract_strided_slice %110 {offsets = [0, 0], sizes = [1, 128], strides = [1, 1]} : vector<32x128xf32> to vector<1x128xf32>
    %116 = vector.broadcast %115 : vector<1x128xf32> to vector<32x128xf32>
    %117 = arith.addf %109, %116 : vector<32x128xf32>
    %cst_50 = arith.constant 0.000000e+00 : f32
    %118 = vector.broadcast %cst_50 : f32 to vector<32x128xf32>
    %119 = arith.maximumf %117, %118 : vector<32x128xf32>
    %120 = arith.truncf %119 : vector<32x128xf32> to vector<32x128xbf16>
    %cst_51 = arith.constant dense<0.000000e+00> : vector<32x1xf32>
    %121 = tpu.matmul %120, %111, %cst_51 {dimension_numbers = #tpu.dot_dimension_numbers<[1], [0], [0], [1], [0, 0, 1, 1], [], []>} : vector<32x128xbf16>, vector<128x1xbf16>, vector<32x1xf32> -> vector<32x1xf32>
    %122 = vector.extract_strided_slice %114 {offsets = [0, 0], sizes = [32, 1], strides = [1, 1]} : vector<32x32xf32> to vector<32x1xf32>
    %123 = vector.broadcast %112 : vector<1x1xf32> to vector<32x1xf32>
    %124 = arith.addf %121, %123 : vector<32x1xf32>
    %125 = arith.negf %124 : vector<32x1xf32>
    %126 = math.exp %125 : vector<32x1xf32>
    %cst_52 = arith.constant 1.000000e+00 : f32
    %127 = vector.broadcast %cst_52 : f32 to vector<32x1xf32>
    %128 = arith.addf %127, %126 : vector<32x1xf32>
    %129 = arith.divf %127, %128 : vector<32x1xf32>
    %130 = arith.mulf %122, %129 : vector<32x1xf32>
    %c0_53 = arith.constant 0 : index
    %c0_54 = arith.constant 0 : index
    %131 = vector.load %arg18[%c0_53, %c0_54] : memref<32x32xf32, #tpu.memory_space<vmem>>, vector<32x1xf32>
    tpu.vector_store %arg18[%c0_53, %c0_54], %130 {strides = array<i32>} : memref<32x32xf32, #tpu.memory_space<vmem>>, vector<32x1xf32>,
    %132 = vector.extract_strided_slice %110 {offsets = [1, 0], sizes = [1, 128], strides = [1, 1]} : vector<32x128xf32> to vector<1x128xf32>
    %133 = vector.broadcast %132 : vector<1x128xf32> to vector<32x128xf32>
    %134 = arith.addf %109, %133 : vector<32x128xf32>
    %cst_55 = arith.constant 0.000000e+00 : f32
    %135 = vector.broadcast %cst_55 : f32 to vector<32x128xf32>
    %136 = arith.maximumf %134, %135 : vector<32x128xf32>
    %137 = arith.truncf %136 : vector<32x128xf32> to vector<32x128xbf16>
    %cst_56 = arith.constant dense<0.000000e+00> : vector<32x1xf32>
    %138 = tpu.matmul %137, %111, %cst_56 {dimension_numbers = #tpu.dot_dimension_numbers<[1], [0], [0], [1], [0, 0, 1, 1], [], []>} : vector<32x128xbf16>, vector<128x1xbf16>, vector<32x1xf32> -> vector<32x1xf32>
    %139 = vector.extract_strided_slice %114 {offsets = [0, 1], sizes = [32, 1], strides = [1, 1]} : vector<32x32xf32> to vector<32x1xf32>
    %140 = vector.broadcast %112 : vector<1x1xf32> to vector<32x1xf32>
    %141 = arith.addf %138, %140 : vector<32x1xf32>
    %142 = arith.negf %141 : vector<32x1xf32>
    %143 = math.exp %142 : vector<32x1xf32>
    %cst_57 = arith.constant 1.000000e+00 : f32
    %144 = vector.broadcast %cst_57 : f32 to vector<32x1xf32>
    %145 = arith.addf %144, %143 : vector<32x1xf32>
    %146 = arith.divf %144, %145 : vector<32x1xf32>
    %147 = arith.mulf %139, %146 : vector<32x1xf32>
    %c0_58 = arith.constant 0 : index
    %c1 = arith.constant 1 : index
    %148 = vector.load %arg18[%c0_58, %c1] : memref<32x32xf32, #tpu.memory_space<vmem>>, vector<32x1xf32>
    tpu.vector_store %arg18[%c0_58, %c1], %147 {strides = array<i32>} : memref<32x32xf32, #tpu.memory_space<vmem>>, vector<32x1xf32>,
    %149 = vector.extract_strided_slice %110 {offsets = [2, 0], sizes = [1, 128], strides = [1, 1]} : vector<32x128xf32> to vector<1x128xf32>
    %150 = vector.broadcast %149 : vector<1x128xf32> to vector<32x128xf32>
    %151 = arith.addf %109, %150 : vector<32x128xf32>
    %cst_59 = arith.constant 0.000000e+00 : f32
    %152 = vector.broadcast %cst_59 : f32 to vector<32x128xf32>
    %153 = arith.maximumf %151, %152 : vector<32x128xf32>
    %154 = arith.truncf %153 : vector<32x128xf32> to vector<32x128xbf16>
    %cst_60 = arith.constant dense<0.000000e+00> : vector<32x1xf32>
    %155 = tpu.matmul %154, %111, %cst_60 {dimension_numbers = #tpu.dot_dimension_numbers<[1], [0], [0], [1], [0, 0, 1, 1], [], []>} : vector<32x128xbf16>, vector<128x1xbf16>, vector<32x1xf32> -> vector<32x1xf32>
    %156 = vector.extract_strided_slice %114 {offsets = [0, 2], sizes = [32, 1], strides = [1, 1]} : vector<32x32xf32> to vector<32x1xf32>
    %157 = vector.broadcast %112 : vector<1x1xf32> to vector<32x1xf32>
    %158 = arith.addf %155, %157 : vector<32x1xf32>
    %159 = arith.negf %158 : vector<32x1xf32>
    %160 = math.exp %159 : vector<32x1xf32>
    %cst_61 = arith.constant 1.000000e+00 : f32
    %161 = vector.broadcast %cst_61 : f32 to vector<32x1xf32>
    %162 = arith.addf %161, %160 : vector<32x1xf32>
    %163 = arith.divf %161, %162 : vector<32x1xf32>
    %164 = arith.mulf %156, %163 : vector<32x1xf32>
    %c0_62 = arith.constant 0 : index
    %c2 = arith.constant 2 : index
    %165 = vector.load %arg18[%c0_62, %c2] : memref<32x32xf32, #tpu.memory_space<vmem>>, vector<32x1xf32>
    tpu.vector_store %arg18[%c0_62, %c2], %164 {strides = array<i32>} : memref<32x32xf32, #tpu.memory_space<vmem>>, vector<32x1xf32>,
    %166 = vector.extract_strided_slice %110 {offsets = [3, 0], sizes = [1, 128], strides = [1, 1]} : vector<32x128xf32> to vector<1x128xf32>
    %167 = vector.broadcast %166 : vector<1x128xf32> to vector<32x128xf32>
    %168 = arith.addf %109, %167 : vector<32x128xf32>
    %cst_63 = arith.constant 0.000000e+00 : f32
    %169 = vector.broadcast %cst_63 : f32 to vector<32x128xf32>
    %170 = arith.maximumf %168, %169 : vector<32x128xf32>
    %171 = arith.truncf %170 : vector<32x128xf32> to vector<32x128xbf16>
    %cst_64 = arith.constant dense<0.000000e+00> : vector<32x1xf32>
    %172 = tpu.matmul %171, %111, %cst_64 {dimension_numbers = #tpu.dot_dimension_numbers<[1], [0], [0], [1], [0, 0, 1, 1], [], []>} : vector<32x128xbf16>, vector<128x1xbf16>, vector<32x1xf32> -> vector<32x1xf32>
    %173 = vector.extract_strided_slice %114 {offsets = [0, 3], sizes = [32, 1], strides = [1, 1]} : vector<32x32xf32> to vector<32x1xf32>
    %174 = vector.broadcast %112 : vector<1x1xf32> to vector<32x1xf32>
    %175 = arith.addf %172, %174 : vector<32x1xf32>
    %176 = arith.negf %175 : vector<32x1xf32>
    %177 = math.exp %176 : vector<32x1xf32>
    %cst_65 = arith.constant 1.000000e+00 : f32
    %178 = vector.broadcast %cst_65 : f32 to vector<32x1xf32>
    %179 = arith.addf %178, %177 : vector<32x1xf32>
    %180 = arith.divf %178, %179 : vector<32x1xf32>
    %181 = arith.mulf %173, %180 : vector<32x1xf32>
    %c0_66 = arith.constant 0 : index
    %c3 = arith.constant 3 : index
    %182 = vector.load %arg18[%c0_66, %c3] : memref<32x32xf32, #tpu.memory_space<vmem>>, vector<32x1xf32>
    tpu.vector_store %arg18[%c0_66, %c3], %181 {strides = array<i32>} : memref<32x32xf32, #tpu.memory_space<vmem>>, vector<32x1xf32>,
    %183 = vector.extract_strided_slice %110 {offsets = [4, 0], sizes = [1, 128], strides = [1, 1]} : vector<32x128xf32> to vector<1x128xf32>
    %184 = vector.broadcast %183 : vector<1x128xf32> to vector<32x128xf32>
    %185 = arith.addf %109, %184 : vector<32x128xf32>
    %cst_67 = arith.constant 0.000000e+00 : f32
    %186 = vector.broadcast %cst_67 : f32 to vector<32x128xf32>
    %187 = arith.maximumf %185, %186 : vector<32x128xf32>
    %188 = arith.truncf %187 : vector<32x128xf32> to vector<32x128xbf16>
    %cst_68 = arith.constant dense<0.000000e+00> : vector<32x1xf32>
    %189 = tpu.matmul %188, %111, %cst_68 {dimension_numbers = #tpu.dot_dimension_numbers<[1], [0], [0], [1], [0, 0, 1, 1], [], []>} : vector<32x128xbf16>, vector<128x1xbf16>, vector<32x1xf32> -> vector<32x1xf32>
    %190 = vector.extract_strided_slice %114 {offsets = [0, 4], sizes = [32, 1], strides = [1, 1]} : vector<32x32xf32> to vector<32x1xf32>
    %191 = vector.broadcast %112 : vector<1x1xf32> to vector<32x1xf32>
    %192 = arith.addf %189, %191 : vector<32x1xf32>
    %193 = arith.negf %192 : vector<32x1xf32>
    %194 = math.exp %193 : vector<32x1xf32>
    %cst_69 = arith.constant 1.000000e+00 : f32
    %195 = vector.broadcast %cst_69 : f32 to vector<32x1xf32>
    %196 = arith.addf %195, %194 : vector<32x1xf32>
    %197 = arith.divf %195, %196 : vector<32x1xf32>
    %198 = arith.mulf %190, %197 : vector<32x1xf32>
    %c0_70 = arith.constant 0 : index
    %c4 = arith.constant 4 : index
    %199 = vector.load %arg18[%c0_70, %c4] : memref<32x32xf32, #tpu.memory_space<vmem>>, vector<32x1xf32>
    tpu.vector_store %arg18[%c0_70, %c4], %198 {strides = array<i32>} : memref<32x32xf32, #tpu.memory_space<vmem>>, vector<32x1xf32>,
    %200 = vector.extract_strided_slice %110 {offsets = [5, 0], sizes = [1, 128], strides = [1, 1]} : vector<32x128xf32> to vector<1x128xf32>
    %201 = vector.broadcast %200 : vector<1x128xf32> to vector<32x128xf32>
    %202 = arith.addf %109, %201 : vector<32x128xf32>
    %cst_71 = arith.constant 0.000000e+00 : f32
    %203 = vector.broadcast %cst_71 : f32 to vector<32x128xf32>
    %204 = arith.maximumf %202, %203 : vector<32x128xf32>
    %205 = arith.truncf %204 : vector<32x128xf32> to vector<32x128xbf16>
    %cst_72 = arith.constant dense<0.000000e+00> : vector<32x1xf32>
    %206 = tpu.matmul %205, %111, %cst_72 {dimension_numbers = #tpu.dot_dimension_numbers<[1], [0], [0], [1], [0, 0, 1, 1], [], []>} : vector<32x128xbf16>, vector<128x1xbf16>, vector<32x1xf32> -> vector<32x1xf32>
    %207 = vector.extract_strided_slice %114 {offsets = [0, 5], sizes = [32, 1], strides = [1, 1]} : vector<32x32xf32> to vector<32x1xf32>
    %208 = vector.broadcast %112 : vector<1x1xf32> to vector<32x1xf32>
    %209 = arith.addf %206, %208 : vector<32x1xf32>
    %210 = arith.negf %209 : vector<32x1xf32>
    %211 = math.exp %210 : vector<32x1xf32>
    %cst_73 = arith.constant 1.000000e+00 : f32
    %212 = vector.broadcast %cst_73 : f32 to vector<32x1xf32>
    %213 = arith.addf %212, %211 : vector<32x1xf32>
    %214 = arith.divf %212, %213 : vector<32x1xf32>
    %215 = arith.mulf %207, %214 : vector<32x1xf32>
    %c0_74 = arith.constant 0 : index
    %c5 = arith.constant 5 : index
    %216 = vector.load %arg18[%c0_74, %c5] : memref<32x32xf32, #tpu.memory_space<vmem>>, vector<32x1xf32>
    tpu.vector_store %arg18[%c0_74, %c5], %215 {strides = array<i32>} : memref<32x32xf32, #tpu.memory_space<vmem>>, vector<32x1xf32>,
    %217 = vector.extract_strided_slice %110 {offsets = [6, 0], sizes = [1, 128], strides = [1, 1]} : vector<32x128xf32> to vector<1x128xf32>
    %218 = vector.broadcast %217 : vector<1x128xf32> to vector<32x128xf32>
    %219 = arith.addf %109, %218 : vector<32x128xf32>
    %cst_75 = arith.constant 0.000000e+00 : f32
    %220 = vector.broadcast %cst_75 : f32 to vector<32x128xf32>
    %221 = arith.maximumf %219, %220 : vector<32x128xf32>
    %222 = arith.truncf %221 : vector<32x128xf32> to vector<32x128xbf16>
    %cst_76 = arith.constant dense<0.000000e+00> : vector<32x1xf32>
    %223 = tpu.matmul %222, %111, %cst_76 {dimension_numbers = #tpu.dot_dimension_numbers<[1], [0], [0], [1], [0, 0, 1, 1], [], []>} : vector<32x128xbf16>, vector<128x1xbf16>, vector<32x1xf32> -> vector<32x1xf32>
    %224 = vector.extract_strided_slice %114 {offsets = [0, 6], sizes = [32, 1], strides = [1, 1]} : vector<32x32xf32> to vector<32x1xf32>
    %225 = vector.broadcast %112 : vector<1x1xf32> to vector<32x1xf32>
    %226 = arith.addf %223, %225 : vector<32x1xf32>
    %227 = arith.negf %226 : vector<32x1xf32>
    %228 = math.exp %227 : vector<32x1xf32>
    %cst_77 = arith.constant 1.000000e+00 : f32
    %229 = vector.broadcast %cst_77 : f32 to vector<32x1xf32>
    %230 = arith.addf %229, %228 : vector<32x1xf32>
    %231 = arith.divf %229, %230 : vector<32x1xf32>
    %232 = arith.mulf %224, %231 : vector<32x1xf32>
    %c0_78 = arith.constant 0 : index
    %c6 = arith.constant 6 : index
    %233 = vector.load %arg18[%c0_78, %c6] : memref<32x32xf32, #tpu.memory_space<vmem>>, vector<32x1xf32>
    tpu.vector_store %arg18[%c0_78, %c6], %232 {strides = array<i32>} : memref<32x32xf32, #tpu.memory_space<vmem>>, vector<32x1xf32>,
    %234 = vector.extract_strided_slice %110 {offsets = [7, 0], sizes = [1, 128], strides = [1, 1]} : vector<32x128xf32> to vector<1x128xf32>
    %235 = vector.broadcast %234 : vector<1x128xf32> to vector<32x128xf32>
    %236 = arith.addf %109, %235 : vector<32x128xf32>
    %cst_79 = arith.constant 0.000000e+00 : f32
    %237 = vector.broadcast %cst_79 : f32 to vector<32x128xf32>
    %238 = arith.maximumf %236, %237 : vector<32x128xf32>
    %239 = arith.truncf %238 : vector<32x128xf32> to vector<32x128xbf16>
    %cst_80 = arith.constant dense<0.000000e+00> : vector<32x1xf32>
    %240 = tpu.matmul %239, %111, %cst_80 {dimension_numbers = #tpu.dot_dimension_numbers<[1], [0], [0], [1], [0, 0, 1, 1], [], []>} : vector<32x128xbf16>, vector<128x1xbf16>, vector<32x1xf32> -> vector<32x1xf32>
    %241 = vector.extract_strided_slice %114 {offsets = [0, 7], sizes = [32, 1], strides = [1, 1]} : vector<32x32xf32> to vector<32x1xf32>
    %242 = vector.broadcast %112 : vector<1x1xf32> to vector<32x1xf32>
    %243 = arith.addf %240, %242 : vector<32x1xf32>
    %244 = arith.negf %243 : vector<32x1xf32>
    %245 = math.exp %244 : vector<32x1xf32>
    %cst_81 = arith.constant 1.000000e+00 : f32
    %246 = vector.broadcast %cst_81 : f32 to vector<32x1xf32>
    %247 = arith.addf %246, %245 : vector<32x1xf32>
    %248 = arith.divf %246, %247 : vector<32x1xf32>
    %249 = arith.mulf %241, %248 : vector<32x1xf32>
    %c0_82 = arith.constant 0 : index
    %c7 = arith.constant 7 : index
    %250 = vector.load %arg18[%c0_82, %c7] : memref<32x32xf32, #tpu.memory_space<vmem>>, vector<32x1xf32>
    tpu.vector_store %arg18[%c0_82, %c7], %249 {strides = array<i32>} : memref<32x32xf32, #tpu.memory_space<vmem>>, vector<32x1xf32>,
    %251 = vector.extract_strided_slice %110 {offsets = [8, 0], sizes = [1, 128], strides = [1, 1]} : vector<32x128xf32> to vector<1x128xf32>
    %252 = vector.broadcast %251 : vector<1x128xf32> to vector<32x128xf32>
    %253 = arith.addf %109, %252 : vector<32x128xf32>
    %cst_83 = arith.constant 0.000000e+00 : f32
    %254 = vector.broadcast %cst_83 : f32 to vector<32x128xf32>
    %255 = arith.maximumf %253, %254 : vector<32x128xf32>
    %256 = arith.truncf %255 : vector<32x128xf32> to vector<32x128xbf16>
    %cst_84 = arith.constant dense<0.000000e+00> : vector<32x1xf32>
    %257 = tpu.matmul %256, %111, %cst_84 {dimension_numbers = #tpu.dot_dimension_numbers<[1], [0], [0], [1], [0, 0, 1, 1], [], []>} : vector<32x128xbf16>, vector<128x1xbf16>, vector<32x1xf32> -> vector<32x1xf32>
    %258 = vector.extract_strided_slice %114 {offsets = [0, 8], sizes = [32, 1], strides = [1, 1]} : vector<32x32xf32> to vector<32x1xf32>
    %259 = vector.broadcast %112 : vector<1x1xf32> to vector<32x1xf32>
    %260 = arith.addf %257, %259 : vector<32x1xf32>
    %261 = arith.negf %260 : vector<32x1xf32>
    %262 = math.exp %261 : vector<32x1xf32>
    %cst_85 = arith.constant 1.000000e+00 : f32
    %263 = vector.broadcast %cst_85 : f32 to vector<32x1xf32>
    %264 = arith.addf %263, %262 : vector<32x1xf32>
    %265 = arith.divf %263, %264 : vector<32x1xf32>
    %266 = arith.mulf %258, %265 : vector<32x1xf32>
    %c0_86 = arith.constant 0 : index
    %c8_87 = arith.constant 8 : index
    %267 = vector.load %arg18[%c0_86, %c8_87] : memref<32x32xf32, #tpu.memory_space<vmem>>, vector<32x1xf32>
    tpu.vector_store %arg18[%c0_86, %c8_87], %266 {strides = array<i32>} : memref<32x32xf32, #tpu.memory_space<vmem>>, vector<32x1xf32>,
    %268 = vector.extract_strided_slice %110 {offsets = [9, 0], sizes = [1, 128], strides = [1, 1]} : vector<32x128xf32> to vector<1x128xf32>
    %269 = vector.broadcast %268 : vector<1x128xf32> to vector<32x128xf32>
    %270 = arith.addf %109, %269 : vector<32x128xf32>
    %cst_88 = arith.constant 0.000000e+00 : f32
    %271 = vector.broadcast %cst_88 : f32 to vector<32x128xf32>
    %272 = arith.maximumf %270, %271 : vector<32x128xf32>
    %273 = arith.truncf %272 : vector<32x128xf32> to vector<32x128xbf16>
    %cst_89 = arith.constant dense<0.000000e+00> : vector<32x1xf32>
    %274 = tpu.matmul %273, %111, %cst_89 {dimension_numbers = #tpu.dot_dimension_numbers<[1], [0], [0], [1], [0, 0, 1, 1], [], []>} : vector<32x128xbf16>, vector<128x1xbf16>, vector<32x1xf32> -> vector<32x1xf32>
    %275 = vector.extract_strided_slice %114 {offsets = [0, 9], sizes = [32, 1], strides = [1, 1]} : vector<32x32xf32> to vector<32x1xf32>
    %276 = vector.broadcast %112 : vector<1x1xf32> to vector<32x1xf32>
    %277 = arith.addf %274, %276 : vector<32x1xf32>
    %278 = arith.negf %277 : vector<32x1xf32>
    %279 = math.exp %278 : vector<32x1xf32>
    %cst_90 = arith.constant 1.000000e+00 : f32
    %280 = vector.broadcast %cst_90 : f32 to vector<32x1xf32>
    %281 = arith.addf %280, %279 : vector<32x1xf32>
    %282 = arith.divf %280, %281 : vector<32x1xf32>
    %283 = arith.mulf %275, %282 : vector<32x1xf32>
    %c0_91 = arith.constant 0 : index
    %c9 = arith.constant 9 : index
    %284 = vector.load %arg18[%c0_91, %c9] : memref<32x32xf32, #tpu.memory_space<vmem>>, vector<32x1xf32>
    tpu.vector_store %arg18[%c0_91, %c9], %283 {strides = array<i32>} : memref<32x32xf32, #tpu.memory_space<vmem>>, vector<32x1xf32>,
    %285 = vector.extract_strided_slice %110 {offsets = [10, 0], sizes = [1, 128], strides = [1, 1]} : vector<32x128xf32> to vector<1x128xf32>
    %286 = vector.broadcast %285 : vector<1x128xf32> to vector<32x128xf32>
    %287 = arith.addf %109, %286 : vector<32x128xf32>
    %cst_92 = arith.constant 0.000000e+00 : f32
    %288 = vector.broadcast %cst_92 : f32 to vector<32x128xf32>
    %289 = arith.maximumf %287, %288 : vector<32x128xf32>
    %290 = arith.truncf %289 : vector<32x128xf32> to vector<32x128xbf16>
    %cst_93 = arith.constant dense<0.000000e+00> : vector<32x1xf32>
    %291 = tpu.matmul %290, %111, %cst_93 {dimension_numbers = #tpu.dot_dimension_numbers<[1], [0], [0], [1], [0, 0, 1, 1], [], []>} : vector<32x128xbf16>, vector<128x1xbf16>, vector<32x1xf32> -> vector<32x1xf32>
    %292 = vector.extract_strided_slice %114 {offsets = [0, 10], sizes = [32, 1], strides = [1, 1]} : vector<32x32xf32> to vector<32x1xf32>
    %293 = vector.broadcast %112 : vector<1x1xf32> to vector<32x1xf32>
    %294 = arith.addf %291, %293 : vector<32x1xf32>
    %295 = arith.negf %294 : vector<32x1xf32>
    %296 = math.exp %295 : vector<32x1xf32>
    %cst_94 = arith.constant 1.000000e+00 : f32
    %297 = vector.broadcast %cst_94 : f32 to vector<32x1xf32>
    %298 = arith.addf %297, %296 : vector<32x1xf32>
    %299 = arith.divf %297, %298 : vector<32x1xf32>
    %300 = arith.mulf %292, %299 : vector<32x1xf32>
    %c0_95 = arith.constant 0 : index
    %c10 = arith.constant 10 : index
    %301 = vector.load %arg18[%c0_95, %c10] : memref<32x32xf32, #tpu.memory_space<vmem>>, vector<32x1xf32>
    tpu.vector_store %arg18[%c0_95, %c10], %300 {strides = array<i32>} : memref<32x32xf32, #tpu.memory_space<vmem>>, vector<32x1xf32>,
    %302 = vector.extract_strided_slice %110 {offsets = [11, 0], sizes = [1, 128], strides = [1, 1]} : vector<32x128xf32> to vector<1x128xf32>
    %303 = vector.broadcast %302 : vector<1x128xf32> to vector<32x128xf32>
    %304 = arith.addf %109, %303 : vector<32x128xf32>
    %cst_96 = arith.constant 0.000000e+00 : f32
    %305 = vector.broadcast %cst_96 : f32 to vector<32x128xf32>
    %306 = arith.maximumf %304, %305 : vector<32x128xf32>
    %307 = arith.truncf %306 : vector<32x128xf32> to vector<32x128xbf16>
    %cst_97 = arith.constant dense<0.000000e+00> : vector<32x1xf32>
    %308 = tpu.matmul %307, %111, %cst_97 {dimension_numbers = #tpu.dot_dimension_numbers<[1], [0], [0], [1], [0, 0, 1, 1], [], []>} : vector<32x128xbf16>, vector<128x1xbf16>, vector<32x1xf32> -> vector<32x1xf32>
    %309 = vector.extract_strided_slice %114 {offsets = [0, 11], sizes = [32, 1], strides = [1, 1]} : vector<32x32xf32> to vector<32x1xf32>
    %310 = vector.broadcast %112 : vector<1x1xf32> to vector<32x1xf32>
    %311 = arith.addf %308, %310 : vector<32x1xf32>
    %312 = arith.negf %311 : vector<32x1xf32>
    %313 = math.exp %312 : vector<32x1xf32>
    %cst_98 = arith.constant 1.000000e+00 : f32
    %314 = vector.broadcast %cst_98 : f32 to vector<32x1xf32>
    %315 = arith.addf %314, %313 : vector<32x1xf32>
    %316 = arith.divf %314, %315 : vector<32x1xf32>
    %317 = arith.mulf %309, %316 : vector<32x1xf32>
    %c0_99 = arith.constant 0 : index
    %c11 = arith.constant 11 : index
    %318 = vector.load %arg18[%c0_99, %c11] : memref<32x32xf32, #tpu.memory_space<vmem>>, vector<32x1xf32>
    tpu.vector_store %arg18[%c0_99, %c11], %317 {strides = array<i32>} : memref<32x32xf32, #tpu.memory_space<vmem>>, vector<32x1xf32>,
    %319 = vector.extract_strided_slice %110 {offsets = [12, 0], sizes = [1, 128], strides = [1, 1]} : vector<32x128xf32> to vector<1x128xf32>
    %320 = vector.broadcast %319 : vector<1x128xf32> to vector<32x128xf32>
    %321 = arith.addf %109, %320 : vector<32x128xf32>
    %cst_100 = arith.constant 0.000000e+00 : f32
    %322 = vector.broadcast %cst_100 : f32 to vector<32x128xf32>
    %323 = arith.maximumf %321, %322 : vector<32x128xf32>
    %324 = arith.truncf %323 : vector<32x128xf32> to vector<32x128xbf16>
    %cst_101 = arith.constant dense<0.000000e+00> : vector<32x1xf32>
    %325 = tpu.matmul %324, %111, %cst_101 {dimension_numbers = #tpu.dot_dimension_numbers<[1], [0], [0], [1], [0, 0, 1, 1], [], []>} : vector<32x128xbf16>, vector<128x1xbf16>, vector<32x1xf32> -> vector<32x1xf32>
    %326 = vector.extract_strided_slice %114 {offsets = [0, 12], sizes = [32, 1], strides = [1, 1]} : vector<32x32xf32> to vector<32x1xf32>
    %327 = vector.broadcast %112 : vector<1x1xf32> to vector<32x1xf32>
    %328 = arith.addf %325, %327 : vector<32x1xf32>
    %329 = arith.negf %328 : vector<32x1xf32>
    %330 = math.exp %329 : vector<32x1xf32>
    %cst_102 = arith.constant 1.000000e+00 : f32
    %331 = vector.broadcast %cst_102 : f32 to vector<32x1xf32>
    %332 = arith.addf %331, %330 : vector<32x1xf32>
    %333 = arith.divf %331, %332 : vector<32x1xf32>
    %334 = arith.mulf %326, %333 : vector<32x1xf32>
    %c0_103 = arith.constant 0 : index
    %c12 = arith.constant 12 : index
    %335 = vector.load %arg18[%c0_103, %c12] : memref<32x32xf32, #tpu.memory_space<vmem>>, vector<32x1xf32>
    tpu.vector_store %arg18[%c0_103, %c12], %334 {strides = array<i32>} : memref<32x32xf32, #tpu.memory_space<vmem>>, vector<32x1xf32>,
    %336 = vector.extract_strided_slice %110 {offsets = [13, 0], sizes = [1, 128], strides = [1, 1]} : vector<32x128xf32> to vector<1x128xf32>
    %337 = vector.broadcast %336 : vector<1x128xf32> to vector<32x128xf32>
    %338 = arith.addf %109, %337 : vector<32x128xf32>
    %cst_104 = arith.constant 0.000000e+00 : f32
    %339 = vector.broadcast %cst_104 : f32 to vector<32x128xf32>
    %340 = arith.maximumf %338, %339 : vector<32x128xf32>
    %341 = arith.truncf %340 : vector<32x128xf32> to vector<32x128xbf16>
    %cst_105 = arith.constant dense<0.000000e+00> : vector<32x1xf32>
    %342 = tpu.matmul %341, %111, %cst_105 {dimension_numbers = #tpu.dot_dimension_numbers<[1], [0], [0], [1], [0, 0, 1, 1], [], []>} : vector<32x128xbf16>, vector<128x1xbf16>, vector<32x1xf32> -> vector<32x1xf32>
    %343 = vector.extract_strided_slice %114 {offsets = [0, 13], sizes = [32, 1], strides = [1, 1]} : vector<32x32xf32> to vector<32x1xf32>
    %344 = vector.broadcast %112 : vector<1x1xf32> to vector<32x1xf32>
    %345 = arith.addf %342, %344 : vector<32x1xf32>
    %346 = arith.negf %345 : vector<32x1xf32>
    %347 = math.exp %346 : vector<32x1xf32>
    %cst_106 = arith.constant 1.000000e+00 : f32
    %348 = vector.broadcast %cst_106 : f32 to vector<32x1xf32>
    %349 = arith.addf %348, %347 : vector<32x1xf32>
    %350 = arith.divf %348, %349 : vector<32x1xf32>
    %351 = arith.mulf %343, %350 : vector<32x1xf32>
    %c0_107 = arith.constant 0 : index
    %c13 = arith.constant 13 : index
    %352 = vector.load %arg18[%c0_107, %c13] : memref<32x32xf32, #tpu.memory_space<vmem>>, vector<32x1xf32>
    tpu.vector_store %arg18[%c0_107, %c13], %351 {strides = array<i32>} : memref<32x32xf32, #tpu.memory_space<vmem>>, vector<32x1xf32>,
    %353 = vector.extract_strided_slice %110 {offsets = [14, 0], sizes = [1, 128], strides = [1, 1]} : vector<32x128xf32> to vector<1x128xf32>
    %354 = vector.broadcast %353 : vector<1x128xf32> to vector<32x128xf32>
    %355 = arith.addf %109, %354 : vector<32x128xf32>
    %cst_108 = arith.constant 0.000000e+00 : f32
    %356 = vector.broadcast %cst_108 : f32 to vector<32x128xf32>
    %357 = arith.maximumf %355, %356 : vector<32x128xf32>
    %358 = arith.truncf %357 : vector<32x128xf32> to vector<32x128xbf16>
    %cst_109 = arith.constant dense<0.000000e+00> : vector<32x1xf32>
    %359 = tpu.matmul %358, %111, %cst_109 {dimension_numbers = #tpu.dot_dimension_numbers<[1], [0], [0], [1], [0, 0, 1, 1], [], []>} : vector<32x128xbf16>, vector<128x1xbf16>, vector<32x1xf32> -> vector<32x1xf32>
    %360 = vector.extract_strided_slice %114 {offsets = [0, 14], sizes = [32, 1], strides = [1, 1]} : vector<32x32xf32> to vector<32x1xf32>
    %361 = vector.broadcast %112 : vector<1x1xf32> to vector<32x1xf32>
    %362 = arith.addf %359, %361 : vector<32x1xf32>
    %363 = arith.negf %362 : vector<32x1xf32>
    %364 = math.exp %363 : vector<32x1xf32>
    %cst_110 = arith.constant 1.000000e+00 : f32
    %365 = vector.broadcast %cst_110 : f32 to vector<32x1xf32>
    %366 = arith.addf %365, %364 : vector<32x1xf32>
    %367 = arith.divf %365, %366 : vector<32x1xf32>
    %368 = arith.mulf %360, %367 : vector<32x1xf32>
    %c0_111 = arith.constant 0 : index
    %c14 = arith.constant 14 : index
    %369 = vector.load %arg18[%c0_111, %c14] : memref<32x32xf32, #tpu.memory_space<vmem>>, vector<32x1xf32>
    tpu.vector_store %arg18[%c0_111, %c14], %368 {strides = array<i32>} : memref<32x32xf32, #tpu.memory_space<vmem>>, vector<32x1xf32>,
    %370 = vector.extract_strided_slice %110 {offsets = [15, 0], sizes = [1, 128], strides = [1, 1]} : vector<32x128xf32> to vector<1x128xf32>
    %371 = vector.broadcast %370 : vector<1x128xf32> to vector<32x128xf32>
    %372 = arith.addf %109, %371 : vector<32x128xf32>
    %cst_112 = arith.constant 0.000000e+00 : f32
    %373 = vector.broadcast %cst_112 : f32 to vector<32x128xf32>
    %374 = arith.maximumf %372, %373 : vector<32x128xf32>
    %375 = arith.truncf %374 : vector<32x128xf32> to vector<32x128xbf16>
    %cst_113 = arith.constant dense<0.000000e+00> : vector<32x1xf32>
    %376 = tpu.matmul %375, %111, %cst_113 {dimension_numbers = #tpu.dot_dimension_numbers<[1], [0], [0], [1], [0, 0, 1, 1], [], []>} : vector<32x128xbf16>, vector<128x1xbf16>, vector<32x1xf32> -> vector<32x1xf32>
    %377 = vector.extract_strided_slice %114 {offsets = [0, 15], sizes = [32, 1], strides = [1, 1]} : vector<32x32xf32> to vector<32x1xf32>
    %378 = vector.broadcast %112 : vector<1x1xf32> to vector<32x1xf32>
    %379 = arith.addf %376, %378 : vector<32x1xf32>
    %380 = arith.negf %379 : vector<32x1xf32>
    %381 = math.exp %380 : vector<32x1xf32>
    %cst_114 = arith.constant 1.000000e+00 : f32
    %382 = vector.broadcast %cst_114 : f32 to vector<32x1xf32>
    %383 = arith.addf %382, %381 : vector<32x1xf32>
    %384 = arith.divf %382, %383 : vector<32x1xf32>
    %385 = arith.mulf %377, %384 : vector<32x1xf32>
    %c0_115 = arith.constant 0 : index
    %c15 = arith.constant 15 : index
    %386 = vector.load %arg18[%c0_115, %c15] : memref<32x32xf32, #tpu.memory_space<vmem>>, vector<32x1xf32>
    tpu.vector_store %arg18[%c0_115, %c15], %385 {strides = array<i32>} : memref<32x32xf32, #tpu.memory_space<vmem>>, vector<32x1xf32>,
    %387 = vector.extract_strided_slice %110 {offsets = [16, 0], sizes = [1, 128], strides = [1, 1]} : vector<32x128xf32> to vector<1x128xf32>
    %388 = vector.broadcast %387 : vector<1x128xf32> to vector<32x128xf32>
    %389 = arith.addf %109, %388 : vector<32x128xf32>
    %cst_116 = arith.constant 0.000000e+00 : f32
    %390 = vector.broadcast %cst_116 : f32 to vector<32x128xf32>
    %391 = arith.maximumf %389, %390 : vector<32x128xf32>
    %392 = arith.truncf %391 : vector<32x128xf32> to vector<32x128xbf16>
    %cst_117 = arith.constant dense<0.000000e+00> : vector<32x1xf32>
    %393 = tpu.matmul %392, %111, %cst_117 {dimension_numbers = #tpu.dot_dimension_numbers<[1], [0], [0], [1], [0, 0, 1, 1], [], []>} : vector<32x128xbf16>, vector<128x1xbf16>, vector<32x1xf32> -> vector<32x1xf32>
    %394 = vector.extract_strided_slice %114 {offsets = [0, 16], sizes = [32, 1], strides = [1, 1]} : vector<32x32xf32> to vector<32x1xf32>
    %395 = vector.broadcast %112 : vector<1x1xf32> to vector<32x1xf32>
    %396 = arith.addf %393, %395 : vector<32x1xf32>
    %397 = arith.negf %396 : vector<32x1xf32>
    %398 = math.exp %397 : vector<32x1xf32>
    %cst_118 = arith.constant 1.000000e+00 : f32
    %399 = vector.broadcast %cst_118 : f32 to vector<32x1xf32>
    %400 = arith.addf %399, %398 : vector<32x1xf32>
    %401 = arith.divf %399, %400 : vector<32x1xf32>
    %402 = arith.mulf %394, %401 : vector<32x1xf32>
    %c0_119 = arith.constant 0 : index
    %c16_120 = arith.constant 16 : index
    %403 = vector.load %arg18[%c0_119, %c16_120] : memref<32x32xf32, #tpu.memory_space<vmem>>, vector<32x1xf32>
    tpu.vector_store %arg18[%c0_119, %c16_120], %402 {strides = array<i32>} : memref<32x32xf32, #tpu.memory_space<vmem>>, vector<32x1xf32>,
    %404 = vector.extract_strided_slice %110 {offsets = [17, 0], sizes = [1, 128], strides = [1, 1]} : vector<32x128xf32> to vector<1x128xf32>
    %405 = vector.broadcast %404 : vector<1x128xf32> to vector<32x128xf32>
    %406 = arith.addf %109, %405 : vector<32x128xf32>
    %cst_121 = arith.constant 0.000000e+00 : f32
    %407 = vector.broadcast %cst_121 : f32 to vector<32x128xf32>
    %408 = arith.maximumf %406, %407 : vector<32x128xf32>
    %409 = arith.truncf %408 : vector<32x128xf32> to vector<32x128xbf16>
    %cst_122 = arith.constant dense<0.000000e+00> : vector<32x1xf32>
    %410 = tpu.matmul %409, %111, %cst_122 {dimension_numbers = #tpu.dot_dimension_numbers<[1], [0], [0], [1], [0, 0, 1, 1], [], []>} : vector<32x128xbf16>, vector<128x1xbf16>, vector<32x1xf32> -> vector<32x1xf32>
    %411 = vector.extract_strided_slice %114 {offsets = [0, 17], sizes = [32, 1], strides = [1, 1]} : vector<32x32xf32> to vector<32x1xf32>
    %412 = vector.broadcast %112 : vector<1x1xf32> to vector<32x1xf32>
    %413 = arith.addf %410, %412 : vector<32x1xf32>
    %414 = arith.negf %413 : vector<32x1xf32>
    %415 = math.exp %414 : vector<32x1xf32>
    %cst_123 = arith.constant 1.000000e+00 : f32
    %416 = vector.broadcast %cst_123 : f32 to vector<32x1xf32>
    %417 = arith.addf %416, %415 : vector<32x1xf32>
    %418 = arith.divf %416, %417 : vector<32x1xf32>
    %419 = arith.mulf %411, %418 : vector<32x1xf32>
    %c0_124 = arith.constant 0 : index
    %c17 = arith.constant 17 : index
    %420 = vector.load %arg18[%c0_124, %c17] : memref<32x32xf32, #tpu.memory_space<vmem>>, vector<32x1xf32>
    tpu.vector_store %arg18[%c0_124, %c17], %419 {strides = array<i32>} : memref<32x32xf32, #tpu.memory_space<vmem>>, vector<32x1xf32>,
    %421 = vector.extract_strided_slice %110 {offsets = [18, 0], sizes = [1, 128], strides = [1, 1]} : vector<32x128xf32> to vector<1x128xf32>
    %422 = vector.broadcast %421 : vector<1x128xf32> to vector<32x128xf32>
    %423 = arith.addf %109, %422 : vector<32x128xf32>
    %cst_125 = arith.constant 0.000000e+00 : f32
    %424 = vector.broadcast %cst_125 : f32 to vector<32x128xf32>
    %425 = arith.maximumf %423, %424 : vector<32x128xf32>
    %426 = arith.truncf %425 : vector<32x128xf32> to vector<32x128xbf16>
    %cst_126 = arith.constant dense<0.000000e+00> : vector<32x1xf32>
    %427 = tpu.matmul %426, %111, %cst_126 {dimension_numbers = #tpu.dot_dimension_numbers<[1], [0], [0], [1], [0, 0, 1, 1], [], []>} : vector<32x128xbf16>, vector<128x1xbf16>, vector<32x1xf32> -> vector<32x1xf32>
    %428 = vector.extract_strided_slice %114 {offsets = [0, 18], sizes = [32, 1], strides = [1, 1]} : vector<32x32xf32> to vector<32x1xf32>
    %429 = vector.broadcast %112 : vector<1x1xf32> to vector<32x1xf32>
    %430 = arith.addf %427, %429 : vector<32x1xf32>
    %431 = arith.negf %430 : vector<32x1xf32>
    %432 = math.exp %431 : vector<32x1xf32>
    %cst_127 = arith.constant 1.000000e+00 : f32
    %433 = vector.broadcast %cst_127 : f32 to vector<32x1xf32>
    %434 = arith.addf %433, %432 : vector<32x1xf32>
    %435 = arith.divf %433, %434 : vector<32x1xf32>
    %436 = arith.mulf %428, %435 : vector<32x1xf32>
    %c0_128 = arith.constant 0 : index
    %c18 = arith.constant 18 : index
    %437 = vector.load %arg18[%c0_128, %c18] : memref<32x32xf32, #tpu.memory_space<vmem>>, vector<32x1xf32>
    tpu.vector_store %arg18[%c0_128, %c18], %436 {strides = array<i32>} : memref<32x32xf32, #tpu.memory_space<vmem>>, vector<32x1xf32>,
    %438 = vector.extract_strided_slice %110 {offsets = [19, 0], sizes = [1, 128], strides = [1, 1]} : vector<32x128xf32> to vector<1x128xf32>
    %439 = vector.broadcast %438 : vector<1x128xf32> to vector<32x128xf32>
    %440 = arith.addf %109, %439 : vector<32x128xf32>
    %cst_129 = arith.constant 0.000000e+00 : f32
    %441 = vector.broadcast %cst_129 : f32 to vector<32x128xf32>
    %442 = arith.maximumf %440, %441 : vector<32x128xf32>
    %443 = arith.truncf %442 : vector<32x128xf32> to vector<32x128xbf16>
    %cst_130 = arith.constant dense<0.000000e+00> : vector<32x1xf32>
    %444 = tpu.matmul %443, %111, %cst_130 {dimension_numbers = #tpu.dot_dimension_numbers<[1], [0], [0], [1], [0, 0, 1, 1], [], []>} : vector<32x128xbf16>, vector<128x1xbf16>, vector<32x1xf32> -> vector<32x1xf32>
    %445 = vector.extract_strided_slice %114 {offsets = [0, 19], sizes = [32, 1], strides = [1, 1]} : vector<32x32xf32> to vector<32x1xf32>
    %446 = vector.broadcast %112 : vector<1x1xf32> to vector<32x1xf32>
    %447 = arith.addf %444, %446 : vector<32x1xf32>
    %448 = arith.negf %447 : vector<32x1xf32>
    %449 = math.exp %448 : vector<32x1xf32>
    %cst_131 = arith.constant 1.000000e+00 : f32
    %450 = vector.broadcast %cst_131 : f32 to vector<32x1xf32>
    %451 = arith.addf %450, %449 : vector<32x1xf32>
    %452 = arith.divf %450, %451 : vector<32x1xf32>
    %453 = arith.mulf %445, %452 : vector<32x1xf32>
    %c0_132 = arith.constant 0 : index
    %c19 = arith.constant 19 : index
    %454 = vector.load %arg18[%c0_132, %c19] : memref<32x32xf32, #tpu.memory_space<vmem>>, vector<32x1xf32>
    tpu.vector_store %arg18[%c0_132, %c19], %453 {strides = array<i32>} : memref<32x32xf32, #tpu.memory_space<vmem>>, vector<32x1xf32>,
    %455 = vector.extract_strided_slice %110 {offsets = [20, 0], sizes = [1, 128], strides = [1, 1]} : vector<32x128xf32> to vector<1x128xf32>
    %456 = vector.broadcast %455 : vector<1x128xf32> to vector<32x128xf32>
    %457 = arith.addf %109, %456 : vector<32x128xf32>
    %cst_133 = arith.constant 0.000000e+00 : f32
    %458 = vector.broadcast %cst_133 : f32 to vector<32x128xf32>
    %459 = arith.maximumf %457, %458 : vector<32x128xf32>
    %460 = arith.truncf %459 : vector<32x128xf32> to vector<32x128xbf16>
    %cst_134 = arith.constant dense<0.000000e+00> : vector<32x1xf32>
    %461 = tpu.matmul %460, %111, %cst_134 {dimension_numbers = #tpu.dot_dimension_numbers<[1], [0], [0], [1], [0, 0, 1, 1], [], []>} : vector<32x128xbf16>, vector<128x1xbf16>, vector<32x1xf32> -> vector<32x1xf32>
    %462 = vector.extract_strided_slice %114 {offsets = [0, 20], sizes = [32, 1], strides = [1, 1]} : vector<32x32xf32> to vector<32x1xf32>
    %463 = vector.broadcast %112 : vector<1x1xf32> to vector<32x1xf32>
    %464 = arith.addf %461, %463 : vector<32x1xf32>
    %465 = arith.negf %464 : vector<32x1xf32>
    %466 = math.exp %465 : vector<32x1xf32>
    %cst_135 = arith.constant 1.000000e+00 : f32
    %467 = vector.broadcast %cst_135 : f32 to vector<32x1xf32>
    %468 = arith.addf %467, %466 : vector<32x1xf32>
    %469 = arith.divf %467, %468 : vector<32x1xf32>
    %470 = arith.mulf %462, %469 : vector<32x1xf32>
    %c0_136 = arith.constant 0 : index
    %c20 = arith.constant 20 : index
    %471 = vector.load %arg18[%c0_136, %c20] : memref<32x32xf32, #tpu.memory_space<vmem>>, vector<32x1xf32>
    tpu.vector_store %arg18[%c0_136, %c20], %470 {strides = array<i32>} : memref<32x32xf32, #tpu.memory_space<vmem>>, vector<32x1xf32>,
    %472 = vector.extract_strided_slice %110 {offsets = [21, 0], sizes = [1, 128], strides = [1, 1]} : vector<32x128xf32> to vector<1x128xf32>
    %473 = vector.broadcast %472 : vector<1x128xf32> to vector<32x128xf32>
    %474 = arith.addf %109, %473 : vector<32x128xf32>
    %cst_137 = arith.constant 0.000000e+00 : f32
    %475 = vector.broadcast %cst_137 : f32 to vector<32x128xf32>
    %476 = arith.maximumf %474, %475 : vector<32x128xf32>
    %477 = arith.truncf %476 : vector<32x128xf32> to vector<32x128xbf16>
    %cst_138 = arith.constant dense<0.000000e+00> : vector<32x1xf32>
    %478 = tpu.matmul %477, %111, %cst_138 {dimension_numbers = #tpu.dot_dimension_numbers<[1], [0], [0], [1], [0, 0, 1, 1], [], []>} : vector<32x128xbf16>, vector<128x1xbf16>, vector<32x1xf32> -> vector<32x1xf32>
    %479 = vector.extract_strided_slice %114 {offsets = [0, 21], sizes = [32, 1], strides = [1, 1]} : vector<32x32xf32> to vector<32x1xf32>
    %480 = vector.broadcast %112 : vector<1x1xf32> to vector<32x1xf32>
    %481 = arith.addf %478, %480 : vector<32x1xf32>
    %482 = arith.negf %481 : vector<32x1xf32>
    %483 = math.exp %482 : vector<32x1xf32>
    %cst_139 = arith.constant 1.000000e+00 : f32
    %484 = vector.broadcast %cst_139 : f32 to vector<32x1xf32>
    %485 = arith.addf %484, %483 : vector<32x1xf32>
    %486 = arith.divf %484, %485 : vector<32x1xf32>
    %487 = arith.mulf %479, %486 : vector<32x1xf32>
    %c0_140 = arith.constant 0 : index
    %c21 = arith.constant 21 : index
    %488 = vector.load %arg18[%c0_140, %c21] : memref<32x32xf32, #tpu.memory_space<vmem>>, vector<32x1xf32>
    tpu.vector_store %arg18[%c0_140, %c21], %487 {strides = array<i32>} : memref<32x32xf32, #tpu.memory_space<vmem>>, vector<32x1xf32>,
    %489 = vector.extract_strided_slice %110 {offsets = [22, 0], sizes = [1, 128], strides = [1, 1]} : vector<32x128xf32> to vector<1x128xf32>
    %490 = vector.broadcast %489 : vector<1x128xf32> to vector<32x128xf32>
    %491 = arith.addf %109, %490 : vector<32x128xf32>
    %cst_141 = arith.constant 0.000000e+00 : f32
    %492 = vector.broadcast %cst_141 : f32 to vector<32x128xf32>
    %493 = arith.maximumf %491, %492 : vector<32x128xf32>
    %494 = arith.truncf %493 : vector<32x128xf32> to vector<32x128xbf16>
    %cst_142 = arith.constant dense<0.000000e+00> : vector<32x1xf32>
    %495 = tpu.matmul %494, %111, %cst_142 {dimension_numbers = #tpu.dot_dimension_numbers<[1], [0], [0], [1], [0, 0, 1, 1], [], []>} : vector<32x128xbf16>, vector<128x1xbf16>, vector<32x1xf32> -> vector<32x1xf32>
    %496 = vector.extract_strided_slice %114 {offsets = [0, 22], sizes = [32, 1], strides = [1, 1]} : vector<32x32xf32> to vector<32x1xf32>
    %497 = vector.broadcast %112 : vector<1x1xf32> to vector<32x1xf32>
    %498 = arith.addf %495, %497 : vector<32x1xf32>
    %499 = arith.negf %498 : vector<32x1xf32>
    %500 = math.exp %499 : vector<32x1xf32>
    %cst_143 = arith.constant 1.000000e+00 : f32
    %501 = vector.broadcast %cst_143 : f32 to vector<32x1xf32>
    %502 = arith.addf %501, %500 : vector<32x1xf32>
    %503 = arith.divf %501, %502 : vector<32x1xf32>
    %504 = arith.mulf %496, %503 : vector<32x1xf32>
    %c0_144 = arith.constant 0 : index
    %c22 = arith.constant 22 : index
    %505 = vector.load %arg18[%c0_144, %c22] : memref<32x32xf32, #tpu.memory_space<vmem>>, vector<32x1xf32>
    tpu.vector_store %arg18[%c0_144, %c22], %504 {strides = array<i32>} : memref<32x32xf32, #tpu.memory_space<vmem>>, vector<32x1xf32>,
    %506 = vector.extract_strided_slice %110 {offsets = [23, 0], sizes = [1, 128], strides = [1, 1]} : vector<32x128xf32> to vector<1x128xf32>
    %507 = vector.broadcast %506 : vector<1x128xf32> to vector<32x128xf32>
    %508 = arith.addf %109, %507 : vector<32x128xf32>
    %cst_145 = arith.constant 0.000000e+00 : f32
    %509 = vector.broadcast %cst_145 : f32 to vector<32x128xf32>
    %510 = arith.maximumf %508, %509 : vector<32x128xf32>
    %511 = arith.truncf %510 : vector<32x128xf32> to vector<32x128xbf16>
    %cst_146 = arith.constant dense<0.000000e+00> : vector<32x1xf32>
    %512 = tpu.matmul %511, %111, %cst_146 {dimension_numbers = #tpu.dot_dimension_numbers<[1], [0], [0], [1], [0, 0, 1, 1], [], []>} : vector<32x128xbf16>, vector<128x1xbf16>, vector<32x1xf32> -> vector<32x1xf32>
    %513 = vector.extract_strided_slice %114 {offsets = [0, 23], sizes = [32, 1], strides = [1, 1]} : vector<32x32xf32> to vector<32x1xf32>
    %514 = vector.broadcast %112 : vector<1x1xf32> to vector<32x1xf32>
    %515 = arith.addf %512, %514 : vector<32x1xf32>
    %516 = arith.negf %515 : vector<32x1xf32>
    %517 = math.exp %516 : vector<32x1xf32>
    %cst_147 = arith.constant 1.000000e+00 : f32
    %518 = vector.broadcast %cst_147 : f32 to vector<32x1xf32>
    %519 = arith.addf %518, %517 : vector<32x1xf32>
    %520 = arith.divf %518, %519 : vector<32x1xf32>
    %521 = arith.mulf %513, %520 : vector<32x1xf32>
    %c0_148 = arith.constant 0 : index
    %c23 = arith.constant 23 : index
    %522 = vector.load %arg18[%c0_148, %c23] : memref<32x32xf32, #tpu.memory_space<vmem>>, vector<32x1xf32>
    tpu.vector_store %arg18[%c0_148, %c23], %521 {strides = array<i32>} : memref<32x32xf32, #tpu.memory_space<vmem>>, vector<32x1xf32>,
    %523 = vector.extract_strided_slice %110 {offsets = [24, 0], sizes = [1, 128], strides = [1, 1]} : vector<32x128xf32> to vector<1x128xf32>
    %524 = vector.broadcast %523 : vector<1x128xf32> to vector<32x128xf32>
    %525 = arith.addf %109, %524 : vector<32x128xf32>
    %cst_149 = arith.constant 0.000000e+00 : f32
    %526 = vector.broadcast %cst_149 : f32 to vector<32x128xf32>
    %527 = arith.maximumf %525, %526 : vector<32x128xf32>
    %528 = arith.truncf %527 : vector<32x128xf32> to vector<32x128xbf16>
    %cst_150 = arith.constant dense<0.000000e+00> : vector<32x1xf32>
    %529 = tpu.matmul %528, %111, %cst_150 {dimension_numbers = #tpu.dot_dimension_numbers<[1], [0], [0], [1], [0, 0, 1, 1], [], []>} : vector<32x128xbf16>, vector<128x1xbf16>, vector<32x1xf32> -> vector<32x1xf32>
    %530 = vector.extract_strided_slice %114 {offsets = [0, 24], sizes = [32, 1], strides = [1, 1]} : vector<32x32xf32> to vector<32x1xf32>
    %531 = vector.broadcast %112 : vector<1x1xf32> to vector<32x1xf32>
    %532 = arith.addf %529, %531 : vector<32x1xf32>
    %533 = arith.negf %532 : vector<32x1xf32>
    %534 = math.exp %533 : vector<32x1xf32>
    %cst_151 = arith.constant 1.000000e+00 : f32
    %535 = vector.broadcast %cst_151 : f32 to vector<32x1xf32>
    %536 = arith.addf %535, %534 : vector<32x1xf32>
    %537 = arith.divf %535, %536 : vector<32x1xf32>
    %538 = arith.mulf %530, %537 : vector<32x1xf32>
    %c0_152 = arith.constant 0 : index
    %c24 = arith.constant 24 : index
    %539 = vector.load %arg18[%c0_152, %c24] : memref<32x32xf32, #tpu.memory_space<vmem>>, vector<32x1xf32>
    tpu.vector_store %arg18[%c0_152, %c24], %538 {strides = array<i32>} : memref<32x32xf32, #tpu.memory_space<vmem>>, vector<32x1xf32>,
    %540 = vector.extract_strided_slice %110 {offsets = [25, 0], sizes = [1, 128], strides = [1, 1]} : vector<32x128xf32> to vector<1x128xf32>
    %541 = vector.broadcast %540 : vector<1x128xf32> to vector<32x128xf32>
    %542 = arith.addf %109, %541 : vector<32x128xf32>
    %cst_153 = arith.constant 0.000000e+00 : f32
    %543 = vector.broadcast %cst_153 : f32 to vector<32x128xf32>
    %544 = arith.maximumf %542, %543 : vector<32x128xf32>
    %545 = arith.truncf %544 : vector<32x128xf32> to vector<32x128xbf16>
    %cst_154 = arith.constant dense<0.000000e+00> : vector<32x1xf32>
    %546 = tpu.matmul %545, %111, %cst_154 {dimension_numbers = #tpu.dot_dimension_numbers<[1], [0], [0], [1], [0, 0, 1, 1], [], []>} : vector<32x128xbf16>, vector<128x1xbf16>, vector<32x1xf32> -> vector<32x1xf32>
    %547 = vector.extract_strided_slice %114 {offsets = [0, 25], sizes = [32, 1], strides = [1, 1]} : vector<32x32xf32> to vector<32x1xf32>
    %548 = vector.broadcast %112 : vector<1x1xf32> to vector<32x1xf32>
    %549 = arith.addf %546, %548 : vector<32x1xf32>
    %550 = arith.negf %549 : vector<32x1xf32>
    %551 = math.exp %550 : vector<32x1xf32>
    %cst_155 = arith.constant 1.000000e+00 : f32
    %552 = vector.broadcast %cst_155 : f32 to vector<32x1xf32>
    %553 = arith.addf %552, %551 : vector<32x1xf32>
    %554 = arith.divf %552, %553 : vector<32x1xf32>
    %555 = arith.mulf %547, %554 : vector<32x1xf32>
    %c0_156 = arith.constant 0 : index
    %c25 = arith.constant 25 : index
    %556 = vector.load %arg18[%c0_156, %c25] : memref<32x32xf32, #tpu.memory_space<vmem>>, vector<32x1xf32>
    tpu.vector_store %arg18[%c0_156, %c25], %555 {strides = array<i32>} : memref<32x32xf32, #tpu.memory_space<vmem>>, vector<32x1xf32>,
    %557 = vector.extract_strided_slice %110 {offsets = [26, 0], sizes = [1, 128], strides = [1, 1]} : vector<32x128xf32> to vector<1x128xf32>
    %558 = vector.broadcast %557 : vector<1x128xf32> to vector<32x128xf32>
    %559 = arith.addf %109, %558 : vector<32x128xf32>
    %cst_157 = arith.constant 0.000000e+00 : f32
    %560 = vector.broadcast %cst_157 : f32 to vector<32x128xf32>
    %561 = arith.maximumf %559, %560 : vector<32x128xf32>
    %562 = arith.truncf %561 : vector<32x128xf32> to vector<32x128xbf16>
    %cst_158 = arith.constant dense<0.000000e+00> : vector<32x1xf32>
    %563 = tpu.matmul %562, %111, %cst_158 {dimension_numbers = #tpu.dot_dimension_numbers<[1], [0], [0], [1], [0, 0, 1, 1], [], []>} : vector<32x128xbf16>, vector<128x1xbf16>, vector<32x1xf32> -> vector<32x1xf32>
    %564 = vector.extract_strided_slice %114 {offsets = [0, 26], sizes = [32, 1], strides = [1, 1]} : vector<32x32xf32> to vector<32x1xf32>
    %565 = vector.broadcast %112 : vector<1x1xf32> to vector<32x1xf32>
    %566 = arith.addf %563, %565 : vector<32x1xf32>
    %567 = arith.negf %566 : vector<32x1xf32>
    %568 = math.exp %567 : vector<32x1xf32>
    %cst_159 = arith.constant 1.000000e+00 : f32
    %569 = vector.broadcast %cst_159 : f32 to vector<32x1xf32>
    %570 = arith.addf %569, %568 : vector<32x1xf32>
    %571 = arith.divf %569, %570 : vector<32x1xf32>
    %572 = arith.mulf %564, %571 : vector<32x1xf32>
    %c0_160 = arith.constant 0 : index
    %c26 = arith.constant 26 : index
    %573 = vector.load %arg18[%c0_160, %c26] : memref<32x32xf32, #tpu.memory_space<vmem>>, vector<32x1xf32>
    tpu.vector_store %arg18[%c0_160, %c26], %572 {strides = array<i32>} : memref<32x32xf32, #tpu.memory_space<vmem>>, vector<32x1xf32>,
    %574 = vector.extract_strided_slice %110 {offsets = [27, 0], sizes = [1, 128], strides = [1, 1]} : vector<32x128xf32> to vector<1x128xf32>
    %575 = vector.broadcast %574 : vector<1x128xf32> to vector<32x128xf32>
    %576 = arith.addf %109, %575 : vector<32x128xf32>
    %cst_161 = arith.constant 0.000000e+00 : f32
    %577 = vector.broadcast %cst_161 : f32 to vector<32x128xf32>
    %578 = arith.maximumf %576, %577 : vector<32x128xf32>
    %579 = arith.truncf %578 : vector<32x128xf32> to vector<32x128xbf16>
    %cst_162 = arith.constant dense<0.000000e+00> : vector<32x1xf32>
    %580 = tpu.matmul %579, %111, %cst_162 {dimension_numbers = #tpu.dot_dimension_numbers<[1], [0], [0], [1], [0, 0, 1, 1], [], []>} : vector<32x128xbf16>, vector<128x1xbf16>, vector<32x1xf32> -> vector<32x1xf32>
    %581 = vector.extract_strided_slice %114 {offsets = [0, 27], sizes = [32, 1], strides = [1, 1]} : vector<32x32xf32> to vector<32x1xf32>
    %582 = vector.broadcast %112 : vector<1x1xf32> to vector<32x1xf32>
    %583 = arith.addf %580, %582 : vector<32x1xf32>
    %584 = arith.negf %583 : vector<32x1xf32>
    %585 = math.exp %584 : vector<32x1xf32>
    %cst_163 = arith.constant 1.000000e+00 : f32
    %586 = vector.broadcast %cst_163 : f32 to vector<32x1xf32>
    %587 = arith.addf %586, %585 : vector<32x1xf32>
    %588 = arith.divf %586, %587 : vector<32x1xf32>
    %589 = arith.mulf %581, %588 : vector<32x1xf32>
    %c0_164 = arith.constant 0 : index
    %c27 = arith.constant 27 : index
    %590 = vector.load %arg18[%c0_164, %c27] : memref<32x32xf32, #tpu.memory_space<vmem>>, vector<32x1xf32>
    tpu.vector_store %arg18[%c0_164, %c27], %589 {strides = array<i32>} : memref<32x32xf32, #tpu.memory_space<vmem>>, vector<32x1xf32>,
    %591 = vector.extract_strided_slice %110 {offsets = [28, 0], sizes = [1, 128], strides = [1, 1]} : vector<32x128xf32> to vector<1x128xf32>
    %592 = vector.broadcast %591 : vector<1x128xf32> to vector<32x128xf32>
    %593 = arith.addf %109, %592 : vector<32x128xf32>
    %cst_165 = arith.constant 0.000000e+00 : f32
    %594 = vector.broadcast %cst_165 : f32 to vector<32x128xf32>
    %595 = arith.maximumf %593, %594 : vector<32x128xf32>
    %596 = arith.truncf %595 : vector<32x128xf32> to vector<32x128xbf16>
    %cst_166 = arith.constant dense<0.000000e+00> : vector<32x1xf32>
    %597 = tpu.matmul %596, %111, %cst_166 {dimension_numbers = #tpu.dot_dimension_numbers<[1], [0], [0], [1], [0, 0, 1, 1], [], []>} : vector<32x128xbf16>, vector<128x1xbf16>, vector<32x1xf32> -> vector<32x1xf32>
    %598 = vector.extract_strided_slice %114 {offsets = [0, 28], sizes = [32, 1], strides = [1, 1]} : vector<32x32xf32> to vector<32x1xf32>
    %599 = vector.broadcast %112 : vector<1x1xf32> to vector<32x1xf32>
    %600 = arith.addf %597, %599 : vector<32x1xf32>
    %601 = arith.negf %600 : vector<32x1xf32>
    %602 = math.exp %601 : vector<32x1xf32>
    %cst_167 = arith.constant 1.000000e+00 : f32
    %603 = vector.broadcast %cst_167 : f32 to vector<32x1xf32>
    %604 = arith.addf %603, %602 : vector<32x1xf32>
    %605 = arith.divf %603, %604 : vector<32x1xf32>
    %606 = arith.mulf %598, %605 : vector<32x1xf32>
    %c0_168 = arith.constant 0 : index
    %c28 = arith.constant 28 : index
    %607 = vector.load %arg18[%c0_168, %c28] : memref<32x32xf32, #tpu.memory_space<vmem>>, vector<32x1xf32>
    tpu.vector_store %arg18[%c0_168, %c28], %606 {strides = array<i32>} : memref<32x32xf32, #tpu.memory_space<vmem>>, vector<32x1xf32>,
    %608 = vector.extract_strided_slice %110 {offsets = [29, 0], sizes = [1, 128], strides = [1, 1]} : vector<32x128xf32> to vector<1x128xf32>
    %609 = vector.broadcast %608 : vector<1x128xf32> to vector<32x128xf32>
    %610 = arith.addf %109, %609 : vector<32x128xf32>
    %cst_169 = arith.constant 0.000000e+00 : f32
    %611 = vector.broadcast %cst_169 : f32 to vector<32x128xf32>
    %612 = arith.maximumf %610, %611 : vector<32x128xf32>
    %613 = arith.truncf %612 : vector<32x128xf32> to vector<32x128xbf16>
    %cst_170 = arith.constant dense<0.000000e+00> : vector<32x1xf32>
    %614 = tpu.matmul %613, %111, %cst_170 {dimension_numbers = #tpu.dot_dimension_numbers<[1], [0], [0], [1], [0, 0, 1, 1], [], []>} : vector<32x128xbf16>, vector<128x1xbf16>, vector<32x1xf32> -> vector<32x1xf32>
    %615 = vector.extract_strided_slice %114 {offsets = [0, 29], sizes = [32, 1], strides = [1, 1]} : vector<32x32xf32> to vector<32x1xf32>
    %616 = vector.broadcast %112 : vector<1x1xf32> to vector<32x1xf32>
    %617 = arith.addf %614, %616 : vector<32x1xf32>
    %618 = arith.negf %617 : vector<32x1xf32>
    %619 = math.exp %618 : vector<32x1xf32>
    %cst_171 = arith.constant 1.000000e+00 : f32
    %620 = vector.broadcast %cst_171 : f32 to vector<32x1xf32>
    %621 = arith.addf %620, %619 : vector<32x1xf32>
    %622 = arith.divf %620, %621 : vector<32x1xf32>
    %623 = arith.mulf %615, %622 : vector<32x1xf32>
    %c0_172 = arith.constant 0 : index
    %c29 = arith.constant 29 : index
    %624 = vector.load %arg18[%c0_172, %c29] : memref<32x32xf32, #tpu.memory_space<vmem>>, vector<32x1xf32>
    tpu.vector_store %arg18[%c0_172, %c29], %623 {strides = array<i32>} : memref<32x32xf32, #tpu.memory_space<vmem>>, vector<32x1xf32>,
    %625 = vector.extract_strided_slice %110 {offsets = [30, 0], sizes = [1, 128], strides = [1, 1]} : vector<32x128xf32> to vector<1x128xf32>
    %626 = vector.broadcast %625 : vector<1x128xf32> to vector<32x128xf32>
    %627 = arith.addf %109, %626 : vector<32x128xf32>
    %cst_173 = arith.constant 0.000000e+00 : f32
    %628 = vector.broadcast %cst_173 : f32 to vector<32x128xf32>
    %629 = arith.maximumf %627, %628 : vector<32x128xf32>
    %630 = arith.truncf %629 : vector<32x128xf32> to vector<32x128xbf16>
    %cst_174 = arith.constant dense<0.000000e+00> : vector<32x1xf32>
    %631 = tpu.matmul %630, %111, %cst_174 {dimension_numbers = #tpu.dot_dimension_numbers<[1], [0], [0], [1], [0, 0, 1, 1], [], []>} : vector<32x128xbf16>, vector<128x1xbf16>, vector<32x1xf32> -> vector<32x1xf32>
    %632 = vector.extract_strided_slice %114 {offsets = [0, 30], sizes = [32, 1], strides = [1, 1]} : vector<32x32xf32> to vector<32x1xf32>
    %633 = vector.broadcast %112 : vector<1x1xf32> to vector<32x1xf32>
    %634 = arith.addf %631, %633 : vector<32x1xf32>
    %635 = arith.negf %634 : vector<32x1xf32>
    %636 = math.exp %635 : vector<32x1xf32>
    %cst_175 = arith.constant 1.000000e+00 : f32
    %637 = vector.broadcast %cst_175 : f32 to vector<32x1xf32>
    %638 = arith.addf %637, %636 : vector<32x1xf32>
    %639 = arith.divf %637, %638 : vector<32x1xf32>
    %640 = arith.mulf %632, %639 : vector<32x1xf32>
    %c0_176 = arith.constant 0 : index
    %c30 = arith.constant 30 : index
    %641 = vector.load %arg18[%c0_176, %c30] : memref<32x32xf32, #tpu.memory_space<vmem>>, vector<32x1xf32>
    tpu.vector_store %arg18[%c0_176, %c30], %640 {strides = array<i32>} : memref<32x32xf32, #tpu.memory_space<vmem>>, vector<32x1xf32>,
    %642 = vector.extract_strided_slice %110 {offsets = [31, 0], sizes = [1, 128], strides = [1, 1]} : vector<32x128xf32> to vector<1x128xf32>
    %643 = vector.broadcast %642 : vector<1x128xf32> to vector<32x128xf32>
    %644 = arith.addf %109, %643 : vector<32x128xf32>
    %cst_177 = arith.constant 0.000000e+00 : f32
    %645 = vector.broadcast %cst_177 : f32 to vector<32x128xf32>
    %646 = arith.maximumf %644, %645 : vector<32x128xf32>
    %647 = arith.truncf %646 : vector<32x128xf32> to vector<32x128xbf16>
    %cst_178 = arith.constant dense<0.000000e+00> : vector<32x1xf32>
    %648 = tpu.matmul %647, %111, %cst_178 {dimension_numbers = #tpu.dot_dimension_numbers<[1], [0], [0], [1], [0, 0, 1, 1], [], []>} : vector<32x128xbf16>, vector<128x1xbf16>, vector<32x1xf32> -> vector<32x1xf32>
    %649 = vector.extract_strided_slice %114 {offsets = [0, 31], sizes = [32, 1], strides = [1, 1]} : vector<32x32xf32> to vector<32x1xf32>
    %650 = vector.broadcast %112 : vector<1x1xf32> to vector<32x1xf32>
    %651 = arith.addf %648, %650 : vector<32x1xf32>
    %652 = arith.negf %651 : vector<32x1xf32>
    %653 = math.exp %652 : vector<32x1xf32>
    %cst_179 = arith.constant 1.000000e+00 : f32
    %654 = vector.broadcast %cst_179 : f32 to vector<32x1xf32>
    %655 = arith.addf %654, %653 : vector<32x1xf32>
    %656 = arith.divf %654, %655 : vector<32x1xf32>
    %657 = arith.mulf %649, %656 : vector<32x1xf32>
    %c0_180 = arith.constant 0 : index
    %c31 = arith.constant 31 : index
    %658 = vector.load %arg18[%c0_180, %c31] : memref<32x32xf32, #tpu.memory_space<vmem>>, vector<32x1xf32>
    tpu.vector_store %arg18[%c0_180, %c31], %657 {strides = array<i32>} : memref<32x32xf32, #tpu.memory_space<vmem>>, vector<32x1xf32>,
    %c0_181 = arith.constant 0 : index
    %c0_182 = arith.constant 0 : index
    %659 = vector.load %arg13[%c0_181, %c0_182] : memref<8x32xbf16, #tpu.memory_space<vmem>>, vector<8x32xbf16>
    %cst_183 = arith.constant dense<0.000000e+00> : vector<32x32xf32>
    %660 = tpu.matmul %103, %659, %cst_183 {dimension_numbers = #tpu.dot_dimension_numbers<[1], [0], [0], [1], [0, 0, 1, 1], [], []>} : vector<32x8xbf16>, vector<8x32xbf16>, vector<32x32xf32> -> vector<32x32xf32>
    %661 = vector.extract_strided_slice %2 {offsets = [6, 0], sizes = [1, 32], strides = [1, 1]} : vector<8x32xf32> to vector<1x32xf32>
    %662 = vector.broadcast %661 : vector<1x32xf32> to vector<32x32xf32>
    %663 = arith.addf %660, %662 : vector<32x32xf32>
    %cst_184 = arith.constant 0.000000e+00 : f32
    %664 = vector.broadcast %cst_184 : f32 to vector<32x32xf32>
    %665 = arith.maximumf %663, %664 : vector<32x32xf32>
    %666 = arith.truncf %665 : vector<32x32xf32> to vector<32x32xbf16>
    %c0_185 = arith.constant 0 : index
    %c0_186 = arith.constant 0 : index
    %667 = vector.load %arg14[%c0_185, %c0_186] : memref<32x32xbf16, #tpu.memory_space<vmem>>, vector<32x32xbf16>
    %cst_187 = arith.constant dense<0.000000e+00> : vector<32x32xf32>
    %668 = tpu.matmul %666, %667, %cst_187 {dimension_numbers = #tpu.dot_dimension_numbers<[1], [0], [0], [1], [0, 0, 1, 1], [], []>} : vector<32x32xbf16>, vector<32x32xbf16>, vector<32x32xf32> -> vector<32x32xf32>
    %669 = vector.extract_strided_slice %2 {offsets = [7, 0], sizes = [1, 32], strides = [1, 1]} : vector<8x32xf32> to vector<1x32xf32>
    %670 = vector.broadcast %669 : vector<1x32xf32> to vector<32x32xf32>
    %671 = arith.addf %668, %670 : vector<32x32xf32>
    %cst_188 = arith.constant 0.000000e+00 : f32
    %672 = vector.broadcast %cst_188 : f32 to vector<32x32xf32>
    %673 = arith.maximumf %671, %672 : vector<32x32xf32>
    %674 = arith.truncf %673 : vector<32x32xf32> to vector<32x32xbf16>
    %c0_189 = arith.constant 0 : index
    %c0_190 = arith.constant 0 : index
    %675 = vector.load %arg15[%c0_189, %c0_190] : memref<32x16xbf16, #tpu.memory_space<vmem>>, vector<32x16xbf16>
    %cst_191 = arith.constant dense<0.000000e+00> : vector<32x16xf32>
    %676 = tpu.matmul %674, %675, %cst_191 {dimension_numbers = #tpu.dot_dimension_numbers<[1], [0], [0], [1], [0, 0, 1, 1], [], []>} : vector<32x32xbf16>, vector<32x16xbf16>, vector<32x16xf32> -> vector<32x16xf32>
    %c0_192 = arith.constant 0 : index
    %c0_193 = arith.constant 0 : index
    %677 = vector.load %arg16[%c0_192, %c0_193] : memref<1x16xf32, #tpu.memory_space<vmem>>, vector<1x16xf32>
    %678 = vector.broadcast %677 : vector<1x16xf32> to vector<32x16xf32>
    %679 = arith.addf %676, %678 : vector<32x16xf32>
    %cst_194 = arith.constant dense<0xFF800000> : vector<32xf32>
    %680 = vector.multi_reduction <maximumf>, %679, %cst_194 [1] : vector<32x16xf32> to vector<32xf32>
    %cst_195 = arith.constant 0xFF800000 : f32
    %681 = vector.broadcast %cst_195 : f32 to vector<32xf32>
    %682 = arith.maximumf %681, %680 : vector<32xf32>
    %683 = vector.shape_cast %682 : vector<32xf32> to vector<32x1xf32>
    %684 = vector.broadcast %683 : vector<32x1xf32> to vector<32x16xf32>
    %685 = arith.subf %679, %684 : vector<32x16xf32>
    %686 = math.exp %685 : vector<32x16xf32>
    %cst_196 = arith.constant dense<0.000000e+00> : vector<32xf32>
    %687 = vector.multi_reduction <add>, %686, %cst_196 [1] : vector<32x16xf32> to vector<32xf32>
    %688 = vector.shape_cast %687 : vector<32xf32> to vector<32x1xf32>
    %689 = vector.broadcast %688 : vector<32x1xf32> to vector<32x16xf32>
    %690 = arith.divf %686, %689 : vector<32x16xf32>
    %c0_197 = arith.constant 0 : index
    %c24_198 = arith.constant 24 : index
    %691 = vector.load %arg17[%c0_197, %c24_198] : memref<32x40xf32, #tpu.memory_space<vmem>>, vector<32x16xf32>
    tpu.vector_store %arg17[%c0_197, %c24_198], %690 {strides = array<i32>} : memref<32x40xf32, #tpu.memory_space<vmem>>, vector<32x16xf32>,
    return
  }
}

</mosaic_0001>

<bundles_post_ra>
// kernel: graph_vae_forward.1
= control target key start
LH: loop header
LB: loop body
LE: loop exit
PB: predicated region body
PF: predicated region fallthrough
CT: control target
= control target key end

     0   :  { %s8864_s0 = inlined_call_operand.vmem [shape: bf16[32,16], index: 0, kind: input, shape index: {}]   ;;  %s8865_s1 = inlined_call_operand.vmem [shape: bf16[32,32], index: 1, kind: input, shape index: {}]   ;;  %s8866_s2 = inlined_call_operand.vmem [shape: bf16[32,32], index: 2, kind: input, shape index: {}]   ;;  %s8867_s3 = inlined_call_operand.vmem [shape: f32[32,8], index: 3, kind: input, shape index: {}]   ;;  %s8868_s4 = inlined_call_operand.vmem [shape: bf16[16,32], index: 4, kind: input, shape index: {}]   ;;  %s8869_s5 = inlined_call_operand.vmem [shape: bf16[32,32], index: 5, kind: input, shape index: {}]   ;;  %s8870_s6 = inlined_call_operand.vmem [shape: bf16[32,16], index: 6, kind: input, shape index: {}]   ;;  %s8871_s7 = inlined_call_operand.vmem [shape: f32[8,32], index: 7, kind: input, shape index: {}]   ;;  %s8872_s8 = inlined_call_operand.vmem [shape: f32[1,16], index: 8, kind: input, shape index: {}]   ;;  %s8873_s9 = inlined_call_operand.vmem [shape: bf16[8,256], index: 9, kind: input, shape index: {}]   ;;  %s8874_s10 = inlined_call_operand.vmem [shape: f32[1,128], index: 10, kind: input, shape index: {}]   ;;  %s8875_s11 = inlined_call_operand.vmem [shape: bf16[128,1], index: 11, kind: input, shape index: {}]   ;;  %s8876_s12 = inlined_call_operand.<no memory space> [shape: f32[1,1], index: 12, kind: input, shape index: {}]   ;;  %s8877_s13 = inlined_call_operand.vmem [shape: bf16[8,32], index: 13, kind: input, shape index: {}]   ;;  %s8878_s14 = inlined_call_operand.vmem [shape: bf16[32,32], index: 14, kind: input, shape index: {}]   ;;  %s8879_s15 = inlined_call_operand.vmem [shape: bf16[32,16], index: 15, kind: input, shape index: {}]   ;;  %s8880_s16 = inlined_call_operand.vmem [shape: f32[1,16], index: 16, kind: input, shape index: {}]   ;;  %s8881_s17 = inlined_call_operand.vmem [shape: f32[32,40], index: 17, kind: output, shape index: {0}]   ;;  %s8882_s18 = inlined_call_operand.hbm [shape: f32[32,32], index: 18, kind: output, shape index: {1}]  }
   0x1   :  { %8886 = sst [smem:[#allocation8_spill]] %s8864_s0  ;;  %v24_v0 = vstv %s8876_s12 }
   0x2   :  { %8887 = sst [smem:[#allocation9_spill]] %s8865_s1  ;;  %25 = vst [vmem:[#allocation2] sm:$0x1] %v24_v0 }
   0x3   :  { %8888 = sst [smem:[#allocation10_spill]] %s8866_s2 }
   0x4   :  { %s8889_s0 = sld [smem:[#allocation8_spill]]  ;;  %vm93_vm0 = vcmask 261120   ;;  %s8890_s22 = sld [smem:[#allocation9_spill]] }
   0xa   :  { %v6084_v1 = vld [vmem:[%s8889_s0] sm:$0xff]   ;;  %v6085_v2 = vld [vmem:[%s8889_s0 + $0x8] sm:$0xff]  }
   0xb   :  { %5340 = vmatprep.subr.bf16.mxu0 %v6084_v1  ;;  %v6841_v3 = vld [vmem:[%s8890_s22] sm:$0xff]   ;;  %v6848_v4 = vld [vmem:[%s8890_s22 + $0x8] sm:$0xff]  }
   0xc   :  { %5341 = vmatpush3.bf16.msra.mxu0 %v6084_v1  ;;  %5344 = vmatprep.mubr.msk.bf16.mxu0 %vm93_vm0, %v6841_v3 }
   0xd   :  { %5342 = vmatprep.subr.bf16.mxu0 %v6085_v2 }
  0x10   :  { %5343 = vmatpush3.bf16.msra.mxu0 %v6085_v2 }
  0x13   :  { %5345 = vmatmul.mubr.msk.bf16.vlgmr.msra.gmra.mrb[0].mxu0 %vm93_vm0, %v6848_v4 }
  0x14   :  { %5366 = vmatprep.mubr.msk.bf16.mxu0 %vm93_vm0, %v6841_v3 }
  0x15   :  { %26 = vsyncpa [#allocation4], 0  ;;  %v6088_v5 = vld [vmem:[%s8868_s4] sm:$0xff]   ;;  %vm163_vm1 = vcmask 130048   ;;  %v6090_v13 = vld [vmem:[%s8869_s5 + $0x8] sm:$0xff]   ;;  %v153_v14 = vlaneseq  ;;  %s6699_s22 = smov 8  }
  0x16   :  { %5348 = vmatprep.subr.bf16.mxu1 %v6088_v5  ;;  %v6089_v12 = vld [vmem:[%s8869_s5] sm:$0xff]   ;;  %vm776_vm2 = vcmask 1043456   ;;  %vm731_vm11 = vcmask 64512   ;;  %vm752_vm12 = vcmask 130112   ;;  %vm757_vm13 = vcmask 195712   ;;  %s8891_s19 = sld [smem:[#allocation10_spill]] }
  0x17   :  { %5349 = vmatpush3.bf16.msra.mxu1 %v6088_v5  ;;  %v6865_v15 = vshrl.u32 %v153_v14, 7  ;;  %v6873_v17 = vld [vmem:[%s8871_s7] sm:$0xff]  ;;  %vm1017_vm14 = vcmask 7168   ;;  %s6702_s23 = smov 1   ;;  %s6705_s28 = smov 4   ;;  %vm1129_vm15 = vcmask 15368  }
  0x18   :  { %5354 = vmatprep.subr.bf16.mxu1 %v6089_v12  ;;  %s6706_s4 = smov 5   ;;  %s6707_s29 = smov 6  }
  0x19   :  { %v6868_v16 = vsub.s32 0, %v6865_v15  ;;  %v6886_v2 = vsub.s32 1, %v6865_v15  ;;  %v6889_v5 = vsub.s32 2, %v6865_v15  ;;  %s6708_s5 = smov 7   ;;  %s6709_s24 = smov 9  }
  0x1a   :  { %s6719_s1 = smov 19   ;;  %s6720_s20 = smov 20  }
  0x1b   :  { %v156_v18 = vrot.slane %v6873_v17, %v6868_v16  ;;  %s6721_s21 = smov 21   ;;  %s6730_s30 = smov 30  }
  0x1c   :  { %s6731_s0 = smov 31  }
  0xe6   :  { %v5346_v6 = vpop.f32.mrb[0].mxu0 }
  0xe7   :  { %v134_v7 = vpop.f32.mrb[1].mxu0 }
  0xe8   :  { %v5347_v8 = vpop.f32.mrb[2].mxu0 }
  0xe9   :  { %v150_v9 = vpack.c.bf16 %v5347_v8, %v5346_v6  ;;  %v137_v10 = vpop.f32.mrb[3].mxu0  ;;  %v267_v6 = vrot.slane %v6873_v17, %v6886_v2  ;;  %v275_v8 = vrot.slane %v6873_v17, %v6889_v5 }
  0xea   :  { %v149_v11 = vpack.c.bf16 %v137_v10, %v134_v7 }
  0xec   :  { %5350 = vmatprep.mubr.msk.bf16.mxu1 %vm163_vm1, %v149_v11 }
  0xed   :  { %5351 = vmatmul.mubr.msk.bf16.vlgmr.msra.gmra.mrb[0].mxu1 %vm163_vm1, %v150_v9 }
  0xee   :  { %5355 = vmatpush3.bf16.msra.mxu1 %v6089_v12 }
  0xef   :  { %5356 = vmatprep.subr.bf16.mxu1 %v6090_v13 }
  0xf2   :  { %5357 = vmatpush3.bf16.msra.mxu1 %v6090_v13 }
 0x1c0   :  { %v5352_v19 = vpop.f32.mrb[0].mxu1 }
 0x1c1   :  { %v204_v20 = vpop.f32.mrb[1].mxu1  ;;  %v213_v21 = vadd.f32 %v5352_v19, %v156_v18 }
 0x1c2   :  { %v205_v22 = vadd.f32 %v204_v20, %v156_v18  ;;  %v5353_v23 = vpop.f32.mrb[2].mxu1 }
 0x1c3   :  { %v207_v24 = vpop.f32.mrb[3].mxu1  ;;  %v216_v26 = vadd.f32 %v5353_v23, %v156_v18  ;;  %v236_v28 = vmul.f32 %v213_v21, %v213_v21  ;;  %v222_v33 = vsel %vm93_vm0, %v213_v21, 0.0 }
 0x1c4   :  { %v234_v25 = vmul.f32 %v205_v22, %v205_v22  ;;  %v208_v27 = vadd.f32 %v207_v24, %v156_v18  ;;  %v219_v29 = vsel %vm93_vm0, %v205_v22, 0.0 }
 0x1c5   :  { %v237_v35 = vmul.f32 %v216_v26, %v216_v26  ;;  %v241_v39 = vsel %vm93_vm0, %v236_v28, 0.0  ;;  %v224_v40 = vsel %vm93_vm0, %v216_v26, 0.0 }
 0x1c6   :  { %v220_v30 = vsel %vm93_vm0, %v208_v27, 0.0  ;;  %v235_v31 = vmul.f32 %v208_v27, %v208_v27  ;;  %v238_v34 = vsel %vm93_vm0, %v234_v25, 0.0 }
 0x1c7   :  { %v221_v32 = vadd.f32 %v220_v30, %v219_v29  ;;  %v243_v43 = vsel %vm93_vm0, %v237_v35, 0.0 }
 0x1c8   :  { %v239_v36 = vsel %vm93_vm0, %v235_v31, 0.0 }
 0x1c9   :  { %v223_v37 = vadd.f32 %v222_v33, %v221_v32  ;;  %v240_v38 = vadd.f32 %v239_v36, %v238_v34  ;;  %v6091_v36 = vld [vmem:[%s8870_s6] sm:$0xff]  }
 0x1ca   :  { %5370 = vmatprep.subr.bf16.mxu1 %v6091_v36 }
 0x1cb   :  { %v225_v41 = vadd.f32 %v224_v40, %v223_v37  ;;  %v242_v42 = vadd.f32 %v241_v39, %v240_v38  ;;  %v6092_v37 = vld [vmem:[%s8870_s6 + $0x8] sm:$0xff]   ;;  %v6928_v38 = vsub.s32 3, %v6865_v15  ;;  %s6718_s6 = smov 18  }
 0x1cd   :  { %v226_v44 = vrot.slane %v225_v41, 4  ;;  %v244_v45 = vadd.f32 %v243_v43, %v242_v42  ;;  %v362_v39 = vrot.slane %v6873_v17, %v6928_v38 }
 0x1cf   :  { %v227_v46 = vadd.f32 %v226_v44, %v225_v41  ;;  %v245_v47 = vrot.slane %v244_v45, 4 }
 0x1d1   :  { %v228_v48 = vrot.slane %v227_v46, 2  ;;  %v246_v49 = vadd.f32 %v245_v47, %v244_v45 }
 0x1d3   :  { %v229_v50 = vadd.f32 %v228_v48, %v227_v46  ;;  %v247_v51 = vrot.slane %v246_v49, 2 }
 0x1d5   :  { %v230_v52 = vrot.slane %v229_v50, 1  ;;  %v248_v53 = vadd.f32 %v247_v51, %v246_v49 }
 0x1d7   :  { %v231_v54 = vadd.f32 %v230_v52, %v229_v50  ;;  %v249_v55 = vrot.slane %v248_v53, 1 }
 0x1d9   :  { %v233_v56 = vmul.f32 0.03125, %v231_v54  ;;  %v250_v57 = vadd.f32 %v249_v55, %v248_v53 }
 0x1db   :  { %v251_v58 = vmul.f32 0.03125, %v250_v57  ;;  %v252_v59 = vmul.f32 %v233_v56, %v233_v56  ;;  %v255_v60 = vsub.f32 %v208_v27, %v233_v56  ;;  %v254_v61 = vsub.f32 %v205_v22, %v233_v56 }
 0x1dc   :  { %v256_v62 = vsub.f32 %v213_v21, %v233_v56  ;;  %v257_v63 = vsub.f32 %v216_v26, %v233_v56 }
 0x1dd   :  { %v253_v0 = vsub.f32 %v251_v58, %v252_v59 }
 0x1df   :  { %v258_v1 = vadd.f32 1e-05, %v253_v0 }
 0x1e1   :  { %6107 = vrsqrt.f32 %v258_v1 }
 0x1eb   :  { %v6108_v7 = vpop.eup %6107 }
 0x1ec   :  { %v261_v9 = vmul.f32 %v6108_v7, %v255_v60  ;;  %v260_v10 = vmul.f32 %v6108_v7, %v254_v61  ;;  %v262_v11 = vmul.f32 %v6108_v7, %v256_v62  ;;  %v263_v12 = vmul.f32 %v6108_v7, %v257_v63 }
 0x1ee   :  { %v269_v13 = vmul.f32 %v267_v6, %v261_v9  ;;  %v268_v14 = vmul.f32 %v267_v6, %v260_v10  ;;  %v270_v18 = vmul.f32 %v267_v6, %v262_v11  ;;  %v271_v19 = vmul.f32 %v267_v6, %v263_v12 }
 0x1f0   :  { %v6895_v20 = vadd.f32 %v275_v8, %v268_v14  ;;  %v6897_v21 = vadd.f32 %v275_v8, %v269_v13  ;;  %v6899_v22 = vadd.f32 %v275_v8, %v270_v18  ;;  %v6901_v23 = vadd.f32 %v275_v8, %v271_v19 }
 0x1f2   :  { %v280_v24 = vmax.f32 %v6895_v20, 0.0  ;;  %v281_v25 = vmax.f32 %v6897_v21, 0.0  ;;  %v282_v26 = vmax.f32 %v6899_v22, 0.0  ;;  %v283_v27 = vmax.f32 %v6901_v23, 0.0  ;;  %v689_v20 = vld [vmem:[%s8867_s3 + $0x10] sm:$0xff]  ;;  %v687_v21 = vld [vmem:[%s8867_s3] sm:$0xff] }
 0x1f3   :  { %699 = vrot.lane.b32.xlu1 %v689_v20, %s6699_s22  ;;  %695 = vrot.lane.b32.xlu0 %v687_v21, %s6699_s22  ;;  %v690_v22 = vld [vmem:[%s8867_s3 + $0x18] sm:$0xff]  ;;  %v688_v23 = vld [vmem:[%s8867_s3 + $0x8] sm:$0xff] }
 0x1f4   :  { %v284_v28 = vpack.c.bf16 %v281_v25, %v280_v24  ;;  %v285_v29 = vpack.c.bf16 %v283_v27, %v282_v26 }
 0x1f6   :  { %5358 = vmatprep.mubr.msk.bf16.mxu1 %vm93_vm0, %v284_v28 }
 0x1f7   :  { %5359 = vmatmul.mubr.msk.bf16.vlgmr.msra.gmra.mrb[4].mxu1 %vm93_vm0, %v285_v29  ;;  %701 = vrot.lane.b32.xlu1 %v690_v22, %s6699_s22 }
 0x1f8   :  { %5371 = vmatpush3.bf16.msra.mxu1 %v6091_v36  ;;  %697 = vrot.lane.b32.xlu0 %v688_v23, %s6699_s22 }
 0x1f9   :  { %5372 = vmatprep.subr.bf16.mxu1 %v6092_v37 }
 0x1fc   :  { %5373 = vmatpush3.bf16.msra.mxu1 %v6092_v37  ;;  %v6941_v37 = vsub.s32 4, %v6865_v15 }
 0x2ca   :  { %v5360_v30 = vpop.f32.mrb[4].mxu1 }
 0x2cb   :  { %v342_v31 = vpop.f32.mrb[5].mxu1 }
 0x2cc   :  { %v5361_v32 = vpop.f32.mrb[6].mxu1 }
 0x2cd   :  { %v358_v33 = vpack.c.bf16 %v5361_v32, %v5360_v30  ;;  %v345_v34 = vpop.f32.mrb[7].mxu1 }
 0x2ce   :  { %v357_v35 = vpack.c.bf16 %v345_v34, %v342_v31 }
 0x2d0   :  { %5362 = vmatprep.subr.bf16.mxu0 %v357_v35 }
 0x2d1   :  { %5363 = vmatpush3.bf16.msra.mxu0 %v357_v35 }
 0x2d2   :  { %5364 = vmatprep.subr.bf16.mxu0 %v358_v33 }
 0x2d5   :  { %5365 = vmatpush3.bf16.msra.mxu0 %v358_v33 }
 0x2d8   :  { %5367 = vmatmul.mubr.msk.bf16.vlgmr.msra.gmra.mrb[4].mxu0 %vm93_vm0, %v6848_v4 }
 0x2d9   :  { %5382 = vmatprep.mubr.msk.bf16.mxu0 %vm93_vm0, %v6841_v3 }
 0x3ab   :  { %v5368_v40 = vpop.f32.mrb[4].mxu0 }
 0x3ac   :  { %v397_v3 = vpop.f32.mrb[5].mxu0  ;;  %v406_v41 = vadd.f32 %v5368_v40, %v362_v39  ;;  %v459_v40 = vrot.slane %v6873_v17, %v6941_v37 }
 0x3ad   :  { %v398_v42 = vadd.f32 %v397_v3, %v362_v39  ;;  %v5369_v43 = vpop.f32.mrb[6].mxu0 }
 0x3ae   :  { %v400_v44 = vpop.f32.mrb[7].mxu0  ;;  %v409_v46 = vadd.f32 %v5369_v43, %v362_v39  ;;  %v428_v48 = vmul.f32 %v406_v41, %v406_v41  ;;  %v415_v53 = vsel %vm93_vm0, %v406_v41, 0.0 }
 0x3af   :  { %v426_v45 = vmul.f32 %v398_v42, %v398_v42  ;;  %v401_v47 = vadd.f32 %v400_v44, %v362_v39  ;;  %v412_v49 = vsel %vm93_vm0, %v398_v42, 0.0  ;;  %v6944_v39 = vsub.s32 5, %v6865_v15 }
 0x3b0   :  { %v429_v55 = vmul.f32 %v409_v46, %v409_v46  ;;  %v433_v59 = vsel %vm93_vm0, %v428_v48, 0.0  ;;  %v417_v60 = vsel %vm93_vm0, %v409_v46, 0.0 }
 0x3b1   :  { %v413_v50 = vsel %vm93_vm0, %v401_v47, 0.0  ;;  %v427_v51 = vmul.f32 %v401_v47, %v401_v47  ;;  %v430_v54 = vsel %vm93_vm0, %v426_v45, 0.0  ;;  %v467_v43 = vrot.slane %v6873_v17, %v6944_v39 }
 0x3b2   :  { %v414_v52 = vadd.f32 %v413_v50, %v412_v49  ;;  %v435_v63 = vsel %vm93_vm0, %v429_v55, 0.0 }
 0x3b3   :  { %v431_v56 = vsel %vm93_vm0, %v427_v51, 0.0 }
 0x3b4   :  { %v416_v57 = vadd.f32 %v415_v53, %v414_v52  ;;  %v432_v58 = vadd.f32 %v431_v56, %v430_v54 }
 0x3b6   :  { %v418_v61 = vadd.f32 %v417_v60, %v416_v57  ;;  %v434_v62 = vadd.f32 %v433_v59, %v432_v58 }
 0x3b8   :  { %v419_v0 = vrot.slane %v418_v61, 4  ;;  %v436_v1 = vadd.f32 %v435_v63, %v434_v62 }
 0x3ba   :  { %v420_v6 = vadd.f32 %v419_v0, %v418_v61  ;;  %v437_v7 = vrot.slane %v436_v1, 4 }
 0x3bc   :  { %v421_v8 = vrot.slane %v420_v6, 2  ;;  %v438_v9 = vadd.f32 %v437_v7, %v436_v1  ;;  %v764_v1 = vld [vmem:[%s8873_s9] sm:$0xff]  ;;  %s6704_s9 = smov 3  }
 0x3bd   :  { %v4823_v7 = vcombine.low %v764_v1, %v764_v1 }
 0x3be   :  { %v422_v10 = vadd.f32 %v421_v8, %v420_v6  ;;  %v439_v11 = vrot.slane %v438_v9, 2  ;;  %v4824_v6 = vcombine.high %v764_v1, %v764_v1 }
 0x3bf   :  { %v778_v8 = vsel %vm776_vm2, %v4823_v7, 0 }
 0x3c0   :  { %v423_v12 = vrot.slane %v422_v10, 1  ;;  %v440_v13 = vadd.f32 %v439_v11, %v438_v9  ;;  %4825 = vmatprep.subr.msk.bf16.mxu1 %vm776_vm2, %v4824_v6  ;;  %v4820_v9 = vld [vmem:[%s8872_s8] ss:$0 sm:$0xff]  ;;  %s6701_s8 = smov 120  }
 0x3c2   :  { %v424_v14 = vadd.f32 %v423_v12, %v422_v10  ;;  %v441_v18 = vrot.slane %v440_v13, 1 }
 0x3c4   :  { %v425_v19 = vmul.f32 0.03125, %v424_v14  ;;  %v442_v28 = vadd.f32 %v441_v18, %v440_v13 }
 0x3c6   :  { %v443_v29 = vmul.f32 0.03125, %v442_v28  ;;  %v444_v30 = vmul.f32 %v425_v19, %v425_v19  ;;  %v447_v31 = vsub.f32 %v401_v47, %v425_v19  ;;  %v446_v32 = vsub.f32 %v398_v42, %v425_v19 }
 0x3c7   :  { %v448_v33 = vsub.f32 %v406_v41, %v425_v19  ;;  %v449_v34 = vsub.f32 %v409_v46, %v425_v19 }
 0x3c8   :  { %v445_v35 = vsub.f32 %v443_v29, %v444_v30 }
 0x3ca   :  { %v450_v36 = vadd.f32 1e-05, %v445_v35 }
 0x3cc   :  { %6109 = vrsqrt.f32 %v450_v36 }
 0x3d6   :  { %v6110_v3 = vpop.eup %6109 }
 0x3d7   :  { %v453_v44 = vmul.f32 %v6110_v3, %v447_v31  ;;  %v452_v42 = vmul.f32 %v6110_v3, %v446_v32  ;;  %v454_v41 = vmul.f32 %v6110_v3, %v448_v33  ;;  %v455_v45 = vmul.f32 %v6110_v3, %v449_v34 }
 0x3d9   :  { %v461_v46 = vmul.f32 %v459_v40, %v453_v44  ;;  %v460_v47 = vmul.f32 %v459_v40, %v452_v42  ;;  %v462_v48 = vmul.f32 %v459_v40, %v454_v41  ;;  %v463_v49 = vmul.f32 %v459_v40, %v455_v45 }
 0x3db   :  { %v469_v50 = vadd.f32 %v467_v43, %v461_v46  ;;  %v468_v51 = vadd.f32 %v467_v43, %v460_v47  ;;  %v470_v52 = vadd.f32 %v467_v43, %v462_v48  ;;  %v471_v53 = vadd.f32 %v467_v43, %v463_v49 }
 0x3dd   :  { %v472_v54 = vmax.f32 %v468_v51, 0.0  ;;  %v473_v55 = vmax.f32 %v469_v50, 0.0  ;;  %v474_v56 = vmax.f32 %v470_v52, 0.0  ;;  %v475_v57 = vmax.f32 %v471_v53, 0.0 }
 0x3df   :  { %v476_v58 = vadd.f32 %v472_v54, %v280_v24  ;;  %v477_v17 = vadd.f32 %v473_v55, %v281_v25  ;;  %v478_v59 = vadd.f32 %v474_v56, %v282_v26  ;;  %v479_v60 = vadd.f32 %v475_v57, %v283_v27 }
 0x3e1   :  { %v480_v61 = vpack.c.bf16 %v477_v17, %v476_v58  ;;  %v481_v62 = vpack.c.bf16 %v479_v60, %v478_v59 }
 0x3e3   :  { %5374 = vmatprep.mubr.msk.bf16.mxu1 %vm93_vm0, %v480_v61 }
 0x3e4   :  { %5375 = vmatmul.mubr.msk.bf16.vlgmr.msra.gmra.mrb[8].mxu1 %vm93_vm0, %v481_v62 }
 0x3e5   :  { %784 = vmatpush1.bf16.msra.mxu1 %v778_v8  ;;  %v696_v8 = vpop.permute.xlu0 %695 }
 0x4b7   :  { %v5376_v24 = vpop.f32.mrb[8].mxu1 }
 0x4b8   :  { %v538_v25 = vpop.f32.mrb[9].mxu1 }
 0x4b9   :  { %v5377_v26 = vpop.f32.mrb[10].mxu1 }
 0x4ba   :  { %v554_v27 = vpack.c.bf16 %v5377_v26, %v5376_v24  ;;  %v541_v63 = vpop.f32.mrb[11].mxu1 }
 0x4bb   :  { %v553_v0 = vpack.c.bf16 %v541_v63, %v538_v25 }
 0x4bd   :  { %5378 = vmatprep.subr.bf16.mxu0 %v553_v0 }
 0x4be   :  { %5379 = vmatpush3.bf16.msra.mxu0 %v553_v0 }
 0x4bf   :  { %5380 = vmatprep.subr.bf16.mxu0 %v554_v27 }
 0x4c2   :  { %5381 = vmatpush3.bf16.msra.mxu0 %v554_v27 }
 0x4c5   :  { %5383 = vmatmul.mubr.msk.bf16.vlgmr.msra.gmra.mrb[8].mxu0 %vm93_vm0, %v6848_v4 }
 0x598   :  { %v5384_v10 = vpop.f32.mrb[8].mxu0 }
 0x599   :  { %v6986_v11 = vadd.f32 %v5384_v10, %v4820_v9  ;;  %v596_v4 = vpop.f32.mrb[9].mxu0 }
 0x59a   :  { %v6988_v12 = vadd.f32 %v4820_v9, %v596_v4  ;;  %v5385_v13 = vpop.f32.mrb[10].mxu0 }
 0x59b   :  { %v625_v14 = vand.u32 2147483647, %v6986_v11  ;;  %v6991_v18 = vadd.f32 %v5385_v13, %v4820_v9  ;;  %v599_v19 = vpop.f32.mrb[11].mxu0  ;;  %v613_v59 = vmax.f32 %v6986_v11, 0.0  ;;  %vm617_vm3 = vcmp.ne.f32.partialorder %v6986_v11, %v6986_v11 }
 0x59c   :  { %v623_v28 = vand.u32 2147483647, %v6988_v12  ;;  %v6994_v29 = vadd.f32 %v4820_v9, %v599_v19  ;;  %v611_v22 = vmax.f32 %v6988_v12, 0.0  ;;  %vm615_vm7 = vcmp.ne.f32.partialorder %v6988_v12, %v6988_v12 }
 0x59d   :  { %v629_v30 = vsub.f32 0.0, %v625_v14  ;;  %v626_v31 = vand.u32 2147483647, %v6991_v18  ;;  %v614_v23 = vmax.f32 %v6991_v18, 0.0  ;;  %vm618_vm9 = vcmp.ne.f32.partialorder %v6991_v18, %v6991_v18 }
 0x59e   :  { %v627_v32 = vsub.f32 0.0, %v623_v28  ;;  %v624_v33 = vand.u32 2147483647, %v6994_v29  ;;  %v612_v28 = vmax.f32 %v6994_v29, 0.0  ;;  %vm616_vm10 = vcmp.ne.f32.partialorder %v6994_v29, %v6994_v29 }
 0x59f   :  { %v635_v34 = vmul.f32 1.442695, %v629_v30  ;;  %v630_v35 = vsub.f32 0.0, %v626_v31  ;;  %v6700_v30 = vmov 0  }
 0x5a0   :  { %v631_v36 = vmul.f32 1.442695, %v627_v32  ;;  %v628_v40 = vsub.f32 0.0, %v624_v33  ;;  %815 = vmatprep.mubr.bf16.mxu1 %v6700_v30 }
 0x5a1   :  { %6111 = vpow2.f32 %v635_v34  ;;  %v637_v3 = vmul.f32 1.442695, %v630_v35  ;;  %v700_v34 = vpop.permute.xlu1 %699 }
 0x5a2   :  { %6113 = vpow2.f32 %v631_v36  ;;  %v633_v43 = vmul.f32 1.442695, %v628_v40 }
 0x5a3   :  { %6115 = vpow2.f32 %v637_v3 }
 0x5a4   :  { %6117 = vpow2.f32 %v633_v43 }
 0x5ab   :  { %v6112_v44 = vpop.eup %6111 }
 0x5ac   :  { %v6114_v42 = vpop.eup %6113  ;;  %v657_v41 = vadd.f32 1.0, %v6112_v44  ;;  %v660_v50 = vmul.f32 -0.5, %v6112_v44  ;;  %v663_v55 = vand.u32 2147483647, %v6112_v44 }
 0x5ad   :  { %v6116_v45 = vpop.eup %6115  ;;  %v639_v46 = vadd.f32 1.0, %v6114_v42  ;;  %v642_v51 = vmul.f32 -0.5, %v6114_v42  ;;  %v645_v57 = vand.u32 2147483647, %v6114_v42 }
 0x5ae   :  { %v6118_v47 = vpop.eup %6117  ;;  %6119 = vlog2.f32 %v657_v41  ;;  %v666_v48 = vadd.f32 1.0, %v6116_v45  ;;  %v669_v52 = vmul.f32 -0.5, %v6116_v45  ;;  %v661_v54 = vadd.f32 1.0, %v660_v50  ;;  %v7025_v50 = vld [vmem:[%s8875_s11 + $0x8] sm:$0xff]  }
 0x5af   :  { %6121 = vlog2.f32 %v639_v46  ;;  %v648_v49 = vadd.f32 1.0, %v6118_v47  ;;  %v651_v53 = vmul.f32 -0.5, %v6118_v47  ;;  %v643_v56 = vadd.f32 1.0, %v642_v51 }
 0x5b0   :  { %6123 = vlog2.f32 %v666_v48  ;;  %v670_v58 = vadd.f32 1.0, %v669_v52  ;;  %v672_v60 = vand.u32 2147483647, %v6116_v45  ;;  %v662_v21 = vmul.f32 %v6112_v44, %v661_v54  ;;  %v698_v44 = vpop.permute.xlu0 %697  ;;  %v702_v48 = vpop.permute.xlu1 %701  ;;  %v7034_v52 = vld [vmem:[%s8875_s11 + $0x10] sm:$0xff]  }
 0x5b1   :  { %6125 = vlog2.f32 %v648_v49  ;;  %v652_v61 = vadd.f32 1.0, %v651_v53  ;;  %vm664_vm4 = vcmp.lt.f32.partialorder %v663_v55, 0.0004427343  ;;  %v644_v26 = vmul.f32 %v6114_v42, %v643_v56  ;;  %v7020_v49 = vld [vmem:[%s8875_s11] sm:$0xff]   ;;  %v7045_v53 = vld [vmem:[%s8875_s11 + $0x18] sm:$0xff]  }
 0x5b2   :  { %v654_v27 = vand.u32 2147483647, %v6118_v47  ;;  %vm646_vm5 = vcmp.lt.f32.partialorder %v645_v57, 0.0004427343  ;;  %v671_v1 = vmul.f32 %v6116_v45, %v670_v58  ;;  %vm673_vm6 = vcmp.lt.f32.partialorder %v672_v60, 0.0004427343  ;;  %5386 = vmatprep.subr.bf16.mxu0 %v7020_v49  ;;  %5406 = vmatprep.subr.bf16.mxu1 %v7020_v49 }
 0x5b3   :  { %v653_v10 = vmul.f32 %v6118_v47, %v652_v61  ;;  %5387 = vmatpush3.bf16.msra.mxu0 %v7020_v49 }
 0x5b4   :  { %vm655_vm8 = vcmp.lt.f32.partialorder %v654_v27, 0.0004427343  ;;  %5388 = vmatprep.subr.bf16.mxu0 %v7025_v50 }
 0x5b7   :  { %5389 = vmatpush3.bf16.msra.mxu0 %v7025_v50 }
 0x5b8   :  { %v6120_v17 = vpop.eup %6119  ;;  %5390 = vmatprep.subr.bf16.mxu0 %v7034_v52 }
 0x5b9   :  { %v6122_v62 = vpop.eup %6121  ;;  %v659_v20 = vmul.f32 0.6931472, %v6120_v17 }
 0x5ba   :  { %v6124_v24 = vpop.eup %6123  ;;  %v641_v25 = vmul.f32 0.6931472, %v6122_v62 }
 0x5bb   :  { %v665_v63 = vsel %vm664_vm4, %v662_v21, %v659_v20  ;;  %v668_v0 = vmul.f32 0.6931472, %v6124_v24  ;;  %v6126_v6 = vpop.eup %6125  ;;  %5391 = vmatpush3.bf16.msra.mxu0 %v7034_v52  ;;  %v7124_v20 = vld [vmem:[%s8875_s11 + $0x20] sm:$0xff]   ;;  %v7131_v21 = vld [vmem:[%s8875_s11 + $0x28] sm:$0xff]   ;;  %vm1353_vm4 = vcmask 31768  }
 0x5bc   :  { %v677_v7 = vadd.f32 %v665_v63, %v613_v59  ;;  %v647_v9 = vsel %vm646_vm5, %v644_v26, %v641_v25  ;;  %v650_v14 = vmul.f32 0.6931472, %v6126_v6  ;;  %5392 = vmatprep.subr.bf16.mxu0 %v7045_v53  ;;  %v4828_v24 = vld [vmem:[%s8874_s10] ss:$0 sm:$0xff]  ;;  %s6703_s10 = smov 2   ;;  %vm1465_vm5 = vcmask 39968  }
 0x5bd   :  { %v675_v4 = vadd.f32 %v647_v9, %v611_v22  ;;  %v674_v13 = vsel %vm673_vm6, %v671_v1, %v668_v0  ;;  %v7142_v22 = vld [vmem:[%s8875_s11 + $0x30] sm:$0xff]   ;;  %vm1577_vm6 = vcmask 48168  }
 0x5be   :  { %v678_v19 = vadd.f32 %v674_v13, %v614_v23  ;;  %v681_v31 = vsel %vm617_vm3, %v6986_v11, %v677_v7  ;;  %v656_v33 = vsel %vm655_vm8, %v653_v10, %v650_v14  ;;  %v7149_v23 = vld [vmem:[%s8875_s11 + $0x38] sm:$0xff]   ;;  %vm1241_vm3 = vcmask 23568  }
 0x5bf   :  { %v679_v32 = vsel %vm615_vm7, %v6988_v12, %v675_v4  ;;  %v676_v36 = vadd.f32 %v656_v33, %v612_v28  ;;  %v685_v40 = vadd.f32 1e-06, %v681_v31  ;;  %5393 = vmatpush3.bf16.msra.mxu0 %v7045_v53  ;;  %vm1689_vm7 = vcmask 56368  }
 0x5c0   :  { %v683_v35 = vadd.f32 1e-06, %v679_v32  ;;  %v682_v43 = vsel %vm618_vm9, %v6991_v18, %v678_v19  ;;  %5394 = vmatprep.subr.bf16.mxu0 %v7124_v20  ;;  %vm1801_vm8 = vcmask 64568   ;;  %vm1913_vm9 = vcmask 72768  }
 0x5c1   :  { %v680_v42 = vsel %vm616_vm10, %v6994_v29, %v676_v36  ;;  %v686_v45 = vadd.f32 1e-06, %v682_v43  ;;  %v709_v47 = vmul.f32 %v700_v34, %v685_v40  ;;  %vm2137_vm10 = vcmask 89168  }
 0x5c2   :  { %v707_v3 = vmul.f32 %v696_v8, %v683_v35  ;;  %v684_v41 = vadd.f32 1e-06, %v680_v42 }
 0x5c3   :  { %v710_v51 = vmul.f32 %v702_v48, %v686_v45  ;;  %5395 = vmatpush3.bf16.msra.mxu0 %v7124_v20 }
 0x5c4   :  { %715 = vrot.lane.b32.xlu0 %v707_v3, %s6701_s8  ;;  %v708_v46 = vmul.f32 %v698_v44, %v684_v41  ;;  %5396 = vmatprep.subr.bf16.mxu0 %v7131_v21 }
 0x5c6   :  { %717 = vrot.lane.b32.xlu1 %v708_v46, %s6701_s8 }
 0x5c7   :  { %5397 = vmatpush3.bf16.msra.mxu0 %v7131_v21 }
 0x5c8   :  { %719 = vrot.lane.b32.xlu0 %v709_v47, %s6701_s8  ;;  %5398 = vmatprep.subr.bf16.mxu0 %v7142_v22 }
 0x5ca   :  { %721 = vrot.lane.b32.xlu1 %v710_v51, %s6701_s8 }
 0x5cb   :  { %5399 = vmatpush3.bf16.msra.mxu0 %v7142_v22 }
 0x5cc   :  { %740 = vrot.lane.b32.xlu0 %v6988_v12, %s6699_s22  ;;  %5400 = vmatprep.subr.bf16.mxu0 %v7149_v23 }
 0x5ce   :  { %742 = vrot.lane.b32.xlu1 %v6994_v29, %s6699_s22 }
 0x5cf   :  { %5401 = vmatpush3.bf16.msra.mxu0 %v7149_v23 }
 0x5d0   :  { %744 = vrot.lane.b32.xlu0 %v6986_v11, %s6699_s22  ;;  %5426 = vmatprep.subr.bf16.mxu0 %v7020_v49 }
 0x5d2   :  { %746 = vrot.lane.b32.xlu1 %v6991_v18, %s6699_s22 }
 0x636   :  { %v716_v54 = vpop.permute.xlu0 %715 }
 0x637   :  { %v727_v55 = vadd.f32 %v716_v54, %v6988_v12 }
 0x638   :  { %v718_v56 = vpop.permute.xlu1 %717 }
 0x639   :  { %732 = vst.msk [vmem:[%s8881_s17] sm:$0xff] %vm731_vm11, %v727_v55  ;;  %v728_v57 = vadd.f32 %v718_v56, %v6994_v29 }
 0x63a   :  { %v720_v58 = vpop.permute.xlu0 %719 }
 0x63b   :  { %v729_v17 = vadd.f32 %v720_v58, %v6986_v11  ;;  %733 = vst.msk [vmem:[%s8881_s17 + $0x8] sm:$0xff] %vm731_vm11, %v728_v57  ;;  %v7065_v59 = vpack.c.bf16 %v728_v57, %v727_v55 }
 0x63c   :  { %v722_v12 = vpop.permute.xlu1 %721 }
 0x63d   :  { %734 = vst.msk [vmem:[%s8881_s17 + $0x10] sm:$0xff] %vm731_vm11, %v729_v17  ;;  %v730_v29 = vadd.f32 %v722_v12, %v6991_v18  ;;  %4826 = vmatmul.mubr.msk.bf16.vlgmr.msra.gmra.mrb[12].mxu1 %vm731_vm11, %v7065_v59 }
 0x63e   :  { %v741_v11 = vpop.permute.xlu0 %740  ;;  %825 = vmatprep.mubr.bf16.mxu1 %v6700_v30  ;;  %5407 = vmatpush3.bf16.msra.mxu1 %v7020_v49 }
 0x63f   :  { %753 = vst.msk [vmem:[%s8881_s17] sm:$0xff] %vm752_vm12, %v741_v11  ;;  %5408 = vmatprep.subr.bf16.mxu1 %v7025_v50  ;;  %v7101_v61 = vpack.c.bf16 %v730_v29, %v729_v17 }
 0x640   :  { %735 = vst.msk [vmem:[%s8881_s17 + $0x18] sm:$0xff] %vm731_vm11, %v730_v29  ;;  %v743_v18 = vpop.permute.xlu1 %742 }
 0x641   :  { %758 = vst.msk [vmem:[%s8881_s17] sm:$0xff] %vm757_vm13, %v741_v11 }
 0x642   :  { %754 = vst.msk [vmem:[%s8881_s17 + $0x8] sm:$0xff] %vm752_vm12, %v743_v18  ;;  %v745_v60 = vpop.permute.xlu0 %744  ;;  %5409 = vmatpush3.bf16.msra.mxu1 %v7025_v50 }
 0x643   :  { %759 = vst.msk [vmem:[%s8881_s17 + $0x8] sm:$0xff] %vm757_vm13, %v743_v18  ;;  %5410 = vmatprep.subr.bf16.mxu1 %v7034_v52 }
 0x644   :  { %755 = vst.msk [vmem:[%s8881_s17 + $0x10] sm:$0xff] %vm752_vm12, %v745_v60  ;;  %v747_v62 = vpop.permute.xlu1 %746 }
 0x645   :  { %760 = vst.msk [vmem:[%s8881_s17 + $0x10] sm:$0xff] %vm757_vm13, %v745_v60  ;;  %4827 = vmatmul.mubr.msk.bf16.gmra.mrb[16].mxu1 %vm731_vm11, %v7101_v61 }
 0x646   :  { %756 = vst.msk [vmem:[%s8881_s17 + $0x18] sm:$0xff] %vm752_vm12, %v747_v62  ;;  %5411 = vmatpush3.bf16.msra.mxu1 %v7034_v52  ;;  %vm2361_vm12 = vcmask 105568  }
 0x647   :  { %761 = vst.msk [vmem:[%s8881_s17 + $0x18] sm:$0xff] %vm757_vm13, %v747_v62  ;;  %5412 = vmatprep.subr.bf16.mxu1 %v7045_v53  ;;  %vm2473_vm13 = vcmask 113768  }
 0x64a   :  { %5413 = vmatpush3.bf16.msra.mxu1 %v7045_v53 }
 0x64b   :  { %5414 = vmatprep.subr.bf16.mxu1 %v7124_v20 }
 0x64e   :  { %5415 = vmatpush3.bf16.msra.mxu1 %v7124_v20 }
 0x64f   :  { %5416 = vmatprep.subr.bf16.mxu1 %v7131_v21 }
 0x652   :  { %5417 = vmatpush3.bf16.msra.mxu1 %v7131_v21 }
 0x653   :  { %5418 = vmatprep.subr.bf16.mxu1 %v7142_v22 }
 0x656   :  { %5419 = vmatpush3.bf16.msra.mxu1 %v7142_v22 }
 0x657   :  { %5420 = vmatprep.subr.bf16.mxu1 %v7149_v23 }
 0x65a   :  { %5421 = vmatpush3.bf16.msra.mxu1 %v7149_v23 }
 0x65b   :  { %5446 = vmatprep.subr.bf16.mxu1 %v7020_v49 }
 0x710   :  { %v817_v25 = vpop.f32.mrb[12].mxu1 }
 0x711   :  { %v7162_v26 = vadd.f32 %v4828_v24, %v817_v25  ;;  %v7164_v27 = vpop.f32.mrb[13].mxu1 }
 0x712   :  { %v821_v63 = vpop.f32.mrb[14].mxu1  ;;  %v875_v0 = vrot.slane %v7164_v27, %v6868_v16  ;;  %v1025_v1 = vrot.slane %v7164_v27, %v6886_v2  ;;  %v7180_v19 = vrot.slane %v7164_v27, %v6889_v5  ;;  %v7184_v28 = vrot.slane %v7164_v27, %v6928_v38 }
 0x713   :  { %v7170_v6 = vadd.f32 %v4828_v24, %v821_v63  ;;  %v7172_v7 = vpop.f32.mrb[15].mxu1  ;;  %v7232_v25 = vrot.slane %v7164_v27, %v6944_v39 }
 0x714   :  { %v876_v8 = vadd.f32 %v875_v0, %v7162_v26  ;;  %v1026_v9 = vadd.f32 %v1025_v1, %v7162_v26  ;;  %v1138_v3 = vadd.f32 %v7180_v19, %v7162_v26  ;;  %v1250_v44 = vadd.f32 %v7184_v28, %v7162_v26 }
 0x715   :  { %v877_v10 = vadd.f32 %v875_v0, %v7170_v6  ;;  %v1027_v4 = vadd.f32 %v1025_v1, %v7170_v6  ;;  %v1139_v43 = vadd.f32 %v7180_v19, %v7170_v6  ;;  %v1251_v42 = vadd.f32 %v7184_v28, %v7170_v6 }
 0x716   :  { %v880_v13 = vmax.f32 %v876_v8, 0.0  ;;  %v1030_v14 = vmax.f32 %v1026_v9, 0.0  ;;  %v1142_v54 = vmax.f32 %v1138_v3, 0.0  ;;  %v1254_v56 = vmax.f32 %v1250_v44, 0.0 }
 0x717   :  { %v881_v30 = vmax.f32 %v877_v10, 0.0  ;;  %v1031_v31 = vmax.f32 %v1027_v4, 0.0  ;;  %v1143_v55 = vmax.f32 %v1139_v43, 0.0  ;;  %v1255_v57 = vmax.f32 %v1251_v42, 0.0 }
 0x718   :  { %v827_v32 = vpop.f32.mrb[16].mxu1  ;;  %v1474_v4 = vadd.f32 %v7232_v25, %v7162_v26  ;;  %v7279_v42 = vsub.s32 6, %v6865_v15 }
 0x719   :  { %v7186_v33 = vadd.f32 %v4828_v24, %v827_v32  ;;  %v7188_v34 = vpop.f32.mrb[17].mxu1  ;;  %v884_v35 = vpack.c.bf16 %v881_v30, %v880_v13  ;;  %v1034_v36 = vpack.c.bf16 %v1031_v31, %v1030_v14  ;;  %v1146_v60 = vpack.c.bf16 %v1143_v55, %v1142_v54 }
 0x71a   :  { %v831_v40 = vpop.f32.mrb[18].mxu1  ;;  %v1258_v62 = vpack.c.bf16 %v1255_v57, %v1254_v56  ;;  %v1475_v13 = vadd.f32 %v7232_v25, %v7170_v6 }
 0x71b   :  { %v7198_v41 = vadd.f32 %v4828_v24, %v831_v40  ;;  %v7200_v45 = vpop.f32.mrb[19].mxu1  ;;  %5402 = vmatprep.mubr.bf16.mxu0 %v884_v35  ;;  %5422 = vmatprep.mubr.bf16.mxu1 %v1034_v36  ;;  %v878_v46 = vadd.f32 %v875_v0, %v7186_v33  ;;  %v1028_v47 = vadd.f32 %v1025_v1, %v7186_v33  ;;  %v1478_v35 = vmax.f32 %v1474_v4, 0.0 }
 0x71c   :  { %v7228_v24 = vrot.slane %v7164_v27, %v6941_v37  ;;  %v1140_v9 = vadd.f32 %v7180_v19, %v7186_v33  ;;  %v1252_v10 = vadd.f32 %v7184_v28, %v7186_v33  ;;  %v1479_v36 = vmax.f32 %v1475_v13, 0.0 }
 0x71d   :  { %v879_v48 = vadd.f32 %v875_v0, %v7198_v41  ;;  %v1029_v51 = vadd.f32 %v1025_v1, %v7198_v41  ;;  %v882_v58 = vmax.f32 %v878_v46, 0.0  ;;  %v1032_v12 = vmax.f32 %v1028_v47, 0.0 }
 0x71e   :  { %v1141_v63 = vadd.f32 %v7180_v19, %v7198_v41  ;;  %v1253_v0 = vadd.f32 %v7184_v28, %v7198_v41  ;;  %v1362_v1 = vadd.f32 %v7228_v24, %v7162_v26  ;;  %v1363_v8 = vadd.f32 %v7228_v24, %v7170_v6 }
 0x71f   :  { %v883_v17 = vmax.f32 %v879_v48, 0.0  ;;  %v1033_v29 = vmax.f32 %v1029_v51, 0.0  ;;  %v1144_v32 = vmax.f32 %v1140_v9, 0.0  ;;  %v1256_v28 = vmax.f32 %v1252_v10, 0.0 }
 0x720   :  { %v1145_v14 = vmax.f32 %v1141_v63, 0.0  ;;  %v1257_v30 = vmax.f32 %v1253_v0, 0.0  ;;  %v1366_v19 = vmax.f32 %v1362_v1, 0.0  ;;  %v1367_v31 = vmax.f32 %v1363_v8, 0.0 }
 0x721   :  { %v885_v11 = vpack.c.bf16 %v883_v17, %v882_v58  ;;  %v1035_v18 = vpack.c.bf16 %v1033_v29, %v1032_v12  ;;  %v1482_v44 = vpack.c.bf16 %v1479_v36, %v1478_v35  ;;  %v7283_v46 = vsub.s32 7, %v6865_v15 }
 0x722   :  { %v1147_v40 = vpack.c.bf16 %v1145_v14, %v1144_v32  ;;  %v1259_v3 = vpack.c.bf16 %v1257_v30, %v1256_v28  ;;  %v1370_v43 = vpack.c.bf16 %v1367_v31, %v1366_v19  ;;  %v7290_v47 = vrot.slane %v7164_v27, %v7279_v42 }
 0x723   :  { %5403 = vmatmul.mubr.bf16.vlgmr.msra.gmra.mrb[12].mxu0 %v885_v11  ;;  %5423 = vmatmul.mubr.bf16.vlgmr.msra.gmra.mrb[20].mxu1 %v1035_v18  ;;  %v7295_v48 = vrot.slane %v7164_v27, %v7283_v46  ;;  %v1365_v15 = vadd.f32 %v7228_v24, %v7198_v41  ;;  %v1477_v51 = vadd.f32 %v7232_v25, %v7198_v41 }
 0x724   :  { %5427 = vmatpush3.bf16.msra.mxu0 %v7020_v49  ;;  %5447 = vmatpush3.bf16.msra.mxu1 %v7020_v49  ;;  %v1364_v54 = vadd.f32 %v7228_v24, %v7186_v33  ;;  %v1586_v55 = vadd.f32 %v7290_v47, %v7162_v26  ;;  %v1587_v27 = vadd.f32 %v7290_v47, %v7170_v6 }
 0x725   :  { %5442 = vmatprep.mubr.bf16.mxu0 %v1146_v60  ;;  %5462 = vmatprep.mubr.bf16.mxu1 %v1258_v62  ;;  %v1476_v56 = vadd.f32 %v7232_v25, %v7186_v33  ;;  %v1698_v57 = vadd.f32 %v7295_v48, %v7162_v26  ;;  %v1699_v58 = vadd.f32 %v7295_v48, %v7170_v6  ;;  %v1369_v17 = vmax.f32 %v1365_v15, 0.0 }
 0x726   :  { %5428 = vmatprep.subr.bf16.mxu0 %v7025_v50  ;;  %5448 = vmatprep.subr.bf16.mxu1 %v7025_v50  ;;  %v1481_v12 = vmax.f32 %v1477_v51, 0.0  ;;  %v1368_v29 = vmax.f32 %v1364_v54, 0.0  ;;  %v1590_v11 = vmax.f32 %v1586_v55, 0.0  ;;  %v1591_v18 = vmax.f32 %v1587_v27, 0.0 }
 0x727   :  { %v1480_v60 = vmax.f32 %v1476_v56, 0.0  ;;  %v1702_v62 = vmax.f32 %v1698_v57, 0.0  ;;  %v1703_v24 = vmax.f32 %v1699_v58, 0.0  ;;  %v7346_v8 = vrot.slane %v7172_v7, %v6868_v16 }
 0x728   :  { %5429 = vmatpush3.bf16.msra.mxu0 %v7025_v50  ;;  %5449 = vmatpush3.bf16.msra.mxu1 %v7025_v50  ;;  %v1371_v25 = vpack.c.bf16 %v1369_v17, %v1368_v29  ;;  %v1594_v0 = vpack.c.bf16 %v1591_v18, %v1590_v11  ;;  %v7351_v9 = vrot.slane %v7172_v7, %v6886_v2 }
 0x729   :  { %5430 = vmatprep.subr.bf16.mxu0 %v7034_v52  ;;  %5450 = vmatprep.subr.bf16.mxu1 %v7034_v52  ;;  %v1483_v63 = vpack.c.bf16 %v1481_v12, %v1480_v60  ;;  %v1706_v1 = vpack.c.bf16 %v1703_v24, %v1702_v62  ;;  %v1589_v10 = vadd.f32 %v7290_v47, %v7198_v41 }
 0x72a   :  { %v1701_v4 = vadd.f32 %v7295_v48, %v7198_v41  ;;  %v1588_v13 = vadd.f32 %v7290_v47, %v7186_v33  ;;  %v1810_v14 = vadd.f32 %v7346_v8, %v7162_v26  ;;  %v1811_v30 = vadd.f32 %v7346_v8, %v7170_v6 }
 0x72b   :  { %v1700_v19 = vadd.f32 %v7295_v48, %v7186_v33  ;;  %v1922_v31 = vadd.f32 %v7351_v9, %v7162_v26  ;;  %v1923_v32 = vadd.f32 %v7351_v9, %v7170_v6  ;;  %v1593_v28 = vmax.f32 %v1589_v10, 0.0 }
 0x72c   :  { %5431 = vmatpush3.bf16.msra.mxu0 %v7034_v52  ;;  %5451 = vmatpush3.bf16.msra.mxu1 %v7034_v52  ;;  %v1705_v35 = vmax.f32 %v1701_v4, 0.0  ;;  %v1592_v36 = vmax.f32 %v1588_v13, 0.0  ;;  %v7402_v55 = vrot.slane %v7172_v7, %v6889_v5  ;;  %v7407_v27 = vrot.slane %v7172_v7, %v6928_v38 }
 0x72d   :  { %5432 = vmatprep.subr.bf16.mxu0 %v7045_v53  ;;  %5452 = vmatprep.subr.bf16.mxu1 %v7045_v53  ;;  %v1927_v47 = vmax.f32 %v1923_v32, 0.0  ;;  %v1813_v56 = vadd.f32 %v7346_v8, %v7198_v41  ;;  %v1925_v57 = vadd.f32 %v7351_v9, %v7198_v41  ;;  %v1812_v58 = vadd.f32 %v7346_v8, %v7186_v33 }
 0x72e   :  { %v1595_v48 = vpack.c.bf16 %v1593_v28, %v1592_v36  ;;  %v2034_v17 = vadd.f32 %v7402_v55, %v7162_v26  ;;  %v2035_v12 = vadd.f32 %v7402_v55, %v7170_v6  ;;  %v1924_v29 = vadd.f32 %v7351_v9, %v7186_v33 }
 0x72f   :  { %v2146_v11 = vadd.f32 %v7407_v27, %v7162_v26  ;;  %v2147_v18 = vadd.f32 %v7407_v27, %v7170_v6  ;;  %v1817_v60 = vmax.f32 %v1813_v56, 0.0  ;;  %v1929_v62 = vmax.f32 %v1925_v57, 0.0 }
 0x730   :  { %5433 = vmatpush3.bf16.msra.mxu0 %v7045_v53  ;;  %5453 = vmatpush3.bf16.msra.mxu1 %v7045_v53  ;;  %v1816_v24 = vmax.f32 %v1812_v58, 0.0  ;;  %v2036_v32 = vadd.f32 %v7402_v55, %v7186_v33  ;;  %v2148_v36 = vadd.f32 %v7407_v27, %v7186_v33 }
 0x731   :  { %5434 = vmatprep.subr.bf16.mxu0 %v7124_v20  ;;  %5454 = vmatprep.subr.bf16.mxu1 %v7124_v20  ;;  %v2151_v8 = vmax.f32 %v2147_v18, 0.0 }
 0x732   :  { %v1819_v9 = vpack.c.bf16 %v1817_v60, %v1816_v24 }
 0x734   :  { %5435 = vmatpush3.bf16.msra.mxu0 %v7124_v20  ;;  %5455 = vmatpush3.bf16.msra.mxu1 %v7124_v20 }
 0x735   :  { %5436 = vmatprep.subr.bf16.mxu0 %v7131_v21  ;;  %5456 = vmatprep.subr.bf16.mxu1 %v7131_v21 }
 0x738   :  { %5437 = vmatpush3.bf16.msra.mxu0 %v7131_v21  ;;  %5457 = vmatpush3.bf16.msra.mxu1 %v7131_v21 }
 0x739   :  { %5438 = vmatprep.subr.bf16.mxu0 %v7142_v22  ;;  %5458 = vmatprep.subr.bf16.mxu1 %v7142_v22 }
 0x73c   :  { %5439 = vmatpush3.bf16.msra.mxu0 %v7142_v22  ;;  %5459 = vmatpush3.bf16.msra.mxu1 %v7142_v22 }
 0x73d   :  { %5440 = vmatprep.subr.bf16.mxu0 %v7149_v23  ;;  %5460 = vmatprep.subr.bf16.mxu1 %v7149_v23 }
 0x740   :  { %5441 = vmatpush3.bf16.msra.mxu0 %v7149_v23  ;;  %5461 = vmatpush3.bf16.msra.mxu1 %v7149_v23 }
 0x741   :  { %5466 = vmatprep.subr.bf16.mxu0 %v7020_v49  ;;  %5486 = vmatprep.subr.bf16.mxu1 %v7020_v49 }
 0x743   :  { %5443 = vmatmul.mubr.bf16.vlgmr.msra.gmra.mrb[16].mxu0 %v1147_v40  ;;  %5463 = vmatmul.mubr.bf16.vlgmr.msra.gmra.mrb[24].mxu1 %v1259_v3  ;;  %v1814_v40 = vmax.f32 %v1810_v14, 0.0  ;;  %v1815_v3 = vmax.f32 %v1811_v30, 0.0  ;;  %v7458_v14 = vrot.slane %v7172_v7, %v6941_v37  ;;  %v7463_v30 = vrot.slane %v7172_v7, %v6944_v39 }
 0x744   :  { %5467 = vmatpush3.bf16.msra.mxu0 %v7020_v49  ;;  %5482 = vmatprep.mubr.bf16.mxu0 %v1370_v43  ;;  %v1704_v43 = vmax.f32 %v1700_v19, 0.0  ;;  %v2037_v19 = vadd.f32 %v7402_v55, %v7198_v41 }
 0x745   :  { %5487 = vmatpush3.bf16.msra.mxu1 %v7020_v49  ;;  %5502 = vmatprep.mubr.bf16.mxu1 %v1482_v44  ;;  %v1926_v44 = vmax.f32 %v1922_v31, 0.0  ;;  %v1818_v51 = vpack.c.bf16 %v1815_v3, %v1814_v40  ;;  %v2149_v31 = vadd.f32 %v7407_v27, %v7198_v41  ;;  %v2258_v28 = vadd.f32 %v7458_v14, %v7162_v26 }
 0x746   :  { %5468 = vmatprep.subr.bf16.mxu0 %v7025_v50  ;;  %5488 = vmatprep.subr.bf16.mxu1 %v7025_v50  ;;  %v1707_v15 = vpack.c.bf16 %v1705_v35, %v1704_v43  ;;  %v2259_v35 = vadd.f32 %v7458_v14, %v7170_v6  ;;  %v2370_v40 = vadd.f32 %v7463_v30, %v7162_v26  ;;  %v2041_v43 = vmax.f32 %v2037_v19, 0.0 }
 0x747   :  { %v1930_v54 = vpack.c.bf16 %v1927_v47, %v1926_v44  ;;  %v2371_v3 = vadd.f32 %v7463_v30, %v7170_v6  ;;  %v2153_v44 = vmax.f32 %v2149_v31, 0.0  ;;  %v2040_v47 = vmax.f32 %v2036_v32, 0.0 }
 0x748   :  { %5469 = vmatpush3.bf16.msra.mxu0 %v7025_v50  ;;  %v2260_v18 = vadd.f32 %v7458_v14, %v7186_v33 }
 0x749   :  { %5489 = vmatpush3.bf16.msra.mxu1 %v7025_v50  ;;  %5470 = vmatprep.subr.bf16.mxu0 %v7034_v52  ;;  %v2375_v55 = vmax.f32 %v2371_v3, 0.0  ;;  %v2043_v27 = vpack.c.bf16 %v2041_v43, %v2040_v47 }
 0x74a   :  { %5490 = vmatprep.subr.bf16.mxu1 %v7034_v52 }
 0x74c   :  { %5471 = vmatpush3.bf16.msra.mxu0 %v7034_v52 }
 0x74d   :  { %5491 = vmatpush3.bf16.msra.mxu1 %v7034_v52  ;;  %5472 = vmatprep.subr.bf16.mxu0 %v7045_v53 }
 0x74e   :  { %5492 = vmatprep.subr.bf16.mxu1 %v7045_v53 }
 0x750   :  { %5473 = vmatpush3.bf16.msra.mxu0 %v7045_v53 }
 0x751   :  { %5493 = vmatpush3.bf16.msra.mxu1 %v7045_v53  ;;  %5474 = vmatprep.subr.bf16.mxu0 %v7124_v20 }
 0x752   :  { %5494 = vmatprep.subr.bf16.mxu1 %v7124_v20 }
 0x754   :  { %5475 = vmatpush3.bf16.msra.mxu0 %v7124_v20 }
 0x755   :  { %5495 = vmatpush3.bf16.msra.mxu1 %v7124_v20  ;;  %5476 = vmatprep.subr.bf16.mxu0 %v7131_v21 }
 0x756   :  { %5496 = vmatprep.subr.bf16.mxu1 %v7131_v21 }
 0x758   :  { %5477 = vmatpush3.bf16.msra.mxu0 %v7131_v21 }
 0x759   :  { %5497 = vmatpush3.bf16.msra.mxu1 %v7131_v21  ;;  %5478 = vmatprep.subr.bf16.mxu0 %v7142_v22 }
 0x75a   :  { %5498 = vmatprep.subr.bf16.mxu1 %v7142_v22 }
 0x75c   :  { %5479 = vmatpush3.bf16.msra.mxu0 %v7142_v22 }
 0x75d   :  { %5499 = vmatpush3.bf16.msra.mxu1 %v7142_v22  ;;  %5480 = vmatprep.subr.bf16.mxu0 %v7149_v23 }
 0x75e   :  { %5500 = vmatprep.subr.bf16.mxu1 %v7149_v23 }
 0x760   :  { %5481 = vmatpush3.bf16.msra.mxu0 %v7149_v23 }
 0x761   :  { %5501 = vmatpush3.bf16.msra.mxu1 %v7149_v23  ;;  %5506 = vmatprep.subr.bf16.mxu0 %v7020_v49 }
 0x762   :  { %5526 = vmatprep.subr.bf16.mxu1 %v7020_v49 }
 0x763   :  { %5483 = vmatmul.mubr.bf16.vlgmr.msra.gmra.mrb[20].mxu0 %v1371_v25  ;;  %v2038_v25 = vmax.f32 %v2034_v17, 0.0  ;;  %v2481_v17 = vrot.slane %v7172_v7, %v7279_v42 }
 0x764   :  { %5503 = vmatmul.mubr.bf16.vlgmr.msra.gmra.mrb[28].mxu1 %v1483_v63  ;;  %5507 = vmatpush3.bf16.msra.mxu0 %v7020_v49  ;;  %v2039_v63 = vmax.f32 %v2035_v12, 0.0  ;;  %v7517_v12 = vrot.slane %v7172_v7, %v7283_v46 }
 0x765   :  { %5522 = vmatprep.mubr.bf16.mxu0 %v1594_v0  ;;  %5527 = vmatpush3.bf16.msra.mxu1 %v7020_v49  ;;  %v1928_v0 = vmax.f32 %v1924_v29, 0.0  ;;  %v2261_v29 = vadd.f32 %v7458_v14, %v7198_v41  ;;  %v2482_v60 = vadd.f32 %v2481_v17, %v7162_v26  ;;  %v2483_v7 = vadd.f32 %v2481_v17, %v7170_v6 }
 0x766   :  { %5542 = vmatprep.mubr.bf16.mxu1 %v1706_v1  ;;  %5508 = vmatprep.subr.bf16.mxu0 %v7025_v50  ;;  %v2150_v1 = vmax.f32 %v2146_v11, 0.0  ;;  %v2042_v4 = vpack.c.bf16 %v2039_v63, %v2038_v25  ;;  %v2373_v11 = vadd.f32 %v7463_v30, %v7198_v41  ;;  %v2594_v24 = vadd.f32 %v7517_v12, %v7162_v26 }
 0x767   :  { %5528 = vmatprep.subr.bf16.mxu1 %v7025_v50  ;;  %v1931_v10 = vpack.c.bf16 %v1929_v62, %v1928_v0  ;;  %v2372_v62 = vadd.f32 %v7463_v30, %v7186_v33  ;;  %v2595_v25 = vadd.f32 %v7517_v12, %v7170_v6  ;;  %v2265_v63 = vmax.f32 %v2261_v29, 0.0 }
 0x768   :  { %5509 = vmatpush3.bf16.msra.mxu0 %v7025_v50  ;;  %v2154_v13 = vpack.c.bf16 %v2151_v8, %v2150_v1  ;;  %v2377_v0 = vmax.f32 %v2373_v11, 0.0  ;;  %v2264_v1 = vmax.f32 %v2260_v18, 0.0  ;;  %v2486_v8 = vmax.f32 %v2482_v60, 0.0 }
 0x769   :  { %5529 = vmatpush3.bf16.msra.mxu1 %v7025_v50  ;;  %5510 = vmatprep.subr.bf16.mxu0 %v7034_v52  ;;  %v2484_v32 = vadd.f32 %v2481_v17, %v7186_v33  ;;  %v2596_v3 = vadd.f32 %v7517_v12, %v7186_v33 }
 0x76a   :  { %5530 = vmatprep.subr.bf16.mxu1 %v7034_v52  ;;  %v2267_v14 = vpack.c.bf16 %v2265_v63, %v2264_v1 }
 0x76c   :  { %5511 = vmatpush3.bf16.msra.mxu0 %v7034_v52 }
 0x76d   :  { %5531 = vmatpush3.bf16.msra.mxu1 %v7034_v52  ;;  %5512 = vmatprep.subr.bf16.mxu0 %v7045_v53 }
 0x76e   :  { %5532 = vmatprep.subr.bf16.mxu1 %v7045_v53 }
 0x770   :  { %5513 = vmatpush3.bf16.msra.mxu0 %v7045_v53 }
 0x771   :  { %5533 = vmatpush3.bf16.msra.mxu1 %v7045_v53  ;;  %5514 = vmatprep.subr.bf16.mxu0 %v7124_v20 }
 0x772   :  { %5534 = vmatprep.subr.bf16.mxu1 %v7124_v20 }
 0x774   :  { %5515 = vmatpush3.bf16.msra.mxu0 %v7124_v20 }
 0x775   :  { %5535 = vmatpush3.bf16.msra.mxu1 %v7124_v20  ;;  %5516 = vmatprep.subr.bf16.mxu0 %v7131_v21 }
 0x776   :  { %5536 = vmatprep.subr.bf16.mxu1 %v7131_v21 }
 0x778   :  { %5517 = vmatpush3.bf16.msra.mxu0 %v7131_v21 }
 0x779   :  { %5537 = vmatpush3.bf16.msra.mxu1 %v7131_v21  ;;  %5518 = vmatprep.subr.bf16.mxu0 %v7142_v22 }
 0x77a   :  { %5538 = vmatprep.subr.bf16.mxu1 %v7142_v22 }
 0x77c   :  { %5519 = vmatpush3.bf16.msra.mxu0 %v7142_v22 }
 0x77d   :  { %5539 = vmatpush3.bf16.msra.mxu1 %v7142_v22  ;;  %5520 = vmatprep.subr.bf16.mxu0 %v7149_v23 }
 0x77e   :  { %5540 = vmatprep.subr.bf16.mxu1 %v7149_v23 }
 0x780   :  { %5521 = vmatpush3.bf16.msra.mxu0 %v7149_v23 }
 0x781   :  { %5541 = vmatpush3.bf16.msra.mxu1 %v7149_v23  ;;  %5546 = vmatprep.subr.bf16.mxu0 %v7020_v49 }
 0x782   :  { %5566 = vmatprep.subr.bf16.mxu1 %v7020_v49 }
 0x783   :  { %5523 = vmatmul.mubr.bf16.vlgmr.msra.gmra.mrb[24].mxu0 %v1595_v48  ;;  %v2262_v48 = vmax.f32 %v2258_v28, 0.0 }
 0x784   :  { %5543 = vmatmul.mubr.bf16.vlgmr.msra.gmra.mrb[32].mxu1 %v1707_v15  ;;  %5547 = vmatpush3.bf16.msra.mxu0 %v7020_v49  ;;  %v2263_v15 = vmax.f32 %v2259_v35, 0.0 }
 0x785   :  { %5562 = vmatprep.mubr.bf16.mxu0 %v1818_v51  ;;  %5567 = vmatpush3.bf16.msra.mxu1 %v7020_v49  ;;  %v2152_v51 = vmax.f32 %v2148_v36, 0.0 }
 0x786   :  { %5582 = vmatprep.mubr.bf16.mxu1 %v1930_v54  ;;  %5548 = vmatprep.subr.bf16.mxu0 %v7025_v50  ;;  %v2374_v54 = vmax.f32 %v2370_v40, 0.0  ;;  %v2266_v57 = vpack.c.bf16 %v2263_v15, %v2262_v48  ;;  %v2597_v15 = vadd.f32 %v7517_v12, %v7198_v41 }
 0x787   :  { %5568 = vmatprep.subr.bf16.mxu1 %v7025_v50  ;;  %v2155_v56 = vpack.c.bf16 %v2153_v44, %v2152_v51  ;;  %v7583_v51 = vrot.slane %v7188_v34, %v6886_v2 }
 0x788   :  { %5549 = vmatpush3.bf16.msra.mxu0 %v7025_v50  ;;  %v2378_v58 = vpack.c.bf16 %v2375_v55, %v2374_v54  ;;  %v2601_v1 = vmax.f32 %v2597_v15, 0.0 }
 0x789   :  { %5569 = vmatpush3.bf16.msra.mxu1 %v7025_v50  ;;  %5550 = vmatprep.subr.bf16.mxu0 %v7034_v52 }
 0x78a   :  { %5570 = vmatprep.subr.bf16.mxu1 %v7034_v52 }
 0x78c   :  { %5551 = vmatpush3.bf16.msra.mxu0 %v7034_v52 }
 0x78d   :  { %5571 = vmatpush3.bf16.msra.mxu1 %v7034_v52  ;;  %5552 = vmatprep.subr.bf16.mxu0 %v7045_v53 }
 0x78e   :  { %5572 = vmatprep.subr.bf16.mxu1 %v7045_v53 }
 0x790   :  { %5553 = vmatpush3.bf16.msra.mxu0 %v7045_v53 }
 0x791   :  { %5573 = vmatpush3.bf16.msra.mxu1 %v7045_v53  ;;  %5554 = vmatprep.subr.bf16.mxu0 %v7124_v20 }
 0x792   :  { %5574 = vmatprep.subr.bf16.mxu1 %v7124_v20 }
 0x794   :  { %5555 = vmatpush3.bf16.msra.mxu0 %v7124_v20 }
 0x795   :  { %5575 = vmatpush3.bf16.msra.mxu1 %v7124_v20  ;;  %5556 = vmatprep.subr.bf16.mxu0 %v7131_v21 }
 0x796   :  { %5576 = vmatprep.subr.bf16.mxu1 %v7131_v21 }
 0x798   :  { %5557 = vmatpush3.bf16.msra.mxu0 %v7131_v21 }
 0x799   :  { %5577 = vmatpush3.bf16.msra.mxu1 %v7131_v21  ;;  %5558 = vmatprep.subr.bf16.mxu0 %v7142_v22 }
 0x79a   :  { %5578 = vmatprep.subr.bf16.mxu1 %v7142_v22 }
 0x79c   :  { %5559 = vmatpush3.bf16.msra.mxu0 %v7142_v22 }
 0x79d   :  { %5579 = vmatpush3.bf16.msra.mxu1 %v7142_v22  ;;  %5560 = vmatprep.subr.bf16.mxu0 %v7149_v23 }
 0x79e   :  { %5580 = vmatprep.subr.bf16.mxu1 %v7149_v23 }
 0x7a0   :  { %5561 = vmatpush3.bf16.msra.mxu0 %v7149_v23 }
 0x7a1   :  { %5581 = vmatpush3.bf16.msra.mxu1 %v7149_v23  ;;  %5586 = vmatprep.subr.bf16.mxu0 %v7020_v49 }
 0x7a2   :  { %5606 = vmatprep.subr.bf16.mxu1 %v7020_v49 }
 0x7a3   :  { %5563 = vmatmul.mubr.bf16.vlgmr.msra.gmra.mrb[28].mxu0 %v1819_v9  ;;  %v2487_v9 = vmax.f32 %v2483_v7, 0.0 }
 0x7a4   :  { %5583 = vmatmul.mubr.bf16.vlgmr.msra.gmra.mrb[36].mxu1 %v1931_v10  ;;  %5587 = vmatpush3.bf16.msra.mxu0 %v7020_v49  ;;  %v2376_v10 = vmax.f32 %v2372_v62, 0.0  ;;  %v2818_v62 = vadd.f32 %v7583_v51, %v7162_v26 }
 0x7a5   :  { %5602 = vmatprep.mubr.bf16.mxu0 %v2042_v4  ;;  %5607 = vmatpush3.bf16.msra.mxu1 %v7020_v49  ;;  %v2598_v4 = vmax.f32 %v2594_v24, 0.0  ;;  %v2490_v19 = vpack.c.bf16 %v2487_v9, %v2486_v8  ;;  %v2819_v24 = vadd.f32 %v7583_v51, %v7170_v6  ;;  %v2488_v8 = vmax.f32 %v2484_v32, 0.0 }
 0x7a6   :  { %5622 = vmatprep.mubr.bf16.mxu1 %v2154_v13  ;;  %5588 = vmatprep.subr.bf16.mxu0 %v7025_v50  ;;  %v2599_v13 = vmax.f32 %v2595_v25, 0.0  ;;  %v2379_v30 = vpack.c.bf16 %v2377_v0, %v2376_v10 }
 0x7a7   :  { %5608 = vmatprep.subr.bf16.mxu1 %v7025_v50 }
 0x7a8   :  { %5589 = vmatpush3.bf16.msra.mxu0 %v7025_v50  ;;  %v2602_v31 = vpack.c.bf16 %v2599_v13, %v2598_v4  ;;  %v2600_v4 = vmax.f32 %v2596_v3, 0.0  ;;  %v2822_v13 = vmax.f32 %v2818_v62, 0.0 }
 0x7a9   :  { %5609 = vmatpush3.bf16.msra.mxu1 %v7025_v50  ;;  %5590 = vmatprep.subr.bf16.mxu0 %v7034_v52 }
 0x7aa   :  { %5610 = vmatprep.subr.bf16.mxu1 %v7034_v52 }
 0x7ac   :  { %5591 = vmatpush3.bf16.msra.mxu0 %v7034_v52 }
 0x7ad   :  { %5611 = vmatpush3.bf16.msra.mxu1 %v7034_v52  ;;  %5592 = vmatprep.subr.bf16.mxu0 %v7045_v53 }
 0x7ae   :  { %5612 = vmatprep.subr.bf16.mxu1 %v7045_v53 }
 0x7b0   :  { %5593 = vmatpush3.bf16.msra.mxu0 %v7045_v53 }
 0x7b1   :  { %5613 = vmatpush3.bf16.msra.mxu1 %v7045_v53  ;;  %5594 = vmatprep.subr.bf16.mxu0 %v7124_v20 }
 0x7b2   :  { %5614 = vmatprep.subr.bf16.mxu1 %v7124_v20 }
 0x7b4   :  { %5595 = vmatpush3.bf16.msra.mxu0 %v7124_v20 }
 0x7b5   :  { %5615 = vmatpush3.bf16.msra.mxu1 %v7124_v20  ;;  %5596 = vmatprep.subr.bf16.mxu0 %v7131_v21 }
 0x7b6   :  { %5616 = vmatprep.subr.bf16.mxu1 %v7131_v21 }
 0x7b8   :  { %5597 = vmatpush3.bf16.msra.mxu0 %v7131_v21 }
 0x7b9   :  { %5617 = vmatpush3.bf16.msra.mxu1 %v7131_v21  ;;  %5598 = vmatprep.subr.bf16.mxu0 %v7142_v22 }
 0x7ba   :  { %5618 = vmatprep.subr.bf16.mxu1 %v7142_v22 }
 0x7bc   :  { %5599 = vmatpush3.bf16.msra.mxu0 %v7142_v22 }
 0x7bd   :  { %5619 = vmatpush3.bf16.msra.mxu1 %v7142_v22  ;;  %5600 = vmatprep.subr.bf16.mxu0 %v7149_v23 }
 0x7be   :  { %5620 = vmatprep.subr.bf16.mxu1 %v7149_v23 }
 0x7c0   :  { %5601 = vmatpush3.bf16.msra.mxu0 %v7149_v23 }
 0x7c1   :  { %5621 = vmatpush3.bf16.msra.mxu1 %v7149_v23  ;;  %5626 = vmatprep.subr.bf16.mxu0 %v7020_v49 }
 0x7c2   :  { %5646 = vmatprep.subr.bf16.mxu1 %v7020_v49 }
 0x7c3   :  { %5603 = vmatmul.mubr.bf16.vlgmr.msra.gmra.mrb[32].mxu0 %v2043_v27 }
 0x7c4   :  { %5623 = vmatmul.mubr.bf16.vlgmr.msra.gmra.mrb[40].mxu1 %v2155_v56  ;;  %5627 = vmatpush3.bf16.msra.mxu0 %v7020_v49 }
 0x7c5   :  { %5642 = vmatprep.mubr.bf16.mxu0 %v2266_v57  ;;  %5647 = vmatpush3.bf16.msra.mxu1 %v7020_v49 }
 0x7c6   :  { %5662 = vmatprep.mubr.bf16.mxu1 %v2378_v58  ;;  %5628 = vmatprep.subr.bf16.mxu0 %v7025_v50 }
 0x7c7   :  { %5648 = vmatprep.subr.bf16.mxu1 %v7025_v50 }
 0x7c8   :  { %5629 = vmatpush3.bf16.msra.mxu0 %v7025_v50 }
 0x7c9   :  { %5649 = vmatpush3.bf16.msra.mxu1 %v7025_v50  ;;  %5630 = vmatprep.subr.bf16.mxu0 %v7034_v52 }
 0x7ca   :  { %5650 = vmatprep.subr.bf16.mxu1 %v7034_v52 }
 0x7cc   :  { %5631 = vmatpush3.bf16.msra.mxu0 %v7034_v52 }
 0x7cd   :  { %5651 = vmatpush3.bf16.msra.mxu1 %v7034_v52  ;;  %5632 = vmatprep.subr.bf16.mxu0 %v7045_v53 }
 0x7ce   :  { %5652 = vmatprep.subr.bf16.mxu1 %v7045_v53 }
 0x7d0   :  { %5633 = vmatpush3.bf16.msra.mxu0 %v7045_v53 }
 0x7d1   :  { %5653 = vmatpush3.bf16.msra.mxu1 %v7045_v53  ;;  %5634 = vmatprep.subr.bf16.mxu0 %v7124_v20 }
 0x7d2   :  { %5654 = vmatprep.subr.bf16.mxu1 %v7124_v20 }
 0x7d4   :  { %5635 = vmatpush3.bf16.msra.mxu0 %v7124_v20 }
 0x7d5   :  { %5655 = vmatpush3.bf16.msra.mxu1 %v7124_v20  ;;  %5636 = vmatprep.subr.bf16.mxu0 %v7131_v21 }
 0x7d6   :  { %5656 = vmatprep.subr.bf16.mxu1 %v7131_v21 }
 0x7d8   :  { %5637 = vmatpush3.bf16.msra.mxu0 %v7131_v21 }
 0x7d9   :  { %5657 = vmatpush3.bf16.msra.mxu1 %v7131_v21  ;;  %5638 = vmatprep.subr.bf16.mxu0 %v7142_v22 }
 0x7da   :  { %5658 = vmatprep.subr.bf16.mxu1 %v7142_v22 }
 0x7dc   :  { %5639 = vmatpush3.bf16.msra.mxu0 %v7142_v22 }
 0x7dd   :  { %5659 = vmatpush3.bf16.msra.mxu1 %v7142_v22  ;;  %5640 = vmatprep.subr.bf16.mxu0 %v7149_v23 }
 0x7de   :  { %5660 = vmatprep.subr.bf16.mxu1 %v7149_v23 }
 0x7e0   :  { %5641 = vmatpush3.bf16.msra.mxu0 %v7149_v23 }
 0x7e1   :  { %5661 = vmatpush3.bf16.msra.mxu1 %v7149_v23  ;;  %5666 = vmatprep.subr.bf16.mxu0 %v7020_v49 }
 0x7e2   :  { %5686 = vmatprep.subr.bf16.mxu1 %v7020_v49 }
 0x7e3   :  { %5643 = vmatmul.mubr.bf16.vlgmr.msra.gmra.mrb[36].mxu0 %v2267_v14  ;;  %v2823_v14 = vmax.f32 %v2819_v24, 0.0 }
 0x7e4   :  { %5663 = vmatmul.mubr.bf16.vlgmr.msra.gmra.mrb[44].mxu1 %v2379_v30  ;;  %5667 = vmatpush3.bf16.msra.mxu0 %v7020_v49  ;;  %v7609_v30 = vld [vmem:[%s8875_s11] sm:$0xff]  }
 0x7e5   :  { %5682 = vmatprep.mubr.bf16.mxu0 %v2490_v19  ;;  %5687 = vmatpush3.bf16.msra.mxu1 %v7020_v49  ;;  %v7561_v49 = vld [vmem:[#allocation2] ss:$0 sm:$0xff]  ;;  %v2603_v19 = vpack.c.bf16 %v2601_v1, %v2600_v4  ;;  %v7684_v4 = vrot.slane %v7188_v34, %v6889_v5 }
 0x7e6   :  { %5702 = vmatprep.mubr.bf16.mxu1 %v2602_v31  ;;  %5668 = vmatprep.subr.bf16.mxu0 %v7025_v50 }
 0x7e7   :  { %5688 = vmatprep.subr.bf16.mxu1 %v7025_v50 }
 0x7e8   :  { %5669 = vmatpush3.bf16.msra.mxu0 %v7025_v50 }
 0x7e9   :  { %5689 = vmatpush3.bf16.msra.mxu1 %v7025_v50  ;;  %5670 = vmatprep.subr.bf16.mxu0 %v7034_v52 }
 0x7ea   :  { %5690 = vmatprep.subr.bf16.mxu1 %v7034_v52 }
 0x7ec   :  { %5671 = vmatpush3.bf16.msra.mxu0 %v7034_v52 }
 0x7ed   :  { %5691 = vmatpush3.bf16.msra.mxu1 %v7034_v52  ;;  %5672 = vmatprep.subr.bf16.mxu0 %v7045_v53 }
 0x7ee   :  { %5692 = vmatprep.subr.bf16.mxu1 %v7045_v53 }
 0x7f0   :  { %5673 = vmatpush3.bf16.msra.mxu0 %v7045_v53 }
 0x7f1   :  { %5693 = vmatpush3.bf16.msra.mxu1 %v7045_v53  ;;  %5674 = vmatprep.subr.bf16.mxu0 %v7124_v20  ;;  %v2485_v53 = vadd.f32 %v2481_v17, %v7198_v41 }
 0x7f2   :  { %5694 = vmatprep.subr.bf16.mxu1 %v7124_v20 }
 0x7f3   :  { %v2489_v63 = vmax.f32 %v2485_v53, 0.0  ;;  %v7618_v53 = vld [vmem:[%s8875_s11 + $0x8] sm:$0xff]  }
 0x7f4   :  { %5675 = vmatpush3.bf16.msra.mxu0 %v7124_v20 }
 0x7f5   :  { %5695 = vmatpush3.bf16.msra.mxu1 %v7124_v20  ;;  %5676 = vmatprep.subr.bf16.mxu0 %v7131_v21  ;;  %v7574_v20 = vrot.slane %v7188_v34, %v6868_v16 }
 0x7f6   :  { %v5404_v50 = vpop.f32.mrb[12].mxu0  ;;  %v5424_v52 = vpop.f32.mrb[20].mxu1  ;;  %5696 = vmatprep.subr.bf16.mxu1 %v7131_v21 }
 0x7f7   :  { %v983_v28 = vadd.f32 %v5404_v50, %v7561_v49  ;;  %v1079_v35 = vadd.f32 %v5424_v52, %v7561_v49  ;;  %v974_v36 = vpop.f32.mrb[13].mxu0  ;;  %v1070_v40 = vpop.f32.mrb[21].mxu1  ;;  %v2707_v60 = vadd.f32 %v7574_v20, %v7170_v6  ;;  %v2826_v50 = vpack.c.bf16 %v2823_v14, %v2822_v13 }
 0x7f8   :  { %v975_v43 = vadd.f32 %v7561_v49, %v974_v36  ;;  %v1071_v44 = vadd.f32 %v7561_v49, %v1070_v40  ;;  %5677 = vmatpush3.bf16.msra.mxu0 %v7131_v21  ;;  %v5405_v47 = vpop.f32.mrb[14].mxu0  ;;  %v5425_v48 = vpop.f32.mrb[22].mxu1  ;;  %v7688_v13 = vrot.slane %v7188_v34, %v6928_v38 }
 0x7f9   :  { %v4840_v54 = vmul.f32 -1.442695, %v983_v28  ;;  %v4844_v55 = vmul.f32 -1.442695, %v1079_v35  ;;  %5697 = vmatpush3.bf16.msra.mxu1 %v7131_v21  ;;  %v986_v27 = vadd.f32 %v5405_v47, %v7561_v49  ;;  %v1082_v56 = vadd.f32 %v5425_v48, %v7561_v49  ;;  %v977_v57 = vpop.f32.mrb[15].mxu0  ;;  %v1073_v58 = vpop.f32.mrb[23].mxu1  ;;  %5678 = vmatprep.subr.bf16.mxu0 %v7142_v22 }
 0x7fa   :  { %v4838_v17 = vmul.f32 -1.442695, %v975_v43  ;;  %v4842_v29 = vmul.f32 -1.442695, %v1071_v44  ;;  %v978_v12 = vadd.f32 %v7561_v49, %v977_v57  ;;  %v1074_v11 = vadd.f32 %v7561_v49, %v1073_v58  ;;  %5698 = vmatprep.subr.bf16.mxu1 %v7142_v22  ;;  %v7627_v44 = vld [vmem:[%s8875_s11 + $0x10] sm:$0xff]   ;;  %v7639_v58 = vld [vmem:[%s8875_s11 + $0x18] sm:$0xff]  }
 0x7fb   :  { %6127 = vpow2.f32 %v4840_v54  ;;  %v4841_v18 = vmul.f32 -1.442695, %v986_v27  ;;  %v2706_v21 = vadd.f32 %v7574_v20, %v7162_v26  ;;  %v4845_v7 = vmul.f32 -1.442695, %v1082_v56  ;;  %v4985_v56 = vld [vmem:[%s8891_s19 + $0x8] sm:$0xff]  }
 0x7fc   :  { %6129 = vpow2.f32 %v4844_v55  ;;  %5679 = vmatpush3.bf16.msra.mxu0 %v7142_v22  ;;  %v4839_v25 = vmul.f32 -1.442695, %v978_v12  ;;  %v4843_v0 = vmul.f32 -1.442695, %v1074_v11  ;;  %v2711_v10 = vmax.f32 %v2707_v60, 0.0  ;;  %v7653_v12 = vld [vmem:[%s8875_s11 + $0x20] sm:$0xff]  }
 0x7fd   :  { %6131 = vpow2.f32 %v4838_v17  ;;  %5699 = vmatpush3.bf16.msra.mxu1 %v7142_v22  ;;  %5680 = vmatprep.subr.bf16.mxu0 %v7149_v23  ;;  %v2710_v9 = vmax.f32 %v2706_v21, 0.0  ;;  %v2491_v22 = vpack.c.bf16 %v2489_v63, %v2488_v8  ;;  %v4978_v17 = vld [vmem:[%s8891_s19] sm:$0xff]   ;;  %s6717_s19 = smov 17  }
 0x7fe   :  { %6133 = vpow2.f32 %v4842_v29  ;;  %5700 = vmatprep.subr.bf16.mxu1 %v7149_v23  ;;  %v7646_v29 = vunpack.c.l.bf16 %v4985_v56  ;;  %v7656_v11 = vunpack.c.l.bf16 %v4978_v17 }
 0x7ff   :  { %6135 = vpow2.f32 %v4841_v18  ;;  %v2714_v31 = vpack.c.bf16 %v2711_v10, %v2710_v9  ;;  %v7676_v9 = vadd.f32 %v7574_v20, %v7186_v33  ;;  %v7680_v10 = vadd.f32 %v7574_v20, %v7198_v41 }
 0x800   :  { %6137 = vpow2.f32 %v4845_v7  ;;  %5681 = vmatpush3.bf16.msra.mxu0 %v7149_v23  ;;  %v7660_v7 = vunpack.c.h.bf16 %v4985_v56  ;;  %v7694_v20 = vunpack.c.h.bf16 %v4978_v17  ;;  %v2930_v56 = vadd.f32 %v7684_v4, %v7162_v26 }
 0x801   :  { %6139 = vpow2.f32 %v4839_v25  ;;  %5701 = vmatpush3.bf16.msra.mxu1 %v7149_v23  ;;  %5706 = vmatprep.subr.bf16.mxu0 %v7609_v30  ;;  %v7668_v25 = vld [vmem:[%s8875_s11 + $0x28] sm:$0xff]  }
 0x802   :  { %6141 = vpow2.f32 %v4843_v0  ;;  %5726 = vmatprep.subr.bf16.mxu1 %v7609_v30 }
 0x803   :  { %5683 = vmatmul.mubr.bf16.vlgmr.msra.gmra.mrb[40].mxu0 %v2491_v22 }
 0x804   :  { %5703 = vmatmul.mubr.bf16.vlgmr.msra.gmra.mrb[48].mxu1 %v2603_v19  ;;  %5707 = vmatpush3.bf16.msra.mxu0 %v7609_v30 }
 0x805   :  { %v6128_v52 = vpop.eup %6127  ;;  %5722 = vmatprep.mubr.bf16.mxu0 %v2714_v31  ;;  %5727 = vmatpush3.bf16.msra.mxu1 %v7609_v30 }
 0x806   :  { %v6130_v23 = vpop.eup %6129  ;;  %v1003_v32 = vadd.f32 1.0, %v6128_v52  ;;  %5742 = vmatprep.mubr.bf16.mxu1 %v2826_v50  ;;  %5708 = vmatprep.subr.bf16.mxu0 %v7618_v53 }
 0x807   :  { %v6132_v28 = vpop.eup %6131  ;;  %v1099_v35 = vadd.f32 1.0, %v6130_v23  ;;  %5728 = vmatprep.subr.bf16.mxu1 %v7618_v53 }
 0x808   :  { %v6134_v36 = vpop.eup %6133  ;;  %6143 = vrcp.f32 %v1003_v32  ;;  %v1001_v40 = vadd.f32 1.0, %v6132_v28  ;;  %5709 = vmatpush3.bf16.msra.mxu0 %v7618_v53 }
 0x809   :  { %v6136_v3 = vpop.eup %6135  ;;  %6145 = vrcp.f32 %v1099_v35  ;;  %v1097_v43 = vadd.f32 1.0, %v6134_v36  ;;  %5729 = vmatpush3.bf16.msra.mxu1 %v7618_v53  ;;  %5710 = vmatprep.subr.bf16.mxu0 %v7627_v44  ;;  %v2820_v36 = vadd.f32 %v7583_v51, %v7186_v33 }
 0x80a   :  { %v6138_v47 = vpop.eup %6137  ;;  %6147 = vrcp.f32 %v1001_v40  ;;  %v1004_v48 = vadd.f32 1.0, %v6136_v3  ;;  %5730 = vmatprep.subr.bf16.mxu1 %v7627_v44  ;;  %v2821_v40 = vadd.f32 %v7583_v51, %v7198_v41  ;;  %v7712_v51 = vld [vmem:[%s8875_s11 + $0x30] sm:$0xff]  }
 0x80b   :  { %v6140_v15 = vpop.eup %6139  ;;  %6149 = vrcp.f32 %v1097_v43  ;;  %v1100_v54 = vadd.f32 1.0, %v6138_v47 }
 0x80c   :  { %v6142_v55 = vpop.eup %6141  ;;  %6151 = vrcp.f32 %v1004_v48  ;;  %v1002_v27 = vadd.f32 1.0, %v6140_v15  ;;  %5711 = vmatpush3.bf16.msra.mxu0 %v7627_v44 }
 0x80d   :  { %6153 = vrcp.f32 %v1100_v54  ;;  %v1098_v57 = vadd.f32 1.0, %v6142_v55  ;;  %5731 = vmatpush3.bf16.msra.mxu1 %v7627_v44  ;;  %5712 = vmatprep.subr.bf16.mxu0 %v7639_v58 }
 0x80e   :  { %6155 = vrcp.f32 %v1002_v27  ;;  %5732 = vmatprep.subr.bf16.mxu1 %v7639_v58 }
 0x80f   :  { %6157 = vrcp.f32 %v1098_v57  ;;  %v2931_v57 = vadd.f32 %v7684_v4, %v7170_v6 }
 0x810   :  { %5713 = vmatpush3.bf16.msra.mxu0 %v7639_v58 }
 0x811   :  { %5733 = vmatpush3.bf16.msra.mxu1 %v7639_v58  ;;  %5714 = vmatprep.subr.bf16.mxu0 %v7653_v12 }
 0x812   :  { %v6144_v18 = vpop.eup %6143  ;;  %5734 = vmatprep.subr.bf16.mxu1 %v7653_v12 }
 0x813   :  { %v6146_v21 = vpop.eup %6145  ;;  %v1015_v60 = vmul.f32 %v6144_v18, %v7646_v29 }
 0x814   :  { %v6148_v62 = vpop.eup %6147  ;;  %5715 = vmatpush3.bf16.msra.mxu0 %v7653_v12  ;;  %1117 = vrot.lane.b32.xlu0 %v6146_v21, %s6702_s23 }
 0x815   :  { %v6150_v24 = vpop.eup %6149  ;;  %5735 = vmatpush3.bf16.msra.mxu1 %v7653_v12  ;;  %5716 = vmatprep.subr.bf16.mxu0 %v7668_v25  ;;  %1020 = vst.msk [vmem:[#allocation3 + $0x10] sm:$0xff] %vm1017_vm14, %v1015_v60  ;;  %v1013_v63 = vmul.f32 %v6148_v62, %v7656_v11 }
 0x816   :  { %v6152_v0 = vpop.eup %6151  ;;  %v5444_v1 = vpop.f32.mrb[16].mxu0  ;;  %5736 = vmatprep.subr.bf16.mxu1 %v7668_v25 }
 0x817   :  { %v5464_v8 = vpop.f32.mrb[24].mxu1  ;;  %v6154_v14 = vpop.eup %6153  ;;  %v1191_v22 = vadd.f32 %v5444_v1, %v7561_v49  ;;  %v1016_v52 = vmul.f32 %v6152_v0, %v7660_v7  ;;  %1018 = vst.msk [vmem:[#allocation3] sm:$0xff] %vm1017_vm14, %v1013_v63  ;;  %v3043_v63 = vadd.f32 %v7688_v13, %v7170_v6  ;;  %v7732_v0 = vld [vmem:[%s8875_s11 + $0x38] sm:$0xff]   ;;  %v2712_v1 = vmax.f32 %v7676_v9, 0.0 }
 0x818   :  { %v1303_v19 = vadd.f32 %v5464_v8, %v7561_v49  ;;  %v1182_v31 = vpop.f32.mrb[17].mxu0  ;;  %v1294_v50 = vpop.f32.mrb[25].mxu1  ;;  %1119 = vrot.lane.b32.xlu1 %v6154_v14, %s6702_s23  ;;  %5717 = vmatpush3.bf16.msra.mxu0 %v7668_v25  ;;  %v2713_v8 = vmax.f32 %v7680_v10, 0.0  ;;  %v2824_v14 = vmax.f32 %v2820_v36, 0.0 }
 0x819   :  { %v6156_v23 = vpop.eup %6155  ;;  %v1183_v32 = vadd.f32 %v7561_v49, %v1182_v31  ;;  %v5445_v28 = vpop.f32.mrb[18].mxu0  ;;  %v4848_v3 = vmul.f32 -1.442695, %v1191_v22  ;;  %5737 = vmatpush3.bf16.msra.mxu1 %v7668_v25  ;;  %1113 = vrot.lane.b32.xlu0 %v6150_v24, %s6702_s23  ;;  %1021 = vst.msk [vmem:[#allocation3 + $0x18] sm:$0xff] %vm1017_vm14, %v1016_v52  ;;  %v1295_v27 = vadd.f32 %v7561_v49, %v1294_v50  ;;  %v2934_v31 = vmax.f32 %v2930_v56, 0.0 }
 0x81a   :  { %v5465_v35 = vpop.f32.mrb[26].mxu1  ;;  %v4852_v43 = vmul.f32 -1.442695, %v1303_v19  ;;  %v1194_v47 = vadd.f32 %v5445_v28, %v7561_v49  ;;  %v1185_v15 = vpop.f32.mrb[19].mxu0  ;;  %5718 = vmatprep.subr.bf16.mxu0 %v7712_v51  ;;  %5738 = vmatprep.subr.bf16.mxu1 %v7712_v51  ;;  %v1014_v60 = vmul.f32 %v6156_v23, %v7694_v20  ;;  %v3042_v24 = vadd.f32 %v7688_v13, %v7162_v26 }
 0x81b   :  { %v1306_v48 = vadd.f32 %v5465_v35, %v7561_v49  ;;  %v1297_v54 = vpop.f32.mrb[27].mxu1  ;;  %v4846_v55 = vmul.f32 -1.442695, %v1183_v32  ;;  %v6158_v17 = vpop.eup %6157  ;;  %6159 = vpow2.f32 %v4848_v3  ;;  %v1186_v21 = vadd.f32 %v7561_v49, %v1185_v15 }
 0x81c   :  { %v4849_v18 = vmul.f32 -1.442695, %v1194_v47  ;;  %6161 = vpow2.f32 %v4852_v43  ;;  %1115 = vrot.lane.b32.xlu1 %v6158_v17, %s6702_s23  ;;  %5719 = vmatpush3.bf16.msra.mxu0 %v7712_v51  ;;  %1019 = vst.msk [vmem:[#allocation3 + $0x8] sm:$0xff] %vm1017_vm14, %v1014_v60  ;;  %v4850_v22 = vmul.f32 -1.442695, %v1295_v27  ;;  %v2825_v19 = vmax.f32 %v2821_v40, 0.0 }
 0x81d   :  { %v4853_v62 = vmul.f32 -1.442695, %v1306_v48  ;;  %5739 = vmatpush3.bf16.msra.mxu1 %v7712_v51  ;;  %5720 = vmatprep.subr.bf16.mxu0 %v7732_v0  ;;  %6163 = vpow2.f32 %v4846_v55  ;;  %v4847_v50 = vmul.f32 -1.442695, %v1186_v21  ;;  %v1298_v52 = vadd.f32 %v7561_v49, %v1297_v54 }
 0x81e   :  { %5740 = vmatprep.subr.bf16.mxu1 %v7732_v0  ;;  %6165 = vpow2.f32 %v4849_v18  ;;  %v2935_v23 = vmax.f32 %v2931_v57, 0.0  ;;  %v3046_v9 = vmax.f32 %v3042_v24, 0.0  ;;  %v3047_v32 = vmax.f32 %v3043_v63, 0.0 }
 0x81f   :  { %6167 = vpow2.f32 %v4853_v62  ;;  %v2715_v10 = vpack.c.bf16 %v2713_v8, %v2712_v1  ;;  %v2827_v28 = vpack.c.bf16 %v2825_v19, %v2824_v14  ;;  %v4851_v35 = vmul.f32 -1.442695, %v1298_v52 }
 0x820   :  { %5721 = vmatpush3.bf16.msra.mxu0 %v7732_v0  ;;  %6169 = vpow2.f32 %v4850_v22  ;;  %v2938_v36 = vpack.c.bf16 %v2935_v23, %v2934_v31  ;;  %v3050_v40 = vpack.c.bf16 %v3047_v32, %v3046_v9  ;;  %v7766_v8 = vrot.slane %v7188_v34, %v6941_v37 }
 0x821   :  { %5741 = vmatpush3.bf16.msra.mxu1 %v7732_v0  ;;  %5746 = vmatprep.subr.bf16.mxu0 %v7609_v30  ;;  %6171 = vpow2.f32 %v4847_v50  ;;  %v7771_v19 = vadd.f32 %v7684_v4, %v7186_v33  ;;  %v2933_v23 = vadd.f32 %v7684_v4, %v7198_v41  ;;  %v7780_v9 = vadd.f32 %v7688_v13, %v7186_v33 }
 0x822   :  { %5766 = vmatprep.subr.bf16.mxu1 %v7609_v30  ;;  %6173 = vpow2.f32 %v4851_v35  ;;  %vm2585_vm14 = vcmask 121968  }
 0x823   :  { %5723 = vmatmul.mubr.bf16.vlgmr.msra.gmra.mrb[44].mxu0 %v2715_v10 }
 0x824   :  { %5743 = vmatmul.mubr.bf16.vlgmr.msra.gmra.mrb[52].mxu1 %v2827_v28  ;;  %5747 = vmatpush3.bf16.msra.mxu0 %v7609_v30 }
 0x825   :  { %v6160_v3 = vpop.eup %6159  ;;  %5762 = vmatprep.mubr.bf16.mxu0 %v2938_v36  ;;  %5767 = vmatpush3.bf16.msra.mxu1 %v7609_v30  ;;  %v7787_v36 = vrot.slane %v7188_v34, %v6944_v39 }
 0x826   :  { %v6162_v43 = vpop.eup %6161  ;;  %v1211_v47 = vadd.f32 1.0, %v6160_v3  ;;  %5782 = vmatprep.mubr.bf16.mxu1 %v3050_v40  ;;  %5748 = vmatprep.subr.bf16.mxu0 %v7618_v53 }
 0x827   :  { %v1323_v48 = vadd.f32 1.0, %v6162_v43  ;;  %5768 = vmatprep.subr.bf16.mxu1 %v7618_v53  ;;  %v6164_v15 = vpop.eup %6163 }
 0x828   :  { %6175 = vrcp.f32 %v1211_v47  ;;  %5749 = vmatpush3.bf16.msra.mxu0 %v7618_v53  ;;  %v6166_v54 = vpop.eup %6165  ;;  %v1209_v56 = vadd.f32 1.0, %v6164_v15  ;;  %v3154_v15 = vadd.f32 %v7766_v8, %v7162_v26 }
 0x829   :  { %5769 = vmatpush3.bf16.msra.mxu1 %v7618_v53  ;;  %5750 = vmatprep.subr.bf16.mxu0 %v7627_v44  ;;  %v6168_v55 = vpop.eup %6167  ;;  %v1212_v27 = vadd.f32 1.0, %v6166_v54  ;;  %6177 = vrcp.f32 %v1323_v48  ;;  %v3045_v48 = vadd.f32 %v7688_v13, %v7198_v41  ;;  %v3155_v13 = vadd.f32 %v7766_v8, %v7170_v6 }
 0x82a   :  { %5770 = vmatprep.subr.bf16.mxu1 %v7627_v44  ;;  %v6170_v57 = vpop.eup %6169  ;;  %v1324_v17 = vadd.f32 1.0, %v6168_v55 }
 0x82b   :  { %6179 = vrcp.f32 %v1212_v27  ;;  %v6172_v18 = vpop.eup %6171  ;;  %v1321_v21 = vadd.f32 1.0, %v6170_v57 }
 0x82c   :  { %5751 = vmatpush3.bf16.msra.mxu0 %v7627_v44  ;;  %6181 = vrcp.f32 %v1209_v56  ;;  %v1210_v60 = vadd.f32 1.0, %v6172_v18  ;;  %v6174_v62 = vpop.eup %6173 }
 0x82d   :  { %5771 = vmatpush3.bf16.msra.mxu1 %v7627_v44  ;;  %5752 = vmatprep.subr.bf16.mxu0 %v7639_v58  ;;  %6183 = vrcp.f32 %v1324_v17  ;;  %v1322_v63 = vadd.f32 1.0, %v6174_v62  ;;  %v3266_v62 = vadd.f32 %v7787_v36, %v7162_v26 }
 0x82e   :  { %5772 = vmatprep.subr.bf16.mxu1 %v7639_v58  ;;  %6185 = vrcp.f32 %v1321_v21 }
 0x82f   :  { %6187 = vrcp.f32 %v1210_v60 }
 0x830   :  { %5753 = vmatpush3.bf16.msra.mxu0 %v7639_v58  ;;  %6189 = vrcp.f32 %v1322_v63 }
 0x831   :  { %5773 = vmatpush3.bf16.msra.mxu1 %v7639_v58  ;;  %5754 = vmatprep.subr.bf16.mxu0 %v7653_v12 }
 0x832   :  { %v6176_v24 = vpop.eup %6175  ;;  %5774 = vmatprep.subr.bf16.mxu1 %v7653_v12 }
 0x833   :  { %1229 = vrot.lane.b32.xlu0 %v6176_v24, %s6703_s10  ;;  %v6178_v1 = vpop.eup %6177  ;;  %v3267_v24 = vadd.f32 %v7787_v36, %v7170_v6 }
 0x834   :  { %5755 = vmatpush3.bf16.msra.mxu0 %v7653_v12 }
 0x835   :  { %5775 = vmatpush3.bf16.msra.mxu1 %v7653_v12  ;;  %5756 = vmatprep.subr.bf16.mxu0 %v7668_v25  ;;  %v6180_v14 = vpop.eup %6179 }
 0x836   :  { %v5484_v22 = vpop.f32.mrb[20].mxu0  ;;  %5776 = vmatprep.subr.bf16.mxu1 %v7668_v25  ;;  %1231 = vrot.lane.b32.xlu1 %v6180_v14, %s6703_s10  ;;  %v6182_v40 = vpop.eup %6181  ;;  %v2937_v14 = vmax.f32 %v2933_v23, 0.0  ;;  %v3271_v23 = vmax.f32 %v3267_v24, 0.0 }
 0x837   :  { %v1415_v31 = vadd.f32 %v5484_v22, %v7561_v49  ;;  %v5504_v50 = vpop.f32.mrb[28].mxu1  ;;  %v1406_v52 = vpop.f32.mrb[21].mxu0  ;;  %1341 = vrot.lane.b32.xlu0 %v6178_v1, %s6704_s9  ;;  %v2936_v1 = vmax.f32 %v7771_v19, 0.0  ;;  %v3048_v22 = vmax.f32 %v7780_v9, 0.0  ;;  %v3270_v19 = vmax.f32 %v3266_v62, 0.0 }
 0x838   :  { %v1527_v32 = vadd.f32 %v5504_v50, %v7561_v49  ;;  %v1407_v10 = vadd.f32 %v7561_v49, %v1406_v52  ;;  %v1518_v28 = vpop.f32.mrb[29].mxu1  ;;  %v5485_v35 = vpop.f32.mrb[22].mxu0  ;;  %5757 = vmatpush3.bf16.msra.mxu0 %v7668_v25  ;;  %v3049_v52 = vmax.f32 %v3045_v48, 0.0 }
 0x839   :  { %v4856_v3 = vmul.f32 -1.442695, %v1415_v31  ;;  %v1418_v4 = vadd.f32 %v5485_v35, %v7561_v49  ;;  %v5505_v43 = vpop.f32.mrb[30].mxu1  ;;  %5777 = vmatpush3.bf16.msra.mxu1 %v7668_v25  ;;  %v1409_v47 = vpop.f32.mrb[23].mxu0  ;;  %5758 = vmatprep.subr.bf16.mxu0 %v7712_v51  ;;  %v1519_v56 = vadd.f32 %v7561_v49, %v1518_v28  ;;  %v3159_v35 = vmax.f32 %v3155_v13, 0.0 }
 0x83a   :  { %v6184_v54 = vpop.eup %6183  ;;  %v4860_v55 = vmul.f32 -1.442695, %v1527_v32  ;;  %v4854_v27 = vmul.f32 -1.442695, %v1407_v10  ;;  %v1530_v57 = vadd.f32 %v5505_v43, %v7561_v49  ;;  %v1521_v17 = vpop.f32.mrb[31].mxu1  ;;  %5778 = vmatprep.subr.bf16.mxu1 %v7712_v51  ;;  %v1410_v21 = vadd.f32 %v7561_v49, %v1409_v47 }
 0x83b   :  { %6191 = vpow2.f32 %v4856_v3  ;;  %v4857_v18 = vmul.f32 -1.442695, %v1418_v4  ;;  %1343 = vrot.lane.b32.xlu1 %v6184_v54, %s6704_s9  ;;  %1225 = vrot.lane.b32.xlu0 %v6182_v40, %s6703_s10  ;;  %v6186_v63 = vpop.eup %6185  ;;  %v4858_v50 = vmul.f32 -1.442695, %v1519_v56  ;;  %v3158_v32 = vmax.f32 %v3154_v15, 0.0 }
 0x83c   :  { %6193 = vpow2.f32 %v4860_v55  ;;  %v4861_v60 = vmul.f32 -1.442695, %v1530_v57  ;;  %5759 = vmatpush3.bf16.msra.mxu0 %v7712_v51  ;;  %v6188_v31 = vpop.eup %6187  ;;  %v4855_v10 = vmul.f32 -1.442695, %v1410_v21  ;;  %v1522_v28 = vadd.f32 %v7561_v49, %v1521_v17 }
 0x83d   :  { %5779 = vmatpush3.bf16.msra.mxu1 %v7712_v51  ;;  %5760 = vmatprep.subr.bf16.mxu0 %v7732_v0  ;;  %6195 = vpow2.f32 %v4854_v27  ;;  %v2939_v9 = vpack.c.bf16 %v2937_v14, %v2936_v1  ;;  %v6190_v40 = vpop.eup %6189  ;;  %v3051_v3 = vpack.c.bf16 %v3049_v52, %v3048_v22  ;;  %v3162_v43 = vpack.c.bf16 %v3159_v35, %v3158_v32 }
 0x83e   :  { %5780 = vmatprep.subr.bf16.mxu1 %v7732_v0  ;;  %6197 = vpow2.f32 %v4857_v18  ;;  %v4859_v4 = vmul.f32 -1.442695, %v1522_v28  ;;  %v3274_v47 = vpack.c.bf16 %v3271_v23, %v3270_v19  ;;  %v7849_v32 = vadd.f32 %v7766_v8, %v7186_v33 }
 0x83f   :  { %1227 = vrot.lane.b32.xlu1 %v6188_v31, %s6703_s10  ;;  %1337 = vrot.lane.b32.xlu0 %v6186_v63, %s6704_s9  ;;  %6199 = vpow2.f32 %v4861_v60  ;;  %v7844_v31 = vrot.slane %v7188_v34, %v7279_v42  ;;  %v3157_v19 = vadd.f32 %v7766_v8, %v7198_v41  ;;  %v7858_v23 = vadd.f32 %v7787_v36, %v7186_v33  ;;  %s6723_s10 = smov 23  }
 0x840   :  { %5761 = vmatpush3.bf16.msra.mxu0 %v7732_v0  ;;  %6201 = vpow2.f32 %v4858_v50 }
 0x841   :  { %5781 = vmatpush3.bf16.msra.mxu1 %v7732_v0  ;;  %5786 = vmatprep.subr.bf16.mxu0 %v7609_v30  ;;  %6203 = vpow2.f32 %v4855_v10 }
 0x842   :  { %5806 = vmatprep.subr.bf16.mxu1 %v7609_v30  ;;  %6205 = vpow2.f32 %v4859_v4 }
 0x843   :  { %1339 = vrot.lane.b32.xlu1 %v6190_v40, %s6704_s9  ;;  %5763 = vmatmul.mubr.bf16.vlgmr.msra.gmra.mrb[48].mxu0 %v2939_v9  ;;  %s6711_s9 = smov 11  }
 0x844   :  { %5783 = vmatmul.mubr.bf16.vlgmr.msra.gmra.mrb[56].mxu1 %v3051_v3  ;;  %5787 = vmatpush3.bf16.msra.mxu0 %v7609_v30 }
 0x845   :  { %v6192_v48 = vpop.eup %6191  ;;  %5802 = vmatprep.mubr.bf16.mxu0 %v3162_v43  ;;  %5807 = vmatpush3.bf16.msra.mxu1 %v7609_v30  ;;  %v7865_v43 = vrot.slane %v7188_v34, %v7283_v46 }
 0x846   :  { %v6194_v15 = vpop.eup %6193  ;;  %v1435_v54 = vadd.f32 1.0, %v6192_v48  ;;  %5822 = vmatprep.mubr.bf16.mxu1 %v3274_v47  ;;  %5788 = vmatprep.subr.bf16.mxu0 %v7618_v53 }
 0x847   :  { %v1547_v55 = vadd.f32 1.0, %v6194_v15  ;;  %5808 = vmatprep.subr.bf16.mxu1 %v7618_v53  ;;  %v6196_v27 = vpop.eup %6195 }
 0x848   :  { %6207 = vrcp.f32 %v1435_v54  ;;  %5789 = vmatpush3.bf16.msra.mxu0 %v7618_v53  ;;  %v6198_v56 = vpop.eup %6197  ;;  %v1433_v18 = vadd.f32 1.0, %v6196_v27  ;;  %v3378_v27 = vadd.f32 %v7844_v31, %v7162_v26 }
 0x849   :  { %5809 = vmatpush3.bf16.msra.mxu1 %v7618_v53  ;;  %5790 = vmatprep.subr.bf16.mxu0 %v7627_v44  ;;  %v6200_v57 = vpop.eup %6199  ;;  %v1436_v17 = vadd.f32 1.0, %v6198_v56  ;;  %6209 = vrcp.f32 %v1547_v55  ;;  %v3269_v55 = vadd.f32 %v7787_v36, %v7198_v41  ;;  %v3379_v36 = vadd.f32 %v7844_v31, %v7170_v6 }
 0x84a   :  { %5810 = vmatprep.subr.bf16.mxu1 %v7627_v44  ;;  %v6202_v21 = vpop.eup %6201  ;;  %v1548_v13 = vadd.f32 1.0, %v6200_v57 }
 0x84b   :  { %6211 = vrcp.f32 %v1436_v17  ;;  %v6204_v60 = vpop.eup %6203  ;;  %v1545_v62 = vadd.f32 1.0, %v6202_v21 }
 0x84c   :  { %5791 = vmatpush3.bf16.msra.mxu0 %v7627_v44  ;;  %6213 = vrcp.f32 %v1433_v18  ;;  %v1434_v24 = vadd.f32 1.0, %v6204_v60  ;;  %v6206_v63 = vpop.eup %6205 }
 0x84d   :  { %5811 = vmatpush3.bf16.msra.mxu1 %v7627_v44  ;;  %5792 = vmatprep.subr.bf16.mxu0 %v7639_v58  ;;  %6215 = vrcp.f32 %v1548_v13  ;;  %v1546_v14 = vadd.f32 1.0, %v6206_v63  ;;  %v3491_v63 = vadd.f32 %v7865_v43, %v7170_v6 }
 0x84e   :  { %5812 = vmatprep.subr.bf16.mxu1 %v7639_v58  ;;  %6217 = vrcp.f32 %v1545_v62 }
 0x84f   :  { %6219 = vrcp.f32 %v1434_v24  ;;  %v3490_v24 = vadd.f32 %v7865_v43, %v7162_v26 }
 0x850   :  { %5793 = vmatpush3.bf16.msra.mxu0 %v7639_v58  ;;  %6221 = vrcp.f32 %v1546_v14  ;;  %v3160_v14 = vmax.f32 %v7849_v32, 0.0 }
 0x851   :  { %5813 = vmatpush3.bf16.msra.mxu1 %v7639_v58  ;;  %5794 = vmatprep.subr.bf16.mxu0 %v7653_v12  ;;  %v3494_v32 = vmax.f32 %v3490_v24, 0.0 }
 0x852   :  { %v6208_v1 = vpop.eup %6207  ;;  %5814 = vmatprep.subr.bf16.mxu1 %v7653_v12 }
 0x853   :  { %1453 = vrot.lane.b32.xlu0 %v6208_v1, %s6705_s28  ;;  %v6210_v22 = vpop.eup %6209 }
 0x854   :  { %5795 = vmatpush3.bf16.msra.mxu0 %v7653_v12 }
 0x855   :  { %5815 = vmatpush3.bf16.msra.mxu1 %v7653_v12  ;;  %5796 = vmatprep.subr.bf16.mxu0 %v7668_v25  ;;  %v6212_v50 = vpop.eup %6211 }
 0x856   :  { %v5524_v52 = vpop.f32.mrb[24].mxu0  ;;  %5816 = vmatprep.subr.bf16.mxu1 %v7668_v25  ;;  %1455 = vrot.lane.b32.xlu1 %v6212_v50, %s6705_s28  ;;  %v6214_v47 = vpop.eup %6213  ;;  %v3272_v50 = vmax.f32 %v7858_v23, 0.0 }
 0x857   :  { %v1639_v10 = vadd.f32 %v5524_v52, %v7561_v49  ;;  %v5544_v28 = vpop.f32.mrb[32].mxu1  ;;  %v1630_v35 = vpop.f32.mrb[25].mxu0  ;;  %1565 = vrot.lane.b32.xlu0 %v6210_v22, %s6706_s4  ;;  %v3161_v22 = vmax.f32 %v3157_v19, 0.0  ;;  %v3495_v19 = vmax.f32 %v3491_v63, 0.0 }
 0x858   :  { %v1751_v9 = vadd.f32 %v5544_v28, %v7561_v49  ;;  %v1631_v40 = vadd.f32 %v7561_v49, %v1630_v35  ;;  %v1742_v3 = vpop.f32.mrb[33].mxu1  ;;  %v5525_v4 = vpop.f32.mrb[26].mxu0  ;;  %5797 = vmatpush3.bf16.msra.mxu0 %v7668_v25  ;;  %v3273_v28 = vmax.f32 %v3269_v55, 0.0  ;;  %v3382_v35 = vmax.f32 %v3378_v27, 0.0 }
 0x859   :  { %v4864_v48 = vmul.f32 -1.442695, %v1639_v10  ;;  %v1642_v8 = vadd.f32 %v5525_v4, %v7561_v49  ;;  %v5545_v15 = vpop.f32.mrb[34].mxu1  ;;  %5817 = vmatpush3.bf16.msra.mxu1 %v7668_v25  ;;  %v1633_v54 = vpop.f32.mrb[27].mxu0  ;;  %5798 = vmatprep.subr.bf16.mxu0 %v7712_v51  ;;  %v1743_v17 = vadd.f32 %v7561_v49, %v1742_v3  ;;  %v3383_v3 = vmax.f32 %v3379_v36, 0.0 }
 0x85a   :  { %v6216_v56 = vpop.eup %6215  ;;  %v4868_v57 = vmul.f32 -1.442695, %v1751_v9  ;;  %v4862_v34 = vmul.f32 -1.442695, %v1631_v40  ;;  %v1754_v18 = vadd.f32 %v5545_v15, %v7561_v49  ;;  %v1745_v21 = vpop.f32.mrb[35].mxu1  ;;  %5818 = vmatprep.subr.bf16.mxu1 %v7712_v51  ;;  %v1634_v60 = vadd.f32 %v7561_v49, %v1633_v54 }
 0x85b   :  { %6223 = vpow2.f32 %v4864_v48  ;;  %v4865_v13 = vmul.f32 -1.442695, %v1642_v8  ;;  %1567 = vrot.lane.b32.xlu1 %v6216_v56, %s6706_s4  ;;  %1449 = vrot.lane.b32.xlu0 %v6214_v47, %s6705_s28  ;;  %v6218_v1 = vpop.eup %6217  ;;  %v4866_v10 = vmul.f32 -1.442695, %v1743_v17  ;;  %v1746_v40 = vadd.f32 %v7561_v49, %v1745_v21 }
 0x85c   :  { %6225 = vpow2.f32 %v4868_v57  ;;  %v4869_v62 = vmul.f32 -1.442695, %v1754_v18  ;;  %5799 = vmatpush3.bf16.msra.mxu0 %v7712_v51  ;;  %v6220_v52 = vpop.eup %6219  ;;  %v4863_v9 = vmul.f32 -1.442695, %v1634_v60  ;;  %v3163_v23 = vpack.c.bf16 %v3161_v22, %v3160_v14  ;;  %v7930_v22 = vld [vmem:[#allocation2] ss:$0 sm:$0xff] }
 0x85d   :  { %5819 = vmatpush3.bf16.msra.mxu1 %v7712_v51  ;;  %5800 = vmatprep.subr.bf16.mxu0 %v7732_v0  ;;  %6227 = vpow2.f32 %v4862_v34  ;;  %v6222_v4 = vpop.eup %6221  ;;  %v3275_v47 = vpack.c.bf16 %v3273_v28, %v3272_v50  ;;  %v4867_v49 = vmul.f32 -1.442695, %v1746_v40  ;;  %v3386_v48 = vpack.c.bf16 %v3383_v3, %v3382_v35 }
 0x85e   :  { %5820 = vmatprep.subr.bf16.mxu1 %v7732_v0  ;;  %6229 = vpow2.f32 %v4865_v13  ;;  %v3498_v8 = vpack.c.bf16 %v3495_v19, %v3494_v32  ;;  %v7927_v14 = vrot.slane %v7200_v45, %v6868_v16  ;;  %v7938_v28 = vrot.slane %v7200_v45, %v6886_v2 }
 0x85f   :  { %1451 = vrot.lane.b32.xlu1 %v6220_v52, %s6705_s28  ;;  %1561 = vrot.lane.b32.xlu0 %v6218_v1, %s6706_s4  ;;  %6231 = vpow2.f32 %v4869_v62  ;;  %v7923_v1 = vadd.f32 %v7844_v31, %v7186_v33  ;;  %v3492_v3 = vadd.f32 %v7865_v43, %v7186_v33  ;;  %s6712_s28 = smov 12  }
 0x860   :  { %5801 = vmatpush3.bf16.msra.mxu0 %v7732_v0  ;;  %6233 = vpow2.f32 %v4866_v10  ;;  %v3381_v10 = vadd.f32 %v7844_v31, %v7198_v41 }
 0x861   :  { %5821 = vmatpush3.bf16.msra.mxu1 %v7732_v0  ;;  %5826 = vmatprep.subr.bf16.mxu0 %v7609_v30  ;;  %6235 = vpow2.f32 %v4863_v9 }
 0x862   :  { %5846 = vmatprep.subr.bf16.mxu1 %v7609_v30  ;;  %6237 = vpow2.f32 %v4867_v49 }
 0x863   :  { %1563 = vrot.lane.b32.xlu1 %v6222_v4, %s6706_s4  ;;  %5803 = vmatmul.mubr.bf16.vlgmr.msra.gmra.mrb[52].mxu0 %v3163_v23  ;;  %s6713_s4 = smov 13  }
 0x864   :  { %5823 = vmatmul.mubr.bf16.vlgmr.msra.gmra.mrb[60].mxu1 %v3275_v47  ;;  %5827 = vmatpush3.bf16.msra.mxu0 %v7609_v30  ;;  %v3493_v47 = vadd.f32 %v7865_v43, %v7198_v41  ;;  %v3714_v43 = vadd.f32 %v7938_v28, %v7162_v26 }
 0x865   :  { %v6224_v15 = vpop.eup %6223  ;;  %5842 = vmatprep.mubr.bf16.mxu0 %v3386_v48  ;;  %5847 = vmatpush3.bf16.msra.mxu1 %v7609_v30 }
 0x866   :  { %v6226_v54 = vpop.eup %6225  ;;  %v1659_v55 = vadd.f32 1.0, %v6224_v15  ;;  %5862 = vmatprep.mubr.bf16.mxu1 %v3498_v8  ;;  %5828 = vmatprep.subr.bf16.mxu0 %v7618_v53 }
 0x867   :  { %v1771_v27 = vadd.f32 1.0, %v6226_v54  ;;  %5848 = vmatprep.subr.bf16.mxu1 %v7618_v53  ;;  %v6228_v56 = vpop.eup %6227  ;;  %v3602_v54 = vadd.f32 %v7927_v14, %v7162_v26 }
 0x868   :  { %6239 = vrcp.f32 %v1659_v55  ;;  %5829 = vmatpush3.bf16.msra.mxu0 %v7618_v53  ;;  %v6230_v57 = vpop.eup %6229  ;;  %v1657_v17 = vadd.f32 1.0, %v6228_v56  ;;  %v3603_v55 = vadd.f32 %v7927_v14, %v7170_v6 }
 0x869   :  { %5849 = vmatpush3.bf16.msra.mxu1 %v7618_v53  ;;  %5830 = vmatprep.subr.bf16.mxu0 %v7627_v44  ;;  %v6232_v34 = vpop.eup %6231  ;;  %v1660_v30 = vadd.f32 1.0, %v6230_v57  ;;  %6241 = vrcp.f32 %v1771_v27 }
 0x86a   :  { %5850 = vmatprep.subr.bf16.mxu1 %v7627_v44  ;;  %v6234_v18 = vpop.eup %6233  ;;  %v1772_v21 = vadd.f32 1.0, %v6232_v34  ;;  %v3715_v34 = vadd.f32 %v7938_v28, %v7170_v6 }
 0x86b   :  { %6243 = vrcp.f32 %v1660_v30  ;;  %v6236_v13 = vpop.eup %6235  ;;  %v1769_v53 = vadd.f32 1.0, %v6234_v18  ;;  %v3385_v18 = vmax.f32 %v3381_v10, 0.0 }
 0x86c   :  { %5831 = vmatpush3.bf16.msra.mxu0 %v7627_v44  ;;  %6245 = vrcp.f32 %v1657_v17  ;;  %v1658_v60 = vadd.f32 1.0, %v6236_v13  ;;  %v6238_v36 = vpop.eup %6237  ;;  %v3384_v17 = vmax.f32 %v7923_v1, 0.0  ;;  %v7977_v1 = vld [vmem:[%s8875_s11] sm:$0xff]  }
 0x86d   :  { %5851 = vmatpush3.bf16.msra.mxu1 %v7627_v44  ;;  %5832 = vmatprep.subr.bf16.mxu0 %v7639_v58  ;;  %6247 = vrcp.f32 %v1772_v21  ;;  %v1770_v44 = vadd.f32 1.0, %v6238_v36 }
 0x86e   :  { %5852 = vmatprep.subr.bf16.mxu1 %v7639_v58  ;;  %6249 = vrcp.f32 %v1769_v53  ;;  %v3496_v53 = vmax.f32 %v3492_v3, 0.0  ;;  %v7987_v3 = vld [vmem:[%s8875_s11 + $0x8] sm:$0xff]  }
 0x86f   :  { %6251 = vrcp.f32 %v1658_v60  ;;  %v3497_v60 = vmax.f32 %v3493_v47, 0.0  ;;  %v7998_v47 = vld [vmem:[%s8875_s11 + $0x10] sm:$0xff]  }
 0x870   :  { %5833 = vmatpush3.bf16.msra.mxu0 %v7639_v58  ;;  %6253 = vrcp.f32 %v1770_v44 }
 0x871   :  { %5853 = vmatpush3.bf16.msra.mxu1 %v7639_v58  ;;  %5834 = vmatprep.subr.bf16.mxu0 %v7653_v12 }
 0x872   :  { %v6240_v62 = vpop.eup %6239  ;;  %5854 = vmatprep.subr.bf16.mxu1 %v7653_v12 }
 0x873   :  { %1677 = vrot.lane.b32.xlu0 %v6240_v62, %s6707_s29  ;;  %v6242_v24 = vpop.eup %6241  ;;  %v3606_v62 = vmax.f32 %v3602_v54, 0.0 }
 0x874   :  { %5835 = vmatpush3.bf16.msra.mxu0 %v7653_v12 }
 0x875   :  { %5855 = vmatpush3.bf16.msra.mxu1 %v7653_v12  ;;  %5836 = vmatprep.subr.bf16.mxu0 %v7668_v25  ;;  %v6244_v63 = vpop.eup %6243 }
 0x876   :  { %v5564_v58 = vpop.f32.mrb[28].mxu0  ;;  %5856 = vmatprep.subr.bf16.mxu1 %v7668_v25  ;;  %1679 = vrot.lane.b32.xlu1 %v6244_v63, %s6707_s29  ;;  %v6246_v32 = vpop.eup %6245  ;;  %v3719_v63 = vmax.f32 %v3715_v34, 0.0 }
 0x877   :  { %v1863_v12 = vadd.f32 %v7930_v22, %v5564_v58  ;;  %v5584_v50 = vpop.f32.mrb[36].mxu1  ;;  %v1854_v52 = vpop.f32.mrb[29].mxu0  ;;  %1789 = vrot.lane.b32.xlu0 %v6242_v24, %s6708_s5  ;;  %v3718_v24 = vmax.f32 %v3714_v43, 0.0  ;;  %v3387_v58 = vpack.c.bf16 %v3385_v18, %v3384_v17  ;;  %v8010_v43 = vld [vmem:[%s8875_s11 + $0x18] sm:$0xff]   ;;  %v8022_v18 = vld [vmem:[%s8875_s11 + $0x20] sm:$0xff]  }
 0x878   :  { %v1975_v16 = vadd.f32 %v7930_v22, %v5584_v50  ;;  %v1855_v35 = vadd.f32 %v7930_v22, %v1854_v52  ;;  %v1966_v9 = vpop.f32.mrb[37].mxu1  ;;  %v5565_v40 = vpop.f32.mrb[30].mxu0  ;;  %5837 = vmatpush3.bf16.msra.mxu0 %v7668_v25  ;;  %v3499_v50 = vpack.c.bf16 %v3497_v60, %v3496_v53  ;;  %v8033_v60 = vld [vmem:[%s8875_s11 + $0x28] sm:$0xff]  }
 0x879   :  { %v4872_v19 = vmul.f32 -1.442695, %v1863_v12  ;;  %v1967_v31 = vadd.f32 %v7930_v22, %v1966_v9  ;;  %v1866_v23 = vadd.f32 %v7930_v22, %v5565_v40  ;;  %v5585_v2 = vpop.f32.mrb[38].mxu1  ;;  %5857 = vmatpush3.bf16.msra.mxu1 %v7668_v25  ;;  %v1857_v4 = vpop.f32.mrb[31].mxu0  ;;  %5838 = vmatprep.subr.bf16.mxu0 %v7712_v51 }
 0x87a   :  { %v6248_v49 = vpop.eup %6247  ;;  %v4876_v48 = vmul.f32 -1.442695, %v1975_v16  ;;  %v4870_v8 = vmul.f32 -1.442695, %v1855_v35  ;;  %v1969_v15 = vpop.f32.mrb[39].mxu1  ;;  %5858 = vmatprep.subr.bf16.mxu1 %v7712_v51  ;;  %v1978_v57 = vadd.f32 %v7930_v22, %v5585_v2  ;;  %v1858_v36 = vadd.f32 %v7930_v22, %v1857_v4 }
 0x87b   :  { %6255 = vpow2.f32 %v4872_v19  ;;  %v4874_v25 = vmul.f32 -1.442695, %v1967_v31  ;;  %v1970_v27 = vadd.f32 %v7930_v22, %v1969_v15  ;;  %1791 = vrot.lane.b32.xlu1 %v6248_v49, %s6708_s5  ;;  %1673 = vrot.lane.b32.xlu0 %v6246_v32, %s6707_s29  ;;  %v4873_v56 = vmul.f32 -1.442695, %v1866_v23  ;;  %v6250_v30 = vpop.eup %6249 }
 0x87c   :  { %6257 = vpow2.f32 %v4876_v48  ;;  %5839 = vmatpush3.bf16.msra.mxu0 %v7712_v51  ;;  %v6252_v21 = vpop.eup %6251  ;;  %v4877_v44 = vmul.f32 -1.442695, %v1978_v57  ;;  %v4871_v52 = vmul.f32 -1.442695, %v1858_v36  ;;  %v8038_v36 = vrot.slane %v7200_v45, %v6889_v5 }
 0x87d   :  { %6259 = vpow2.f32 %v4870_v8  ;;  %5859 = vmatpush3.bf16.msra.mxu1 %v7712_v51  ;;  %5840 = vmatprep.subr.bf16.mxu0 %v7732_v0  ;;  %v4875_v13 = vmul.f32 -1.442695, %v1970_v27  ;;  %v3607_v51 = vmax.f32 %v3603_v55, 0.0  ;;  %v6254_v12 = vpop.eup %6253  ;;  %v3716_v5 = vadd.f32 %v7938_v28, %v7186_v33 }
 0x87e   :  { %6261 = vpow2.f32 %v4874_v25  ;;  %5860 = vmatprep.subr.bf16.mxu1 %v7732_v0 }
 0x87f   :  { %1675 = vrot.lane.b32.xlu1 %v6252_v21, %s6707_s29  ;;  %1785 = vrot.lane.b32.xlu0 %v6250_v30, %s6708_s5  ;;  %6263 = vpow2.f32 %v4873_v56  ;;  %v3610_v10 = vpack.c.bf16 %v3607_v51, %v3606_v62  ;;  %s6714_s29 = smov 14  }
 0x880   :  { %5841 = vmatpush3.bf16.msra.mxu0 %v7732_v0  ;;  %6265 = vpow2.f32 %v4875_v13 }
 0x881   :  { %5861 = vmatpush3.bf16.msra.mxu1 %v7732_v0  ;;  %5866 = vmatprep.subr.bf16.mxu0 %v7977_v1  ;;  %6267 = vpow2.f32 %v4877_v44  ;;  %v3722_v0 = vpack.c.bf16 %v3719_v63, %v3718_v24  ;;  %v8043_v44 = vadd.f32 %v7927_v14, %v7186_v33 }
 0x882   :  { %5886 = vmatprep.subr.bf16.mxu1 %v7977_v1  ;;  %6269 = vpow2.f32 %v4871_v52  ;;  %v8053_v52 = vrot.slane %v7200_v45, %v6928_v38 }
 0x883   :  { %1787 = vrot.lane.b32.xlu1 %v6254_v12, %s6708_s5  ;;  %5843 = vmatmul.mubr.bf16.vlgmr.msra.gmra.mrb[56].mxu0 %v3387_v58  ;;  %s6715_s5 = smov 15  }
 0x884   :  { %5863 = vmatmul.mubr.bf16.vlgmr.msra.gmra.mrb[64].mxu1 %v3499_v50  ;;  %5867 = vmatpush3.bf16.msra.mxu0 %v7977_v1  ;;  %v3605_v50 = vadd.f32 %v7927_v14, %v7198_v41  ;;  %v3717_v14 = vadd.f32 %v7938_v28, %v7198_v41 }
 0x885   :  { %v6256_v16 = vpop.eup %6255  ;;  %5882 = vmatprep.mubr.bf16.mxu0 %v3610_v10  ;;  %5887 = vmatpush3.bf16.msra.mxu1 %v7977_v1 }
 0x886   :  { %v6258_v35 = vpop.eup %6257  ;;  %v1883_v9 = vadd.f32 1.0, %v6256_v16  ;;  %5902 = vmatprep.mubr.bf16.mxu1 %v3722_v0  ;;  %v1118_v40 = vpop.permute.xlu0 %1117  ;;  %5868 = vmatprep.subr.bf16.mxu0 %v7987_v3 }
 0x887   :  { %v6260_v32 = vpop.eup %6259  ;;  %v1995_v19 = vadd.f32 1.0, %v6258_v35  ;;  %v1127_v31 = vmul.f32 %v7646_v29, %v1118_v40  ;;  %5888 = vmatprep.subr.bf16.mxu1 %v7987_v3 }
 0x888   :  { %v6262_v23 = vpop.eup %6261  ;;  %6271 = vrcp.f32 %v1883_v9  ;;  %v1881_v2 = vadd.f32 1.0, %v6260_v32  ;;  %5869 = vmatpush3.bf16.msra.mxu0 %v7987_v3 }
 0x889   :  { %6273 = vrcp.f32 %v1995_v19  ;;  %v1993_v4 = vadd.f32 1.0, %v6262_v23  ;;  %1132 = vst.msk [vmem:[#allocation3 + $0x10] sm:$0xff] %vm1129_vm15, %v1127_v31  ;;  %5889 = vmatpush3.bf16.msra.mxu1 %v7987_v3  ;;  %5870 = vmatprep.subr.bf16.mxu0 %v7998_v47  ;;  %v6264_v49 = vpop.eup %6263  ;;  %v8066_v19 = vld [vmem:[%s8875_s11 + $0x30] sm:$0xff]   ;;  %v3826_v31 = vadd.f32 %v8038_v36, %v7162_v26 }
 0x88a   :  { %v1120_v48 = vpop.permute.xlu1 %1119  ;;  %5890 = vmatprep.subr.bf16.mxu1 %v7998_v47  ;;  %v6266_v54 = vpop.eup %6265  ;;  %6275 = vrcp.f32 %v1881_v2  ;;  %v1884_v25 = vadd.f32 1.0, %v6264_v49 }
 0x88b   :  { %v1128_v8 = vmul.f32 %v7660_v7, %v1120_v48  ;;  %v1114_v15 = vpop.permute.xlu0 %1113  ;;  %6277 = vrcp.f32 %v1993_v4  ;;  %v1994_v27 = vadd.f32 1.0, %v6266_v54  ;;  %v6268_v56 = vpop.eup %6267  ;;  %v3827_v48 = vadd.f32 %v8038_v36, %v7170_v6 }
 0x88c   :  { %v1125_v55 = vmul.f32 %v7656_v11, %v1114_v15  ;;  %5871 = vmatpush3.bf16.msra.mxu0 %v7998_v47  ;;  %v6270_v30 = vpop.eup %6269  ;;  %v1996_v17 = vadd.f32 1.0, %v6268_v56  ;;  %v3939_v56 = vadd.f32 %v8053_v52, %v7170_v6 }
 0x88d   :  { %1133 = vst.msk [vmem:[#allocation3 + $0x18] sm:$0xff] %vm1129_vm15, %v1128_v8  ;;  %5891 = vmatpush3.bf16.msra.mxu1 %v7998_v47  ;;  %5872 = vmatprep.subr.bf16.mxu0 %v8010_v43  ;;  %6279 = vrcp.f32 %v1994_v27  ;;  %v1882_v53 = vadd.f32 1.0, %v6270_v30  ;;  %v3609_v30 = vmax.f32 %v3605_v50, 0.0 }
 0x88e   :  { %1130 = vst.msk [vmem:[#allocation3] sm:$0xff] %vm1129_vm15, %v1125_v55  ;;  %v1116_v57 = vpop.permute.xlu1 %1115  ;;  %5892 = vmatprep.subr.bf16.mxu1 %v8010_v43  ;;  %6281 = vrcp.f32 %v1884_v25  ;;  %v3938_v55 = vadd.f32 %v8053_v52, %v7162_v26 }
 0x88f   :  { %v1126_v34 = vmul.f32 %v7694_v20, %v1116_v57  ;;  %6283 = vrcp.f32 %v1996_v17  ;;  %v8088_v57 = vld [vmem:[%s8875_s11 + $0x38] sm:$0xff]   ;;  %v3720_v17 = vmax.f32 %v3716_v5, 0.0  ;;  %s6710_s11 = smov 10  }
 0x890   :  { %5873 = vmatpush3.bf16.msra.mxu0 %v8010_v43  ;;  %6285 = vrcp.f32 %v1882_v53 }
 0x891   :  { %1131 = vst.msk [vmem:[#allocation3 + $0x8] sm:$0xff] %vm1129_vm15, %v1126_v34  ;;  %5893 = vmatpush3.bf16.msra.mxu1 %v8010_v43  ;;  %5874 = vmatprep.subr.bf16.mxu0 %v8022_v18  ;;  %v3608_v34 = vmax.f32 %v8043_v44, 0.0  ;;  %v3942_v44 = vmax.f32 %v3938_v55, 0.0  ;;  %vm2697_vm15 = vcmask 130168  }
 0x892   :  { %v6272_v21 = vpop.eup %6271  ;;  %5894 = vmatprep.subr.bf16.mxu1 %v8022_v18 }
 0x893   :  { %v6274_v13 = vpop.eup %6273  ;;  %1901 = vrot.lane.b32.xlu0 %v6272_v21, %s6699_s22  ;;  %v3721_v21 = vmax.f32 %v3717_v14, 0.0 }
 0x894   :  { %2013 = vrot.lane.b32.xlu1 %v6274_v13, %s6709_s24  ;;  %5875 = vmatpush3.bf16.msra.mxu0 %v8022_v18  ;;  %v6276_v62 = vpop.eup %6275  ;;  %v3830_v13 = vmax.f32 %v3826_v31, 0.0 }
 0x895   :  { %5895 = vmatpush3.bf16.msra.mxu1 %v8022_v18  ;;  %5876 = vmatprep.subr.bf16.mxu0 %v8033_v60  ;;  %v6278_v24 = vpop.eup %6277  ;;  %v3723_v50 = vpack.c.bf16 %v3721_v21, %v3720_v17 }
 0x896   :  { %v5604_v51 = vpop.f32.mrb[32].mxu0  ;;  %5896 = vmatprep.subr.bf16.mxu1 %v8033_v60 }
 0x897   :  { %v2087_v63 = vadd.f32 %v7930_v22, %v5604_v51  ;;  %v5624_v58 = vpop.f32.mrb[40].mxu1  ;;  %v2078_v12 = vpop.f32.mrb[33].mxu0  ;;  %1897 = vrot.lane.b32.xlu0 %v6276_v62, %s6699_s22 }
 0x898   :  { %v2199_v10 = vadd.f32 %v7930_v22, %v5624_v58  ;;  %v2079_v0 = vadd.f32 %v7930_v22, %v2078_v12  ;;  %v2190_v16 = vpop.f32.mrb[41].mxu1  ;;  %2009 = vrot.lane.b32.xlu1 %v6278_v24, %s6709_s24  ;;  %v5605_v35 = vpop.f32.mrb[34].mxu0  ;;  %5877 = vmatpush3.bf16.msra.mxu0 %v8033_v60  ;;  %v3831_v24 = vmax.f32 %v3827_v48, 0.0  ;;  %v3943_v58 = vmax.f32 %v3939_v56, 0.0 }
 0x899   :  { %v4880_v9 = vmul.f32 -1.442695, %v2087_v63  ;;  %v2090_v40 = vadd.f32 %v7930_v22, %v5605_v35  ;;  %v5625_v32 = vpop.f32.mrb[42].mxu1  ;;  %5897 = vmatpush3.bf16.msra.mxu1 %v8033_v60  ;;  %v2081_v38 = vpop.f32.mrb[35].mxu0  ;;  %5878 = vmatprep.subr.bf16.mxu0 %v8066_v19  ;;  %v2191_v25 = vadd.f32 %v7930_v22, %v2190_v16  ;;  %v3611_v12 = vpack.c.bf16 %v3609_v30, %v3608_v34 }
 0x89a   :  { %v6280_v23 = vpop.eup %6279  ;;  %v4884_v28 = vmul.f32 -1.442695, %v2199_v10  ;;  %v4878_v2 = vmul.f32 -1.442695, %v2079_v0  ;;  %v2202_v4 = vadd.f32 %v7930_v22, %v5625_v32  ;;  %v2193_v49 = vpop.f32.mrb[43].mxu1  ;;  %5898 = vmatprep.subr.bf16.mxu1 %v8066_v19  ;;  %v2082_v54 = vadd.f32 %v7930_v22, %v2081_v38 }
 0x89b   :  { %v6282_v8 = vpop.eup %6281  ;;  %6287 = vpow2.f32 %v4880_v9  ;;  %v4881_v15 = vmul.f32 -1.442695, %v2090_v40  ;;  %2011 = vrot.lane.b32.xlu0 %v6280_v23, %s6709_s24  ;;  %v2194_v51 = vadd.f32 %v7930_v22, %v2193_v49  ;;  %v4882_v63 = vmul.f32 -1.442695, %v2191_v25 }
 0x89c   :  { %6289 = vpow2.f32 %v4884_v28  ;;  %v4885_v27 = vmul.f32 -1.442695, %v2202_v4  ;;  %1903 = vrot.lane.b32.xlu1 %v6282_v8, %s6699_s22  ;;  %5879 = vmatpush3.bf16.msra.mxu0 %v8066_v19  ;;  %v6284_v53 = vpop.eup %6283  ;;  %v4879_v62 = vmul.f32 -1.442695, %v2082_v54  ;;  %v3834_v0 = vpack.c.bf16 %v3831_v24, %v3830_v13 }
 0x89d   :  { %5899 = vmatpush3.bf16.msra.mxu1 %v8066_v19  ;;  %5880 = vmatprep.subr.bf16.mxu0 %v8088_v57  ;;  %6291 = vpow2.f32 %v4878_v2  ;;  %v6286_v5 = vpop.eup %6285  ;;  %v4883_v10 = vmul.f32 -1.442695, %v2194_v51  ;;  %v3946_v16 = vpack.c.bf16 %v3943_v58, %v3942_v44 }
 0x89e   :  { %5900 = vmatprep.subr.bf16.mxu1 %v8088_v57  ;;  %6293 = vpow2.f32 %v4881_v15 }
 0x89f   :  { %6295 = vpow2.f32 %v4885_v27 }
 0x8a0   :  { %2015 = vrot.lane.b32.xlu1 %v6284_v53, %s6709_s24  ;;  %5881 = vmatpush3.bf16.msra.mxu0 %v8088_v57  ;;  %6297 = vpow2.f32 %v4879_v62 }
 0x8a1   :  { %5901 = vmatpush3.bf16.msra.mxu1 %v8088_v57  ;;  %5906 = vmatprep.subr.bf16.mxu0 %v7977_v1  ;;  %6299 = vpow2.f32 %v4882_v63 }
 0x8a2   :  { %5926 = vmatprep.subr.bf16.mxu1 %v7977_v1  ;;  %6301 = vpow2.f32 %v4883_v10 }
 0x8a3   :  { %5883 = vmatmul.mubr.bf16.vlgmr.msra.gmra.mrb[60].mxu0 %v3611_v12 }
 0x8a4   :  { %5903 = vmatmul.mubr.bf16.vlgmr.msra.gmra.mrb[68].mxu1 %v3723_v50  ;;  %1899 = vrot.lane.b32.xlu1 %v6286_v5, %s6699_s22 }
 0x8a5   :  { %v6288_v35 = vpop.eup %6287  ;;  %5907 = vmatpush3.bf16.msra.mxu0 %v7977_v1  ;;  %5922 = vmatprep.mubr.bf16.mxu0 %v3834_v0  ;;  %v1230_v14 = vpop.permute.xlu0 %1229 }
 0x8a6   :  { %v6290_v9 = vpop.eup %6289  ;;  %v2107_v40 = vadd.f32 1.0, %v6288_v35  ;;  %5927 = vmatpush3.bf16.msra.mxu1 %v7977_v1  ;;  %5942 = vmatprep.mubr.bf16.mxu1 %v3946_v16  ;;  %v1239_v32 = vmul.f32 %v7646_v29, %v1230_v14  ;;  %v8140_v14 = vadd.f32 %v8038_v36, %v7186_v33 }
 0x8a7   :  { %5908 = vmatprep.subr.bf16.mxu0 %v7987_v3  ;;  %5928 = vmatprep.subr.bf16.mxu1 %v7987_v3  ;;  %v6292_v38 = vpop.eup %6291  ;;  %v2219_v23 = vadd.f32 1.0, %v6290_v9  ;;  %v8144_v9 = vrot.slane %v7200_v45, %v6941_v37 }
 0x8a8   :  { %6303 = vrcp.f32 %v2107_v40  ;;  %1244 = vst.msk [vmem:[#allocation3 + $0x10] sm:$0xff] %vm1241_vm3, %v1239_v32  ;;  %v6294_v31 = vpop.eup %6293  ;;  %v1232_v28 = vpop.permute.xlu1 %1231  ;;  %v2105_v55 = vadd.f32 1.0, %v6292_v38 }
 0x8a9   :  { %5909 = vmatpush3.bf16.msra.mxu0 %v7987_v3  ;;  %v1342_v2 = vpop.permute.xlu0 %1341  ;;  %v6296_v4 = vpop.eup %6295  ;;  %v2108_v49 = vadd.f32 1.0, %v6294_v31  ;;  %v1240_v48 = vmul.f32 %v7660_v7, %v1232_v28 }
 0x8aa   :  { %5929 = vmatpush3.bf16.msra.mxu1 %v7987_v3  ;;  %v1351_v8 = vmul.f32 %v7646_v29, %v1342_v2  ;;  %5910 = vmatprep.subr.bf16.mxu0 %v7998_v47  ;;  %v2220_v15 = vadd.f32 1.0, %v6296_v4  ;;  %v6298_v54 = vpop.eup %6297 }
 0x8ab   :  { %5930 = vmatprep.subr.bf16.mxu1 %v7998_v47  ;;  %6305 = vrcp.f32 %v2108_v49  ;;  %1245 = vst.msk [vmem:[#allocation3 + $0x18] sm:$0xff] %vm1241_vm3, %v1240_v48  ;;  %v6300_v56 = vpop.eup %6299  ;;  %v2106_v17 = vadd.f32 1.0, %v6298_v54  ;;  %v3940_v49 = vadd.f32 %v8053_v52, %v7186_v33  ;;  %v8158_v48 = vrot.slane %v7200_v45, %v6944_v39 }
 0x8ac   :  { %1356 = vst.msk [vmem:[#allocation3 + $0x10] sm:$0xff] %vm1353_vm4, %v1351_v8  ;;  %6307 = vrcp.f32 %v2219_v23  ;;  %v6302_v21 = vpop.eup %6301  ;;  %v2217_v13 = vadd.f32 1.0, %v6300_v56  ;;  %v3829_v23 = vadd.f32 %v8038_v36, %v7198_v41  ;;  %v4050_v39 = vadd.f32 %v8144_v9, %v7162_v26 }
 0x8ad   :  { %v1344_v25 = vpop.permute.xlu1 %1343  ;;  %5911 = vmatpush3.bf16.msra.mxu0 %v7998_v47  ;;  %v1226_v27 = vpop.permute.xlu0 %1225  ;;  %6309 = vrcp.f32 %v2220_v15  ;;  %v2218_v44 = vadd.f32 1.0, %v6302_v21  ;;  %v4162_v21 = vadd.f32 %v8158_v48, %v7162_v26 }
 0x8ae   :  { %v1352_v34 = vmul.f32 %v7660_v7, %v1344_v25  ;;  %5931 = vmatpush3.bf16.msra.mxu1 %v7998_v47  ;;  %v1237_v30 = vmul.f32 %v7656_v11, %v1226_v27  ;;  %5912 = vmatprep.subr.bf16.mxu0 %v8010_v43  ;;  %6311 = vrcp.f32 %v2105_v55  ;;  %v3941_v25 = vadd.f32 %v8053_v52, %v7198_v41 }
 0x8af   :  { %5932 = vmatprep.subr.bf16.mxu1 %v8010_v43  ;;  %6313 = vrcp.f32 %v2106_v17  ;;  %v4051_v52 = vadd.f32 %v8144_v9, %v7170_v6 }
 0x8b0   :  { %1357 = vst.msk [vmem:[#allocation3 + $0x18] sm:$0xff] %vm1353_vm4, %v1352_v34  ;;  %6315 = vrcp.f32 %v2217_v13  ;;  %v4163_v13 = vadd.f32 %v8158_v48, %v7170_v6 }
 0x8b1   :  { %1242 = vst.msk [vmem:[#allocation3] sm:$0xff] %vm1241_vm3, %v1237_v30  ;;  %v1228_v53 = vpop.permute.xlu1 %1227  ;;  %5913 = vmatpush3.bf16.msra.mxu0 %v8010_v43  ;;  %v1338_v62 = vpop.permute.xlu0 %1337  ;;  %6317 = vrcp.f32 %v2218_v44 }
 0x8b2   :  { %v6304_v51 = vpop.eup %6303  ;;  %v1238_v24 = vmul.f32 %v7694_v20, %v1228_v53  ;;  %5933 = vmatpush3.bf16.msra.mxu1 %v8010_v43  ;;  %v1349_v63 = vmul.f32 %v7656_v11, %v1338_v62  ;;  %5914 = vmatprep.subr.bf16.mxu0 %v8022_v18  ;;  %v3832_v62 = vmax.f32 %v8140_v14, 0.0 }
 0x8b3   :  { %5934 = vmatprep.subr.bf16.mxu1 %v8022_v18  ;;  %2125 = vrot.lane.b32.xlu0 %v6304_v51, %s6710_s11  ;;  %v3833_v51 = vmax.f32 %v3829_v23, 0.0 }
 0x8b4   :  { %1243 = vst.msk [vmem:[#allocation3 + $0x8] sm:$0xff] %vm1241_vm3, %v1238_v24  ;;  %v3944_v24 = vmax.f32 %v3940_v49, 0.0  ;;  %vm2809_vm3 = vcmask 138368  }
 0x8b5   :  { %1354 = vst.msk [vmem:[#allocation3] sm:$0xff] %vm1353_vm4, %v1349_v63  ;;  %v1340_v58 = vpop.permute.xlu1 %1339  ;;  %5915 = vmatpush3.bf16.msra.mxu0 %v8022_v18  ;;  %v6306_v12 = vpop.eup %6305  ;;  %v3835_v14 = vpack.c.bf16 %v3833_v51, %v3832_v62 }
 0x8b6   :  { %v1350_v50 = vmul.f32 %v7694_v20, %v1340_v58  ;;  %5935 = vmatpush3.bf16.msra.mxu1 %v8022_v18  ;;  %v5644_v5 = vpop.f32.mrb[36].mxu0  ;;  %5916 = vmatprep.subr.bf16.mxu0 %v8033_v60  ;;  %v6308_v10 = vpop.eup %6307 }
 0x8b7   :  { %2127 = vrot.lane.b32.xlu1 %v6306_v12, %s6710_s11  ;;  %v2311_v0 = vadd.f32 %v7930_v22, %v5644_v5  ;;  %v5664_v16 = vpop.f32.mrb[44].mxu1  ;;  %v2302_v35 = vpop.f32.mrb[37].mxu0  ;;  %5936 = vmatprep.subr.bf16.mxu1 %v8033_v60  ;;  %v3945_v12 = vmax.f32 %v3941_v25, 0.0  ;;  %v4054_v5 = vmax.f32 %v4050_v39, 0.0 }
 0x8b8   :  { %1355 = vst.msk [vmem:[#allocation3 + $0x8] sm:$0xff] %vm1353_vm4, %v1350_v50  ;;  %v2423_v40 = vadd.f32 %v7930_v22, %v5664_v16  ;;  %v2303_v32 = vadd.f32 %v7930_v22, %v2302_v35  ;;  %v2414_v38 = vpop.f32.mrb[45].mxu1  ;;  %2237 = vrot.lane.b32.xlu0 %v6308_v10, %s6711_s9  ;;  %v5645_v31 = vpop.f32.mrb[38].mxu0  ;;  %v4055_v10 = vmax.f32 %v4051_v52, 0.0  ;;  %v4167_v16 = vmax.f32 %v4163_v13, 0.0 }
 0x8b9   :  { %v4888_v28 = vmul.f32 -1.442695, %v2311_v0  ;;  %v2314_v2 = vadd.f32 %v7930_v22, %v5645_v31  ;;  %v5665_v37 = vpop.f32.mrb[46].mxu1  ;;  %5917 = vmatpush3.bf16.msra.mxu0 %v8033_v60  ;;  %v2305_v4 = vpop.f32.mrb[39].mxu0  ;;  %v2415_v30 = vadd.f32 %v7930_v22, %v2414_v38  ;;  %v4166_v0 = vmax.f32 %v4162_v21, 0.0 }
 0x8ba   :  { %v6310_v8 = vpop.eup %6309  ;;  %v4892_v15 = vmul.f32 -1.442695, %v2423_v40  ;;  %v4886_v54 = vmul.f32 -1.442695, %v2303_v32  ;;  %v2426_v55 = vadd.f32 %v7930_v22, %v5665_v37  ;;  %5937 = vmatpush3.bf16.msra.mxu1 %v8033_v60  ;;  %v2417_v36 = vpop.f32.mrb[47].mxu1  ;;  %5918 = vmatprep.subr.bf16.mxu0 %v8066_v19  ;;  %v2306_v34 = vadd.f32 %v7930_v22, %v2305_v4 }
 0x8bb   :  { %v6312_v27 = vpop.eup %6311  ;;  %6319 = vpow2.f32 %v4888_v28  ;;  %v4889_v56 = vmul.f32 -1.442695, %v2314_v2  ;;  %2239 = vrot.lane.b32.xlu1 %v6310_v8, %s6711_s9  ;;  %5938 = vmatprep.subr.bf16.mxu1 %v8066_v19  ;;  %v2418_v58 = vadd.f32 %v7930_v22, %v2417_v36  ;;  %v4890_v50 = vmul.f32 -1.442695, %v2415_v30 }
 0x8bc   :  { %6321 = vpow2.f32 %v4892_v15  ;;  %v4893_v17 = vmul.f32 -1.442695, %v2426_v55  ;;  %2121 = vrot.lane.b32.xlu0 %v6312_v27, %s6710_s11  ;;  %v6314_v53 = vpop.eup %6313  ;;  %v4887_v44 = vmul.f32 -1.442695, %v2306_v34  ;;  %v3947_v32 = vpack.c.bf16 %v3945_v12, %v3944_v24 }
 0x8bd   :  { %5919 = vmatpush3.bf16.msra.mxu0 %v8066_v19  ;;  %6323 = vpow2.f32 %v4886_v54  ;;  %v6316_v63 = vpop.eup %6315  ;;  %v4891_v40 = vmul.f32 -1.442695, %v2418_v58  ;;  %v4058_v38 = vpack.c.bf16 %v4055_v10, %v4054_v5  ;;  %v4170_v23 = vpack.c.bf16 %v4167_v16, %v4166_v0 }
 0x8be   :  { %5939 = vmatpush3.bf16.msra.mxu1 %v8066_v19  ;;  %5920 = vmatprep.subr.bf16.mxu0 %v8088_v57  ;;  %6325 = vpow2.f32 %v4889_v56  ;;  %v6318_v35 = vpop.eup %6317  ;;  %vm2921_vm4 = vcmask 146568  }
 0x8bf   :  { %2123 = vrot.lane.b32.xlu1 %v6314_v53, %s6710_s11  ;;  %5940 = vmatprep.subr.bf16.mxu1 %v8088_v57  ;;  %6327 = vpow2.f32 %v4893_v17  ;;  %s6724_s11 = smov 24  }
 0x8c0   :  { %2233 = vrot.lane.b32.xlu0 %v6316_v63, %s6711_s9  ;;  %6329 = vpow2.f32 %v4887_v44 }
 0x8c1   :  { %5921 = vmatpush3.bf16.msra.mxu0 %v8088_v57  ;;  %6331 = vpow2.f32 %v4890_v50 }
 0x8c2   :  { %5941 = vmatpush3.bf16.msra.mxu1 %v8088_v57  ;;  %5946 = vmatprep.subr.bf16.mxu0 %v7977_v1  ;;  %6333 = vpow2.f32 %v4891_v40 }
 0x8c3   :  { %2235 = vrot.lane.b32.xlu1 %v6318_v35, %s6711_s9  ;;  %5966 = vmatprep.subr.bf16.mxu1 %v7977_v1  ;;  %s6725_s9 = smov 25  }
 0x8c4   :  { %5923 = vmatmul.mubr.bf16.vlgmr.msra.gmra.mrb[64].mxu0 %v3835_v14 }
 0x8c5   :  { %v6320_v31 = vpop.eup %6319  ;;  %5943 = vmatmul.mubr.bf16.vlgmr.msra.gmra.mrb[72].mxu1 %v3947_v32  ;;  %5947 = vmatpush3.bf16.msra.mxu0 %v7977_v1  ;;  %v1454_v28 = vpop.permute.xlu0 %1453 }
 0x8c6   :  { %v6322_v2 = vpop.eup %6321  ;;  %v2331_v37 = vadd.f32 1.0, %v6320_v31  ;;  %5962 = vmatprep.mubr.bf16.mxu0 %v4058_v38  ;;  %5967 = vmatpush3.bf16.msra.mxu1 %v7977_v1  ;;  %v1463_v4 = vmul.f32 %v7646_v29, %v1454_v28  ;;  %v8231_v31 = vadd.f32 %v8144_v9, %v7186_v33 }
 0x8c7   :  { %5982 = vmatprep.mubr.bf16.mxu1 %v4170_v23  ;;  %5948 = vmatprep.subr.bf16.mxu0 %v7987_v3  ;;  %v6324_v49 = vpop.eup %6323  ;;  %v2443_v15 = vadd.f32 1.0, %v6322_v2  ;;  %v8235_v23 = vrot.slane %v7200_v45, %v7279_v42 }
 0x8c8   :  { %6335 = vrcp.f32 %v2331_v37  ;;  %1468 = vst.msk [vmem:[#allocation3 + $0x10] sm:$0xff] %vm1465_vm5, %v1463_v4  ;;  %5968 = vmatprep.subr.bf16.mxu1 %v7987_v3  ;;  %v6326_v8 = vpop.eup %6325  ;;  %v1456_v54 = vpop.permute.xlu1 %1455  ;;  %v2329_v30 = vadd.f32 1.0, %v6324_v49  ;;  %v4053_v49 = vadd.f32 %v8144_v9, %v7198_v41 }
 0x8c9   :  { %5949 = vmatpush3.bf16.msra.mxu0 %v7987_v3  ;;  %v1566_v55 = vpop.permute.xlu0 %1565  ;;  %v6328_v36 = vpop.eup %6327  ;;  %v2332_v25 = vadd.f32 1.0, %v6326_v8  ;;  %v1464_v27 = vmul.f32 %v7660_v7, %v1456_v54 }
 0x8ca   :  { %5969 = vmatpush3.bf16.msra.mxu1 %v7987_v3  ;;  %v1575_v56 = vmul.f32 %v7646_v29, %v1566_v55  ;;  %5950 = vmatprep.subr.bf16.mxu0 %v7998_v47  ;;  %v2444_v34 = vadd.f32 1.0, %v6328_v36  ;;  %v6330_v39 = vpop.eup %6329  ;;  %v4164_v36 = vadd.f32 %v8158_v48, %v7186_v33 }
 0x8cb   :  { %5970 = vmatprep.subr.bf16.mxu1 %v7998_v47  ;;  %6337 = vrcp.f32 %v2332_v25  ;;  %1469 = vst.msk [vmem:[#allocation3 + $0x18] sm:$0xff] %vm1465_vm5, %v1464_v27  ;;  %v6332_v21 = vpop.eup %6331  ;;  %v2330_v62 = vadd.f32 1.0, %v6330_v39  ;;  %v8249_v25 = vrot.slane %v7200_v45, %v7283_v46  ;;  %v4274_v45 = vadd.f32 %v8235_v23, %v7162_v26 }
 0x8cc   :  { %1580 = vst.msk [vmem:[#allocation3 + $0x10] sm:$0xff] %vm1577_vm6, %v1575_v56  ;;  %6339 = vrcp.f32 %v2443_v15  ;;  %v6334_v51 = vpop.eup %6333  ;;  %v2441_v24 = vadd.f32 1.0, %v6332_v21 }
 0x8cd   :  { %v1568_v17 = vpop.permute.xlu1 %1567  ;;  %5951 = vmatpush3.bf16.msra.mxu0 %v7998_v47  ;;  %v1450_v52 = vpop.permute.xlu0 %1449  ;;  %6341 = vrcp.f32 %v2444_v34  ;;  %v2442_v5 = vadd.f32 1.0, %v6334_v51  ;;  %v4387_v51 = vadd.f32 %v8249_v25, %v7170_v6 }
 0x8ce   :  { %v1576_v13 = vmul.f32 %v7660_v7, %v1568_v17  ;;  %5971 = vmatpush3.bf16.msra.mxu1 %v7998_v47  ;;  %v1461_v53 = vmul.f32 %v7656_v11, %v1450_v52  ;;  %5952 = vmatprep.subr.bf16.mxu0 %v8010_v43  ;;  %6343 = vrcp.f32 %v2329_v30  ;;  %v4165_v30 = vadd.f32 %v8158_v48, %v7198_v41 }
 0x8cf   :  { %5972 = vmatprep.subr.bf16.mxu1 %v8010_v43  ;;  %6345 = vrcp.f32 %v2330_v62  ;;  %v4275_v48 = vadd.f32 %v8235_v23, %v7170_v6  ;;  %v4386_v62 = vadd.f32 %v8249_v25, %v7162_v26 }
 0x8d0   :  { %1581 = vst.msk [vmem:[#allocation3 + $0x18] sm:$0xff] %vm1577_vm6, %v1576_v13  ;;  %6347 = vrcp.f32 %v2441_v24  ;;  %v4169_v26 = vmax.f32 %v4165_v30, 0.0 }
 0x8d1   :  { %1466 = vst.msk [vmem:[#allocation3] sm:$0xff] %vm1465_vm5, %v1461_v53  ;;  %v1452_v63 = vpop.permute.xlu1 %1451  ;;  %5953 = vmatpush3.bf16.msra.mxu0 %v8010_v43  ;;  %v1562_v44 = vpop.permute.xlu0 %1561  ;;  %6349 = vrcp.f32 %v2442_v5 }
 0x8d2   :  { %v6336_v58 = vpop.eup %6335  ;;  %v1462_v12 = vmul.f32 %v7694_v20, %v1452_v63  ;;  %5973 = vmatpush3.bf16.msra.mxu1 %v8010_v43  ;;  %v1573_v50 = vmul.f32 %v7656_v11, %v1562_v44  ;;  %5954 = vmatprep.subr.bf16.mxu0 %v8022_v18  ;;  %v4056_v63 = vmax.f32 %v8231_v31, 0.0  ;;  %v4057_v44 = vmax.f32 %v4053_v49, 0.0 }
 0x8d3   :  { %5974 = vmatprep.subr.bf16.mxu1 %v8022_v18  ;;  %2349 = vrot.lane.b32.xlu0 %v6336_v58, %s6712_s28  ;;  %v4168_v58 = vmax.f32 %v4164_v36, 0.0 }
 0x8d4   :  { %1467 = vst.msk [vmem:[#allocation3 + $0x8] sm:$0xff] %vm1465_vm5, %v1462_v12  ;;  %vm3033_vm5 = vcmask 154768  }
 0x8d5   :  { %1578 = vst.msk [vmem:[#allocation3] sm:$0xff] %vm1577_vm6, %v1573_v50  ;;  %v1564_v10 = vpop.permute.xlu1 %1563  ;;  %5955 = vmatpush3.bf16.msra.mxu0 %v8022_v18  ;;  %v6338_v0 = vpop.eup %6337 }
 0x8d6   :  { %v1574_v16 = vmul.f32 %v7694_v20, %v1564_v10  ;;  %5975 = vmatpush3.bf16.msra.mxu1 %v8022_v18  ;;  %v5684_v35 = vpop.f32.mrb[40].mxu0  ;;  %5956 = vmatprep.subr.bf16.mxu0 %v8033_v60  ;;  %v6340_v14 = vpop.eup %6339  ;;  %v4278_v10 = vmax.f32 %v4274_v45, 0.0 }
 0x8d7   :  { %2351 = vrot.lane.b32.xlu1 %v6338_v0, %s6712_s28  ;;  %v2535_v40 = vadd.f32 %v7930_v22, %v5684_v35  ;;  %v5704_v32 = vpop.f32.mrb[48].mxu1  ;;  %v2526_v38 = vpop.f32.mrb[41].mxu0  ;;  %5976 = vmatprep.subr.bf16.mxu1 %v8033_v60  ;;  %v4279_v0 = vmax.f32 %v4275_v48, 0.0  ;;  %v4391_v35 = vmax.f32 %v4387_v51, 0.0 }
 0x8d8   :  { %1579 = vst.msk [vmem:[#allocation3 + $0x8] sm:$0xff] %vm1577_vm6, %v1574_v16  ;;  %v2647_v28 = vadd.f32 %v7930_v22, %v5704_v32  ;;  %v2527_v2 = vadd.f32 %v7930_v22, %v2526_v38  ;;  %v2638_v37 = vpop.f32.mrb[49].mxu1  ;;  %2461 = vrot.lane.b32.xlu0 %v6340_v14, %s6713_s4  ;;  %v5685_v4 = vpop.f32.mrb[42].mxu0  ;;  %v4390_v16 = vmax.f32 %v4386_v62, 0.0  ;;  %v4171_v32 = vpack.c.bf16 %v4169_v26, %v4168_v58  ;;  %v8318_v26 = vld [vmem:[#allocation2] ss:$0 sm:$0xff] }
 0x8d9   :  { %v4896_v8 = vmul.f32 -1.442695, %v2535_v40  ;;  %v2538_v15 = vadd.f32 %v7930_v22, %v5685_v4  ;;  %v5705_v54 = vpop.f32.mrb[50].mxu1  ;;  %5957 = vmatpush3.bf16.msra.mxu0 %v8033_v60  ;;  %v2529_v55 = vpop.f32.mrb[43].mxu0  ;;  %v2639_v13 = vadd.f32 %v7930_v22, %v2638_v37  ;;  %v4059_v40 = vpack.c.bf16 %v4057_v44, %v4056_v63 }
 0x8da   :  { %v6342_v27 = vpop.eup %6341  ;;  %v4900_v56 = vmul.f32 -1.442695, %v2647_v28  ;;  %v4894_v34 = vmul.f32 -1.442695, %v2527_v2  ;;  %v2650_v39 = vadd.f32 %v7930_v22, %v5705_v54  ;;  %5977 = vmatpush3.bf16.msra.mxu1 %v8033_v60  ;;  %v2641_v9 = vpop.f32.mrb[51].mxu1  ;;  %5958 = vmatprep.subr.bf16.mxu0 %v8066_v19  ;;  %v2530_v21 = vadd.f32 %v7930_v22, %v2529_v55 }
 0x8db   :  { %v6344_v17 = vpop.eup %6343  ;;  %6351 = vpow2.f32 %v4896_v8  ;;  %v4897_v52 = vmul.f32 -1.442695, %v2538_v15  ;;  %2463 = vrot.lane.b32.xlu1 %v6342_v27, %s6713_s4  ;;  %5978 = vmatprep.subr.bf16.mxu1 %v8066_v19  ;;  %v2642_v5 = vadd.f32 %v7930_v22, %v2641_v9  ;;  %v4898_v6 = vmul.f32 -1.442695, %v2639_v13 }
 0x8dc   :  { %6353 = vpow2.f32 %v4900_v56  ;;  %v4901_v53 = vmul.f32 -1.442695, %v2650_v39  ;;  %2345 = vrot.lane.b32.xlu0 %v6344_v17, %s6712_s28  ;;  %v6346_v24 = vpop.eup %6345  ;;  %v4895_v50 = vmul.f32 -1.442695, %v2530_v21  ;;  %v4282_v38 = vpack.c.bf16 %v4279_v0, %v4278_v10 }
 0x8dd   :  { %5959 = vmatpush3.bf16.msra.mxu0 %v8066_v19  ;;  %6355 = vpow2.f32 %v4894_v34  ;;  %v6348_v12 = vpop.eup %6347  ;;  %v4899_v22 = vmul.f32 -1.442695, %v2642_v5  ;;  %v4394_v28 = vpack.c.bf16 %v4391_v35, %v4390_v16  ;;  %v4276_v16 = vadd.f32 %v8235_v23, %v7186_v33 }
 0x8de   :  { %5979 = vmatpush3.bf16.msra.mxu1 %v8066_v19  ;;  %5960 = vmatprep.subr.bf16.mxu0 %v8088_v57  ;;  %6357 = vpow2.f32 %v4897_v52  ;;  %v6350_v14 = vpop.eup %6349  ;;  %vm3145_vm6 = vcmask 162968  }
 0x8df   :  { %2347 = vrot.lane.b32.xlu1 %v6346_v24, %s6712_s28  ;;  %5980 = vmatprep.subr.bf16.mxu1 %v8088_v57  ;;  %6359 = vpow2.f32 %v4901_v53  ;;  %s6726_s28 = smov 26  }
 0x8e0   :  { %2457 = vrot.lane.b32.xlu0 %v6348_v12, %s6713_s4  ;;  %6361 = vpow2.f32 %v4895_v50 }
 0x8e1   :  { %5961 = vmatpush3.bf16.msra.mxu0 %v8088_v57  ;;  %6363 = vpow2.f32 %v4898_v6 }
 0x8e2   :  { %5981 = vmatpush3.bf16.msra.mxu1 %v8088_v57  ;;  %5986 = vmatprep.subr.bf16.mxu0 %v7977_v1  ;;  %6365 = vpow2.f32 %v4899_v22  ;;  %v4277_v22 = vadd.f32 %v8235_v23, %v7198_v41 }
 0x8e3   :  { %2459 = vrot.lane.b32.xlu1 %v6350_v14, %s6713_s4  ;;  %6006 = vmatprep.subr.bf16.mxu1 %v7977_v1  ;;  %s6727_s4 = smov 27  }
 0x8e4   :  { %5963 = vmatmul.mubr.bf16.vlgmr.msra.gmra.mrb[68].mxu0 %v4059_v40 }
 0x8e5   :  { %v6352_v31 = vpop.eup %6351  ;;  %5983 = vmatmul.mubr.bf16.vlgmr.msra.gmra.mrb[76].mxu1 %v4171_v32  ;;  %5987 = vmatpush3.bf16.msra.mxu0 %v7977_v1  ;;  %v1678_v2 = vpop.permute.xlu0 %1677 }
 0x8e6   :  { %v6354_v37 = vpop.eup %6353  ;;  %v2555_v4 = vadd.f32 1.0, %v6352_v31  ;;  %6002 = vmatprep.mubr.bf16.mxu0 %v4282_v38  ;;  %6007 = vmatpush3.bf16.msra.mxu1 %v7977_v1  ;;  %v1687_v49 = vmul.f32 %v7646_v29, %v1678_v2 }
 0x8e7   :  { %6022 = vmatprep.mubr.bf16.mxu1 %v4394_v28  ;;  %5988 = vmatprep.subr.bf16.mxu0 %v7987_v3  ;;  %v6356_v8 = vpop.eup %6355  ;;  %v2667_v54 = vadd.f32 1.0, %v6354_v37  ;;  %v4388_v37 = vadd.f32 %v8249_v25, %v7186_v33 }
 0x8e8   :  { %6367 = vrcp.f32 %v2555_v4  ;;  %1692 = vst.msk [vmem:[#allocation3 + $0x10] sm:$0xff] %vm1689_vm7, %v1687_v49  ;;  %6008 = vmatprep.subr.bf16.mxu1 %v7987_v3  ;;  %v6358_v15 = vpop.eup %6357  ;;  %v1680_v55 = vpop.permute.xlu1 %1679  ;;  %v2553_v30 = vadd.f32 1.0, %v6356_v8 }
 0x8e9   :  { %5989 = vmatpush3.bf16.msra.mxu0 %v7987_v3  ;;  %v1790_v36 = vpop.permute.xlu0 %1789  ;;  %v6360_v1 = vpop.eup %6359  ;;  %v2556_v27 = vadd.f32 1.0, %v6358_v15  ;;  %v1688_v56 = vmul.f32 %v7660_v7, %v1680_v55 }
 0x8ea   :  { %6009 = vmatpush3.bf16.msra.mxu1 %v7987_v3  ;;  %v1799_v34 = vmul.f32 %v7646_v29, %v1790_v36  ;;  %5990 = vmatprep.subr.bf16.mxu0 %v7998_v47  ;;  %v2668_v39 = vadd.f32 1.0, %v6360_v1  ;;  %v6362_v9 = vpop.eup %6361 }
 0x8eb   :  { %6010 = vmatprep.subr.bf16.mxu1 %v7998_v47  ;;  %6369 = vrcp.f32 %v2556_v27  ;;  %1693 = vst.msk [vmem:[#allocation3 + $0x18] sm:$0xff] %vm1689_vm7, %v1688_v56  ;;  %v6364_v3 = vpop.eup %6363  ;;  %v2554_v13 = vadd.f32 1.0, %v6362_v9  ;;  %v4281_v56 = vmax.f32 %v4277_v22, 0.0  ;;  %v4392_v9 = vmax.f32 %v4388_v37, 0.0 }
 0x8ec   :  { %1804 = vst.msk [vmem:[#allocation3 + $0x10] sm:$0xff] %vm1801_vm8, %v1799_v34  ;;  %6371 = vrcp.f32 %v2667_v54  ;;  %v6366_v53 = vpop.eup %6365  ;;  %v2665_v48 = vadd.f32 1.0, %v6364_v3  ;;  %v4389_v54 = vadd.f32 %v8249_v25, %v7198_v41  ;;  %v4280_v25 = vmax.f32 %v4276_v16, 0.0 }
 0x8ed   :  { %v1792_v17 = vpop.permute.xlu1 %1791  ;;  %5991 = vmatpush3.bf16.msra.mxu0 %v7998_v47  ;;  %v1674_v52 = vpop.permute.xlu0 %1673  ;;  %6373 = vrcp.f32 %v2668_v39  ;;  %v2666_v44 = vadd.f32 1.0, %v6366_v53 }
 0x8ee   :  { %v1800_v21 = vmul.f32 %v7660_v7, %v1792_v17  ;;  %6011 = vmatpush3.bf16.msra.mxu1 %v7998_v47  ;;  %v1685_v45 = vmul.f32 %v7656_v11, %v1674_v52  ;;  %5992 = vmatprep.subr.bf16.mxu0 %v8010_v43  ;;  %6375 = vrcp.f32 %v2553_v30  ;;  %v4393_v30 = vmax.f32 %v4389_v54, 0.0  ;;  %v4494_v17 = vld [vmem:[%s8877_s13] sm:$0xf]  ;;  %s6716_s13 = smov 16  }
 0x8ef   :  { %6012 = vmatprep.subr.bf16.mxu1 %v8010_v43  ;;  %6377 = vrcp.f32 %v2554_v13  ;;  %v4283_v3 = vpack.c.bf16 %v4281_v56, %v4280_v25 }
 0x8f0   :  { %1805 = vst.msk [vmem:[#allocation3 + $0x18] sm:$0xff] %vm1801_vm8, %v1800_v21  ;;  %6379 = vrcp.f32 %v2665_v48  ;;  %v4500_v21 = vsel %vm776_vm2, %v4494_v17, 0 }
 0x8f1   :  { %1690 = vst.msk [vmem:[#allocation3] sm:$0xff] %vm1689_vm7, %v1685_v45  ;;  %v1676_v62 = vpop.permute.xlu1 %1675  ;;  %5993 = vmatpush3.bf16.msra.mxu0 %v8010_v43  ;;  %v1786_v51 = vpop.permute.xlu0 %1785  ;;  %6381 = vrcp.f32 %v2666_v44  ;;  %v4395_v45 = vpack.c.bf16 %v4393_v30, %v4392_v9 }
 0x8f2   :  { %v6368_v47 = vpop.eup %6367  ;;  %v1686_v24 = vmul.f32 %v7694_v20, %v1676_v62  ;;  %6013 = vmatpush3.bf16.msra.mxu1 %v8010_v43  ;;  %v1797_v63 = vmul.f32 %v7656_v11, %v1786_v51  ;;  %5994 = vmatprep.subr.bf16.mxu0 %v8022_v18 }
 0x8f3   :  { %6014 = vmatprep.subr.bf16.mxu1 %v8022_v18  ;;  %2573 = vrot.lane.b32.xlu0 %v6368_v47, %s6714_s29 }
 0x8f4   :  { %1691 = vst.msk [vmem:[#allocation3 + $0x8] sm:$0xff] %vm1689_vm7, %v1686_v24  ;;  %vm3257_vm7 = vcmask 171168  }
 0x8f5   :  { %1802 = vst.msk [vmem:[#allocation3] sm:$0xff] %vm1801_vm8, %v1797_v63  ;;  %v1788_v58 = vpop.permute.xlu1 %1787  ;;  %5995 = vmatpush3.bf16.msra.mxu0 %v8022_v18  ;;  %v6370_v43 = vpop.eup %6369 }
 0x8f6   :  { %v1798_v12 = vmul.f32 %v7694_v20, %v1788_v58  ;;  %6015 = vmatpush3.bf16.msra.mxu1 %v8022_v18  ;;  %v5724_v50 = vpop.f32.mrb[44].mxu0  ;;  %5996 = vmatprep.subr.bf16.mxu0 %v8033_v60  ;;  %v6372_v5 = vpop.eup %6371 }
 0x8f7   :  { %2575 = vrot.lane.b32.xlu1 %v6370_v43, %s6714_s29  ;;  %v2759_v6 = vadd.f32 %v8318_v26, %v5724_v50  ;;  %v5744_v10 = vpop.f32.mrb[52].mxu1  ;;  %v2750_v0 = vpop.f32.mrb[45].mxu0  ;;  %6016 = vmatprep.subr.bf16.mxu1 %v8033_v60 }
 0x8f8   :  { %1803 = vst.msk [vmem:[#allocation3 + $0x8] sm:$0xff] %vm1801_vm8, %v1798_v12  ;;  %v2871_v18 = vadd.f32 %v8318_v26, %v5744_v10  ;;  %v2751_v35 = vadd.f32 %v8318_v26, %v2750_v0  ;;  %v2862_v14 = vpop.f32.mrb[53].mxu1  ;;  %2685 = vrot.lane.b32.xlu0 %v6372_v5, %s6715_s5  ;;  %v5725_v40 = vpop.f32.mrb[46].mxu0  ;;  %vm3369_vm8 = vcmask 179368  }
 0x8f9   :  { %v4904_v32 = vmul.f32 -1.442695, %v2759_v6  ;;  %v2863_v38 = vadd.f32 %v8318_v26, %v2862_v14  ;;  %v2762_v31 = vadd.f32 %v8318_v26, %v5725_v40  ;;  %v5745_v28 = vpop.f32.mrb[54].mxu1  ;;  %5997 = vmatpush3.bf16.msra.mxu0 %v8033_v60  ;;  %v2753_v2 = vpop.f32.mrb[47].mxu0 }
 0x8fa   :  { %v6374_v4 = vpop.eup %6373  ;;  %v4908_v49 = vmul.f32 -1.442695, %v2871_v18  ;;  %v4902_v8 = vmul.f32 -1.442695, %v2751_v35  ;;  %v2874_v15 = vadd.f32 %v8318_v26, %v5745_v28  ;;  %6017 = vmatpush3.bf16.msra.mxu1 %v8033_v60  ;;  %v2865_v23 = vpop.f32.mrb[55].mxu1  ;;  %5998 = vmatprep.subr.bf16.mxu0 %v8066_v19  ;;  %v2754_v60 = vadd.f32 %v8318_v26, %v2753_v2 }
 0x8fb   :  { %v6376_v55 = vpop.eup %6375  ;;  %6383 = vpow2.f32 %v4904_v32  ;;  %v4906_v36 = vmul.f32 -1.442695, %v2863_v38  ;;  %v4905_v1 = vmul.f32 -1.442695, %v2762_v31  ;;  %v2866_v27 = vadd.f32 %v8318_v26, %v2865_v23  ;;  %2687 = vrot.lane.b32.xlu1 %v6374_v4, %s6715_s5  ;;  %6018 = vmatprep.subr.bf16.mxu1 %v8066_v19 }
 0x8fc   :  { %6385 = vpow2.f32 %v4908_v49  ;;  %v4909_v33 = vmul.f32 -1.442695, %v2874_v15  ;;  %2569 = vrot.lane.b32.xlu0 %v6376_v55, %s6714_s29  ;;  %v6378_v41 = vpop.eup %6377  ;;  %v4903_v52 = vmul.f32 -1.442695, %v2754_v60 }
 0x8fd   :  { %6387 = vpow2.f32 %v4902_v8  ;;  %5999 = vmatpush3.bf16.msra.mxu0 %v8066_v19  ;;  %v6380_v34 = vpop.eup %6379  ;;  %v4907_v39 = vmul.f32 -1.442695, %v2866_v27 }
 0x8fe   :  { %6389 = vpow2.f32 %v4906_v36  ;;  %6019 = vmatpush3.bf16.msra.mxu1 %v8066_v19  ;;  %6000 = vmatprep.subr.bf16.mxu0 %v8088_v57  ;;  %v6382_v19 = vpop.eup %6381 }
 0x8ff   :  { %6391 = vpow2.f32 %v4905_v1  ;;  %2571 = vrot.lane.b32.xlu1 %v6378_v41, %s6714_s29  ;;  %6020 = vmatprep.subr.bf16.mxu1 %v8088_v57  ;;  %s6728_s29 = smov 28  }
 0x900   :  { %6393 = vpow2.f32 %v4909_v33  ;;  %2681 = vrot.lane.b32.xlu0 %v6380_v34, %s6715_s5 }
 0x901   :  { %6001 = vmatpush3.bf16.msra.mxu0 %v8088_v57  ;;  %6395 = vpow2.f32 %v4907_v39 }
 0x902   :  { %6021 = vmatpush3.bf16.msra.mxu1 %v8088_v57  ;;  %6048 = vmatprep.subr.msk.bf16.mxu0 %vm776_vm2, %v4494_v17  ;;  %6397 = vpow2.f32 %v4903_v52  ;;  %vm2025_vm2 = vcmask 80968  }
 0x903   :  { %2683 = vrot.lane.b32.xlu1 %v6382_v19, %s6715_s5  ;;  %s6729_s5 = smov 29  }
 0x904   :  { %6003 = vmatmul.mubr.bf16.vlgmr.msra.gmra.mrb[72].mxu0 %v4283_v3 }
 0x905   :  { %v6384_v13 = vpop.eup %6383  ;;  %6023 = vmatmul.mubr.bf16.vlgmr.msra.gmra.mrb[80].mxu1 %v4395_v45  ;;  %6027 = vmatpush3.bf16.msra.mxu0 %v4500_v21  ;;  %v1902_v53 = vpop.permute.xlu0 %1901 }
 0x906   :  { %v6386_v48 = vpop.eup %6385  ;;  %v2779_v62 = vadd.f32 1.0, %v6384_v13  ;;  %6028 = vmatprep.mubr.msk.bf16.mxu0 %vm731_vm11, %v7065_v59  ;;  %v2014_v57 = vpop.permute.xlu1 %2013  ;;  %v1911_v51 = vmul.f32 %v7646_v29, %v1902_v53 }
 0x907   :  { %v6388_v47 = vpop.eup %6387  ;;  %v2891_v24 = vadd.f32 1.0, %v6386_v48  ;;  %v2023_v63 = vmul.f32 %v7646_v29, %v2014_v57 }
 0x908   :  { %v6390_v44 = vpop.eup %6389  ;;  %6399 = vrcp.f32 %v2779_v62  ;;  %1916 = vst.msk [vmem:[#allocation3 + $0x10] sm:$0xff] %vm1913_vm9, %v1911_v51  ;;  %v2777_v43 = vadd.f32 1.0, %v6388_v47 }
 0x909   :  { %v6392_v58 = vpop.eup %6391  ;;  %6401 = vrcp.f32 %v2891_v24  ;;  %v1898_v12 = vpop.permute.xlu0 %1897  ;;  %2028 = vst.msk [vmem:[#allocation3 + $0x10] sm:$0xff] %vm2025_vm2, %v2023_v63  ;;  %v2889_v18 = vadd.f32 1.0, %v6390_v44 }
 0x90a   :  { %v6394_v50 = vpop.eup %6393  ;;  %v2780_v59 = vadd.f32 1.0, %v6392_v58  ;;  %v2010_v5 = vpop.permute.xlu1 %2009  ;;  %v1909_v6 = vmul.f32 %v7656_v11, %v1898_v12 }
 0x90b   :  { %v2021_v10 = vmul.f32 %v7656_v11, %v2010_v5  ;;  %v2892_v0 = vadd.f32 1.0, %v6394_v50  ;;  %v6396_v16 = vpop.eup %6395 }
 0x90c   :  { %6403 = vrcp.f32 %v2780_v59  ;;  %1914 = vst.msk [vmem:[#allocation3] sm:$0xff] %vm1913_vm9, %v1909_v6  ;;  %6029 = vmatmul.mubr.msk.bf16.vlgmr.msra.gmra.mrb[76].mxu0 %vm731_vm11, %v7101_v61  ;;  %v6398_v35 = vpop.eup %6397  ;;  %v2890_v22 = vadd.f32 1.0, %v6396_v16  ;;  %vm2249_vm11 = vcmask 97368  }
 0x90d   :  { %6405 = vrcp.f32 %v2777_v43  ;;  %2026 = vst.msk [vmem:[#allocation3] sm:$0xff] %vm2025_vm2, %v2021_v10  ;;  %v2778_v32 = vadd.f32 1.0, %v6398_v35  ;;  %v2012_v2 = vpop.permute.xlu0 %2011 }
 0x90e   :  { %v1904_v14 = vpop.permute.xlu1 %1903  ;;  %6407 = vrcp.f32 %v2892_v0  ;;  %v2022_v36 = vmul.f32 %v7694_v20, %v2012_v2 }
 0x90f   :  { %v1912_v40 = vmul.f32 %v7660_v7, %v1904_v14  ;;  %6409 = vrcp.f32 %v2889_v18 }
 0x910   :  { %6411 = vrcp.f32 %v2890_v22 }
 0x911   :  { %1917 = vst.msk [vmem:[#allocation3 + $0x18] sm:$0xff] %vm1913_vm9, %v1912_v40  ;;  %6413 = vrcp.f32 %v2778_v32 }
 0x912   :  { %v6400_v38 = vpop.eup %6399  ;;  %v2016_v31 = vpop.permute.xlu1 %2015 }
 0x913   :  { %v6402_v28 = vpop.eup %6401  ;;  %v2024_v61 = vmul.f32 %v7660_v7, %v2016_v31  ;;  %2797 = vrot.lane.b32.xlu1 %v6400_v38, %s6716_s13 }
 0x914   :  { %2909 = vrot.lane.b32.xlu0 %v6402_v28, %s6717_s19 }
 0x915   :  { %2029 = vst.msk [vmem:[#allocation3 + $0x18] sm:$0xff] %vm2025_vm2, %v2024_v61 }
 0x916   :  { %v6404_v37 = vpop.eup %6403  ;;  %v1900_v4 = vpop.permute.xlu1 %1899 }
 0x917   :  { %v5764_v49 = vpop.f32.mrb[48].mxu0  ;;  %v6406_v8 = vpop.eup %6405  ;;  %v1910_v15 = vmul.f32 %v7694_v20, %v1900_v4  ;;  %2799 = vrot.lane.b32.xlu1 %v6404_v37, %s6716_s13 }
 0x918   :  { %v2983_v23 = vadd.f32 %v8318_v26, %v5764_v49  ;;  %v5784_v54 = vpop.f32.mrb[56].mxu1  ;;  %v2974_v55 = vpop.f32.mrb[49].mxu0  ;;  %2793 = vrot.lane.b32.xlu0 %v6406_v8, %s6716_s13 }
 0x919   :  { %v3095_v1 = vadd.f32 %v8318_v26, %v5784_v54  ;;  %v2975_v27 = vadd.f32 %v8318_v26, %v2974_v55  ;;  %v3086_v33 = vpop.f32.mrb[57].mxu1  ;;  %v5765_v60 = vpop.f32.mrb[50].mxu0  ;;  %1915 = vst.msk [vmem:[#allocation3 + $0x8] sm:$0xff] %vm1913_vm9, %v1910_v15  ;;  %vm3593_vm9 = vcmask 195768  }
 0x91a   :  { %v4912_v41 = vmul.f32 -1.442695, %v2983_v23  ;;  %v2986_v25 = vadd.f32 %v8318_v26, %v5765_v60  ;;  %v5785_v56 = vpop.f32.mrb[58].mxu1  ;;  %v2977_v34 = vpop.f32.mrb[51].mxu0  ;;  %2027 = vst.msk [vmem:[#allocation3 + $0x8] sm:$0xff] %vm2025_vm2, %v2022_v36  ;;  %v3087_v17 = vadd.f32 %v8318_v26, %v3086_v33  ;;  %vm3705_vm2 = vcmask 203968  }
 0x91b   :  { %v6408_v39 = vpop.eup %6407  ;;  %v4916_v9 = vmul.f32 -1.442695, %v3095_v1  ;;  %v4910_v30 = vmul.f32 -1.442695, %v2975_v27  ;;  %v3098_v52 = vadd.f32 %v8318_v26, %v5785_v56  ;;  %v3089_v19 = vpop.f32.mrb[59].mxu1  ;;  %v2978_v45 = vadd.f32 %v8318_v26, %v2977_v34 }
 0x91c   :  { %v6410_v3 = vpop.eup %6409  ;;  %6415 = vpow2.f32 %v4912_v41  ;;  %v4913_v21 = vmul.f32 -1.442695, %v2986_v25  ;;  %2911 = vrot.lane.b32.xlu1 %v6408_v39, %s6717_s19  ;;  %v4914_v48 = vmul.f32 -1.442695, %v3087_v17  ;;  %v3090_v51 = vadd.f32 %v8318_v26, %v3089_v19 }
 0x91d   :  { %6417 = vpow2.f32 %v4916_v9  ;;  %v4917_v13 = vmul.f32 -1.442695, %v3098_v52  ;;  %2905 = vrot.lane.b32.xlu0 %v6410_v3, %s6717_s19  ;;  %v6412_v53 = vpop.eup %6411  ;;  %v4911_v57 = vmul.f32 -1.442695, %v2978_v45 }
 0x91e   :  { %6419 = vpow2.f32 %v4910_v30  ;;  %v6414_v62 = vpop.eup %6413  ;;  %v4915_v47 = vmul.f32 -1.442695, %v3090_v51 }
 0x91f   :  { %6421 = vpow2.f32 %v4913_v21 }
 0x920   :  { %2907 = vrot.lane.b32.xlu1 %v6412_v53, %s6717_s19  ;;  %6423 = vpow2.f32 %v4917_v13 }
 0x921   :  { %2795 = vrot.lane.b32.xlu0 %v6414_v62, %s6716_s13  ;;  %6425 = vpow2.f32 %v4914_v48  ;;  %s6732_s13 = smov [#allocation3]  }
 0x922   :  { %6427 = vpow2.f32 %v4911_v57  ;;  %s4788_s19 = sshll.u32 %s6732_s13, 4  ;;  %s4789_s19 = int_to_ptr.vmem [resolvable:$true] %s4788_s19 }
 0x923   :  { %6429 = vpow2.f32 %v4915_v47  ;;  %p6680_p1 = scmp.lt.s32.totalorder %s4789_s19, %s4789_s19 }
 0x925   :  { %v2126_v63 = vpop.permute.xlu0 %2125 }
 0x926   :  { %v6416_v24 = vpop.eup %6415  ;;  %v2135_v43 = vmul.f32 %v7646_v29, %v2126_v63 }
 0x927   :  { %v6418_v44 = vpop.eup %6417  ;;  %v3003_v58 = vadd.f32 1.0, %v6416_v24 }
 0x928   :  { %v3115_v12 = vadd.f32 1.0, %v6418_v44  ;;  %v6420_v50 = vpop.eup %6419  ;;  %2140 = vst.msk [vmem:[#allocation3 + $0x10] sm:$0xff] %vm2137_vm10, %v2135_v43 }
 0x929   :  { %6431 = vrcp.f32 %v3003_v58  ;;  %v6422_v59 = vpop.eup %6421  ;;  %v2128_v5 = vpop.permute.xlu1 %2127  ;;  %v3001_v18 = vadd.f32 1.0, %v6420_v50 }
 0x92a   :  { %v6424_v6 = vpop.eup %6423  ;;  %v3004_v10 = vadd.f32 1.0, %v6422_v59  ;;  %v2136_v0 = vmul.f32 %v7660_v7, %v2128_v5  ;;  %v2238_v16 = vpop.permute.xlu0 %2237  ;;  %6433 = vrcp.f32 %v3115_v12 }
 0x92b   :  { %v2247_v35 = vmul.f32 %v7646_v29, %v2238_v16  ;;  %v6426_v14 = vpop.eup %6425  ;;  %v3116_v40 = vadd.f32 1.0, %v6424_v6 }
 0x92c   :  { %6435 = vrcp.f32 %v3004_v10  ;;  %2141 = vst.msk [vmem:[#allocation3 + $0x18] sm:$0xff] %vm2137_vm10, %v2136_v0  ;;  %v6428_v22 = vpop.eup %6427  ;;  %v3113_v28 = vadd.f32 1.0, %v6426_v14 }
 0x92d   :  { %2252 = vst.msk [vmem:[#allocation3 + $0x10] sm:$0xff] %vm2249_vm11, %v2247_v35  ;;  %v2240_v32 = vpop.permute.xlu1 %2239  ;;  %6437 = vrcp.f32 %v3001_v18  ;;  %v3002_v2 = vadd.f32 1.0, %v6428_v22  ;;  %v6430_v37 = vpop.eup %6429 }
 0x92e   :  { %v2248_v38 = vmul.f32 %v7660_v7, %v2240_v32  ;;  %v2122_v31 = vpop.permute.xlu0 %2121  ;;  %6439 = vrcp.f32 %v3116_v40  ;;  %v3114_v54 = vadd.f32 1.0, %v6430_v37 }
 0x92f   :  { %v2133_v61 = vmul.f32 %v7656_v11, %v2122_v31  ;;  %6441 = vrcp.f32 %v3113_v28 }
 0x930   :  { %2253 = vst.msk [vmem:[#allocation3 + $0x18] sm:$0xff] %vm2249_vm11, %v2248_v38  ;;  %6443 = vrcp.f32 %v3002_v2 }
 0x931   :  { %2138 = vst.msk [vmem:[#allocation3] sm:$0xff] %vm2137_vm10, %v2133_v61  ;;  %v2124_v4 = vpop.permute.xlu1 %2123  ;;  %6445 = vrcp.f32 %v3114_v54 }
 0x932   :  { %v2134_v8 = vmul.f32 %v7694_v20, %v2124_v4  ;;  %v2234_v15 = vpop.permute.xlu0 %2233 }
 0x933   :  { %v6432_v49 = vpop.eup %6431  ;;  %v2245_v23 = vmul.f32 %v7656_v11, %v2234_v15 }
 0x934   :  { %3021 = vrot.lane.b32.xlu0 %v6432_v49, %s6718_s6  ;;  %2139 = vst.msk [vmem:[#allocation3 + $0x8] sm:$0xff] %vm2137_vm10, %v2134_v8  ;;  %v6434_v55 = vpop.eup %6433  ;;  %vm3929_vm10 = vcmask 220368  }
 0x935   :  { %2250 = vst.msk [vmem:[#allocation3] sm:$0xff] %vm2249_vm11, %v2245_v23  ;;  %v2236_v36 = vpop.permute.xlu1 %2235 }
 0x936   :  { %v6436_v1 = vpop.eup %6435  ;;  %v2246_v27 = vmul.f32 %v7694_v20, %v2236_v36  ;;  %v5804_v33 = vpop.f32.mrb[52].mxu0 }
 0x937   :  { %3023 = vrot.lane.b32.xlu1 %v6436_v1, %s6718_s6  ;;  %v3207_v60 = vadd.f32 %v8318_v26, %v5804_v33  ;;  %v8413_v41 = vpop.f32.mrb[60].mxu1  ;;  %v3198_v25 = vpop.f32.mrb[53].mxu0 }
 0x938   :  { %3133 = vrot.lane.b32.xlu0 %v6434_v55, %s6719_s1  ;;  %2251 = vst.msk [vmem:[#allocation3 + $0x8] sm:$0xff] %vm2249_vm11, %v2246_v27  ;;  %v3199_v56 = vadd.f32 %v8318_v26, %v3198_v25  ;;  %v8418_v34 = vpop.f32.mrb[61].mxu1  ;;  %v5805_v39 = vpop.f32.mrb[54].mxu0  ;;  %vm4041_vm11 = vcmask 228568  }
 0x939   :  { %v6438_v9 = vpop.eup %6437  ;;  %v4920_v30 = vmul.f32 -1.442695, %v3207_v60  ;;  %v3210_v17 = vadd.f32 %v8318_v26, %v5805_v39  ;;  %v5825_v52 = vpop.f32.mrb[62].mxu1 }
 0x93a   :  { %v3201_v19 = vpop.f32.mrb[55].mxu0  ;;  %v6440_v3 = vpop.eup %6439  ;;  %v4918_v21 = vmul.f32 -1.442695, %v3199_v56  ;;  %v3322_v47 = vadd.f32 %v8318_v26, %v5825_v52 }
 0x93b   :  { %v3202_v45 = vadd.f32 %v8318_v26, %v3201_v19  ;;  %v3313_v13 = vpop.f32.mrb[63].mxu1  ;;  %6447 = vpow2.f32 %v4920_v30  ;;  %v4921_v53 = vmul.f32 -1.442695, %v3210_v17  ;;  %3135 = vrot.lane.b32.xlu1 %v6440_v3, %s6719_s1  ;;  %v6442_v62 = vpop.eup %6441 }
 0x93c   :  { %v3314_v48 = vadd.f32 %v8318_v26, %v3313_v13  ;;  %3017 = vrot.lane.b32.xlu0 %v6438_v9, %s6718_s6  ;;  %6449 = vpow2.f32 %v4918_v21  ;;  %v6444_v51 = vpop.eup %6443  ;;  %v4925_v44 = vmul.f32 -1.442695, %v3322_v47 }
 0x93d   :  { %v4919_v57 = vmul.f32 -1.442695, %v3202_v45  ;;  %6451 = vpow2.f32 %v4921_v53  ;;  %v6446_v63 = vpop.eup %6445 }
 0x93e   :  { %v4923_v24 = vmul.f32 -1.442695, %v3314_v48 }
 0x93f   :  { %3019 = vrot.lane.b32.xlu1 %v6444_v51, %s6718_s6  ;;  %6453 = vpow2.f32 %v4919_v57  ;;  %s6675_s6 = scalar_lea.vmem %s4789_s19, 512 }
 0x940   :  { %3129 = vrot.lane.b32.xlu0 %v6442_v62, %s6719_s1  ;;  %6455 = vpow2.f32 %v4923_v24  ;;  %v6103_v24 = vld [vmem:[%s8878_s14] sm:$0xff]   ;;  %p6676_p0 = scmp.ne.s32.totalorder %s4789_s19, %s6675_s6  ;;  %p6681_p2 = scmp.lt.s32.totalorder %s6675_s6, %s6675_s6 }
 0x941   :  { %6457 = vpow2.f32 %v4925_v44  ;;  %6032 = vmatprep.subr.bf16.mxu1 %v6103_v24 }
 0x942   :  { %6033 = vmatpush3.bf16.msra.mxu1 %v6103_v24  ;;  %p6682_p3 = por %p6681_p2, %p6680_p1 }
 0x943   :  { %3131 = vrot.lane.b32.xlu1 %v6446_v63, %s6719_s1  ;;  %v6104_v63 = vld [vmem:[%s8878_s14 + $0x8] sm:$0xff]  }
 0x944   :  { %6034 = vmatprep.subr.bf16.mxu1 %v6104_v63  ;;  %p6683_p4 = pnand %p6682_p3, %p6676_p0 }
 0x945   :  { %v6448_v58 = vpop.eup %6447  ;;  %v2350_v43 = vpop.permute.xlu0 %2349 }
 0x946   :  { %v3227_v12 = vadd.f32 1.0, %v6448_v58  ;;  %v2359_v50 = vmul.f32 %v7646_v29, %v2350_v43  ;;  %v6450_v59 = vpop.eup %6449  ;;  %6035 = vmatpush3.bf16.msra.mxu1 %v6104_v63 }
 0x947   :  { %v3225_v5 = vadd.f32 1.0, %v6450_v59  ;;  %v6452_v6 = vpop.eup %6451 }
 0x948   :  { %6459 = vrcp.f32 %v3227_v12  ;;  %2364 = vst.msk [vmem:[#allocation3 + $0x10] sm:$0xff] %vm2361_vm12, %v2359_v50  ;;  %v3228_v0 = vadd.f32 1.0, %v6452_v6 }
 0x949   :  { %v2352_v10 = vpop.permute.xlu1 %2351  ;;  %v6454_v35 = vpop.eup %6453  ;;  %6461 = vrcp.f32 %v3225_v5 }
 0x94a   :  { %v2360_v16 = vmul.f32 %v7660_v7, %v2352_v10  ;;  %v2462_v18 = vpop.permute.xlu0 %2461  ;;  %6463 = vrcp.f32 %v3228_v0  ;;  %v3226_v40 = vadd.f32 1.0, %v6454_v35  ;;  %v6456_v22 = vpop.eup %6455 }
 0x94b   :  { %v2471_v14 = vmul.f32 %v7646_v29, %v2462_v18  ;;  %v3338_v61 = vadd.f32 1.0, %v6456_v22  ;;  %v6458_v2 = vpop.eup %6457 }
 0x94c   :  { %2365 = vst.msk [vmem:[#allocation3 + $0x18] sm:$0xff] %vm2361_vm12, %v2360_v16  ;;  %6465 = vrcp.f32 %v3226_v40  ;;  %v3340_v23 = vadd.f32 1.0, %v6458_v2 }
 0x94d   :  { %2476 = vst.msk [vmem:[#allocation3 + $0x10] sm:$0xff] %vm2473_vm13, %v2471_v14  ;;  %v2464_v32 = vpop.permute.xlu1 %2463  ;;  %6467 = vrcp.f32 %v3338_v61 }
 0x94e   :  { %v2472_v38 = vmul.f32 %v7660_v7, %v2464_v32  ;;  %v2346_v31 = vpop.permute.xlu0 %2345  ;;  %6469 = vrcp.f32 %v3340_v23 }
 0x94f   :  { %v2357_v28 = vmul.f32 %v7656_v11, %v2346_v31 }
 0x950   :  { %2477 = vst.msk [vmem:[#allocation3 + $0x18] sm:$0xff] %vm2473_vm13, %v2472_v38 }
 0x951   :  { %2362 = vst.msk [vmem:[#allocation3] sm:$0xff] %vm2361_vm12, %v2357_v28  ;;  %v2348_v37 = vpop.permute.xlu1 %2347 }
 0x952   :  { %v6460_v4 = vpop.eup %6459  ;;  %v2358_v49 = vmul.f32 %v7694_v20, %v2348_v37  ;;  %v2458_v8 = vpop.permute.xlu0 %2457 }
 0x953   :  { %v2469_v15 = vmul.f32 %v7656_v11, %v2458_v8  ;;  %3245 = vrot.lane.b32.xlu0 %v6460_v4, %s6720_s20  ;;  %v6462_v54 = vpop.eup %6461 }
 0x954   :  { %2363 = vst.msk [vmem:[#allocation3 + $0x8] sm:$0xff] %vm2361_vm12, %v2358_v49  ;;  %v6464_v36 = vpop.eup %6463  ;;  %vm4153_vm12 = vcmask 236768  }
 0x955   :  { %2474 = vst.msk [vmem:[#allocation3] sm:$0xff] %vm2473_vm13, %v2469_v15  ;;  %v2460_v55 = vpop.permute.xlu1 %2459  ;;  %3247 = vrot.lane.b32.xlu1 %v6464_v36, %s6720_s20 }
 0x956   :  { %v2470_v1 = vmul.f32 %v7694_v20, %v2460_v55  ;;  %v8444_v27 = vpop.f32.mrb[56].mxu0  ;;  %v6466_v30 = vpop.eup %6465 }
 0x957   :  { %v8446_v33 = vpop.f32.mrb[64].mxu1  ;;  %v8448_v60 = vpop.f32.mrb[57].mxu0  ;;  %3241 = vrot.lane.b32.xlu0 %v6462_v54, %s6720_s20 }
 0x958   :  { %2475 = vst.msk [vmem:[#allocation3 + $0x8] sm:$0xff] %vm2473_vm13, %v2470_v1  ;;  %v8451_v25 = vpop.f32.mrb[65].mxu1  ;;  %v8453_v56 = vpop.f32.mrb[58].mxu0  ;;  %vm4265_vm13 = vcmask 244968  }
 0x959   :  { %v8455_v39 = vpop.f32.mrb[66].mxu1  ;;  %v8457_v9 = vpop.f32.mrb[59].mxu0  ;;  %3243 = vrot.lane.b32.xlu1 %v6466_v30, %s6720_s20 }
 0x95a   :  { %v8459_v17 = vpop.f32.mrb[67].mxu1  ;;  %v6468_v52 = vpop.eup %6467 }
 0x95b   :  { %v6470_v19 = vpop.eup %6469 }
 0x95d   :  { %3355 = vrot.lane.b32.xlu1 %v6468_v52, %s6721_s21 }
 0x961   :  { %3359 = vrot.lane.b32.xlu1 %v6470_v19, %s6721_s21 }
 0x965   :  { %v2574_v3 = vpop.permute.xlu0 %2573 }
 0x966   :  { %v2583_v21 = vmul.f32 %v7646_v29, %v2574_v3 }
 0x968   :  { %2588 = vst.msk [vmem:[#allocation3 + $0x10] sm:$0xff] %vm2585_vm14, %v2583_v21 }
 0x969   :  { %v2576_v45 = vpop.permute.xlu1 %2575 }
 0x96a   :  { %v2584_v13 = vmul.f32 %v7660_v7, %v2576_v45  ;;  %v2686_v53 = vpop.permute.xlu0 %2685 }
 0x96b   :  { %v2695_v48 = vmul.f32 %v7646_v29, %v2686_v53 }
 0x96c   :  { %2589 = vst.msk [vmem:[#allocation3 + $0x18] sm:$0xff] %vm2585_vm14, %v2584_v13 }
 0x96d   :  { %2700 = vst.msk [vmem:[#allocation3 + $0x10] sm:$0xff] %vm2697_vm15, %v2695_v48  ;;  %v2688_v62 = vpop.permute.xlu1 %2687 }
 0x96e   :  { %v2696_v57 = vmul.f32 %v7660_v7, %v2688_v62  ;;  %v2570_v51 = vpop.permute.xlu0 %2569 }
 0x96f   :  { %v2581_v47 = vmul.f32 %v7656_v11, %v2570_v51 }
 0x970   :  { %2701 = vst.msk [vmem:[#allocation3 + $0x18] sm:$0xff] %vm2697_vm15, %v2696_v57 }
 0x971   :  { %2586 = vst.msk [vmem:[#allocation3] sm:$0xff] %vm2585_vm14, %v2581_v47  ;;  %v2572_v44 = vpop.permute.xlu1 %2571 }
 0x972   :  { %v2582_v58 = vmul.f32 %v7694_v20, %v2572_v44  ;;  %v2682_v43 = vpop.permute.xlu0 %2681 }
 0x973   :  { %v2693_v12 = vmul.f32 %v7656_v11, %v2682_v43 }
 0x974   :  { %2587 = vst.msk [vmem:[#allocation3 + $0x8] sm:$0xff] %vm2585_vm14, %v2582_v58  ;;  %vm4377_vm14 = vcmask 253168  }
 0x975   :  { %2698 = vst.msk [vmem:[#allocation3] sm:$0xff] %vm2697_vm15, %v2693_v12  ;;  %v2684_v50 = vpop.permute.xlu1 %2683 }
 0x976   :  { %v2694_v59 = vmul.f32 %v7694_v20, %v2684_v50  ;;  %v8484_v5 = vpop.f32.mrb[60].mxu0 }
 0x977   :  { %v8486_v6 = vpop.f32.mrb[68].mxu1  ;;  %v8488_v10 = vpop.f32.mrb[61].mxu0 }
 0x978   :  { %2699 = vst.msk [vmem:[#allocation3 + $0x8] sm:$0xff] %vm2697_vm15, %v2694_v59  ;;  %v8491_v0 = vpop.f32.mrb[69].mxu1  ;;  %v8493_v16 = vpop.f32.mrb[62].mxu0  ;;  %vm4489_vm15 = vcmask 261368  }
 0x979   :  { %v8495_v18 = vpop.f32.mrb[70].mxu1  ;;  %v8497_v35 = vpop.f32.mrb[63].mxu0 }
 0x97a   :  { %v8499_v14 = vpop.f32.mrb[71].mxu1 }
 0x985   :  { %v2798_v40 = vpop.permute.xlu1 %2797 }
 0x986   :  { %v2807_v22 = vmul.f32 %v7646_v29, %v2798_v40  ;;  %v2910_v32 = vpop.permute.xlu0 %2909 }
 0x987   :  { %v2919_v38 = vmul.f32 %v7646_v29, %v2910_v32 }
 0x988   :  { %2812 = vst.msk [vmem:[#allocation3 + $0x10] sm:$0xff] %vm2809_vm3, %v2807_v22 }
 0x989   :  { %2924 = vst.msk [vmem:[#allocation3 + $0x10] sm:$0xff] %vm2921_vm4, %v2919_v38  ;;  %v2800_v31 = vpop.permute.xlu1 %2799 }
 0x98a   :  { %v2808_v28 = vmul.f32 %v7660_v7, %v2800_v31  ;;  %v2794_v61 = vpop.permute.xlu0 %2793 }
 0x98b   :  { %v2805_v2 = vmul.f32 %v7656_v11, %v2794_v61 }
 0x98c   :  { %2813 = vst.msk [vmem:[#allocation3 + $0x18] sm:$0xff] %vm2809_vm3, %v2808_v28 }
 0x98d   :  { %2810 = vst.msk [vmem:[#allocation3] sm:$0xff] %vm2809_vm3, %v2805_v2 }
 0x98e   :  { %v2912_v37 = vpop.permute.xlu1 %2911 }
 0x98f   :  { %v2920_v4 = vmul.f32 %v7660_v7, %v2912_v37  ;;  %v2906_v49 = vpop.permute.xlu0 %2905 }
 0x990   :  { %v2917_v8 = vmul.f32 %v7656_v11, %v2906_v49 }
 0x991   :  { %2925 = vst.msk [vmem:[#allocation3 + $0x18] sm:$0xff] %vm2921_vm4, %v2920_v4 }
 0x992   :  { %2922 = vst.msk [vmem:[#allocation3] sm:$0xff] %vm2921_vm4, %v2917_v8  ;;  %v2908_v15 = vpop.permute.xlu1 %2907 }
 0x993   :  { %v2918_v23 = vmul.f32 %v7694_v20, %v2908_v15  ;;  %v2796_v54 = vpop.permute.xlu0 %2795 }
 0x994   :  { %v2806_v55 = vmul.f32 %v7694_v20, %v2796_v54 }
 0x996   :  { %2811 = vst.msk [vmem:[#allocation3 + $0x8] sm:$0xff] %vm2809_vm3, %v2806_v55 }
 0x997   :  { %2923 = vst.msk [vmem:[#allocation3 + $0x8] sm:$0xff] %vm2921_vm4, %v2918_v23  ;;  %v8517_v36 = vpop.f32.mrb[64].mxu0 }
 0x998   :  { %v8519_v1 = vpop.f32.mrb[72].mxu1  ;;  %v8521_v30 = vpop.f32.mrb[65].mxu0 }
 0x999   :  { %v8523_v52 = vpop.f32.mrb[73].mxu1  ;;  %v8525_v19 = vpop.f32.mrb[66].mxu0 }
 0x99a   :  { %v8527_v3 = vpop.f32.mrb[74].mxu1  ;;  %v8529_v21 = vpop.f32.mrb[67].mxu0 }
 0x99b   :  { %v8531_v45 = vpop.f32.mrb[75].mxu1 }
 0x9a6   :  { %v3022_v13 = vpop.permute.xlu0 %3021 }
 0x9a7   :  { %v3031_v53 = vmul.f32 %v7646_v29, %v3022_v13 }
 0x9a9   :  { %3036 = vst.msk [vmem:[#allocation3 + $0x10] sm:$0xff] %vm3033_vm5, %v3031_v53  ;;  %v3024_v48 = vpop.permute.xlu1 %3023 }
 0x9aa   :  { %v3134_v62 = vpop.permute.xlu0 %3133  ;;  %v3032_v57 = vmul.f32 %v7660_v7, %v3024_v48 }
 0x9ab   :  { %v3143_v51 = vmul.f32 %v7646_v29, %v3134_v62 }
 0x9ac   :  { %3037 = vst.msk [vmem:[#allocation3 + $0x18] sm:$0xff] %vm3033_vm5, %v3032_v57 }
 0x9ad   :  { %3148 = vst.msk [vmem:[#allocation3 + $0x10] sm:$0xff] %vm3145_vm6, %v3143_v51  ;;  %v3136_v47 = vpop.permute.xlu1 %3135 }
 0x9ae   :  { %v3018_v24 = vpop.permute.xlu0 %3017  ;;  %v3144_v63 = vmul.f32 %v7660_v7, %v3136_v47 }
 0x9af   :  { %v3029_v44 = vmul.f32 %v7656_v11, %v3018_v24 }
 0x9b0   :  { %3149 = vst.msk [vmem:[#allocation3 + $0x18] sm:$0xff] %vm3145_vm6, %v3144_v63 }
 0x9b1   :  { %3034 = vst.msk [vmem:[#allocation3] sm:$0xff] %vm3033_vm5, %v3029_v44  ;;  %v3020_v58 = vpop.permute.xlu1 %3019 }
 0x9b2   :  { %v3130_v43 = vpop.permute.xlu0 %3129  ;;  %v3030_v12 = vmul.f32 %v7694_v20, %v3020_v58 }
 0x9b3   :  { %v3141_v50 = vmul.f32 %v7656_v11, %v3130_v43 }
 0x9b4   :  { %3035 = vst.msk [vmem:[#allocation3 + $0x8] sm:$0xff] %vm3033_vm5, %v3030_v12 }
 0x9b5   :  { %3146 = vst.msk [vmem:[#allocation3] sm:$0xff] %vm3145_vm6, %v3141_v50  ;;  %v3132_v59 = vpop.permute.xlu1 %3131  ;;  %v6673_v50 = vld [vmem:[%s8871_s7] sm:$0xff] }
 0x9b6   :  { %v3142_v40 = vmul.f32 %v7694_v20, %v3132_v59  ;;  %v4498_v59 = vrot.slane %v6673_v50, %v7279_v42  ;;  %v6105_v42 = vld [vmem:[%s8879_s15] sm:$0xff]  }
 0x9b7   :  { %v8548_v22 = vpop.f32.mrb[68].mxu0  ;;  %6040 = vmatprep.subr.bf16.mxu0 %v6105_v42 }
 0x9b8   :  { %3147 = vst.msk [vmem:[#allocation3 + $0x8] sm:$0xff] %vm3145_vm6, %v3142_v40  ;;  %v8551_v32 = vpop.f32.mrb[76].mxu1  ;;  %v8553_v38 = vpop.f32.mrb[69].mxu0  ;;  %6041 = vmatpush3.bf16.msra.mxu0 %v6105_v42 }
 0x9b9   :  { %v8555_v31 = vpop.f32.mrb[77].mxu1  ;;  %v8557_v28 = vpop.f32.mrb[70].mxu0 }
 0x9ba   :  { %v8559_v61 = vpop.f32.mrb[78].mxu1  ;;  %v8561_v2 = vpop.f32.mrb[71].mxu0 }
 0x9bb   :  { %v8563_v37 = vpop.f32.mrb[79].mxu1 }
 0x9c5   :  { %v3246_v4 = vpop.permute.xlu0 %3245 }
 0x9c6   :  { %v3255_v49 = vmul.f32 %v7646_v29, %v3246_v4 }
 0x9c7   :  { %v3248_v8 = vpop.permute.xlu1 %3247 }
 0x9c8   :  { %3260 = vst.msk [vmem:[#allocation3 + $0x10] sm:$0xff] %vm3257_vm7, %v3255_v49  ;;  %v3256_v23 = vmul.f32 %v7660_v7, %v3248_v8 }
 0x9c9   :  { %v3242_v15 = vpop.permute.xlu0 %3241 }
 0x9ca   :  { %v3253_v54 = vmul.f32 %v7656_v11, %v3242_v15  ;;  %3261 = vst.msk [vmem:[#allocation3 + $0x18] sm:$0xff] %vm3257_vm7, %v3256_v23 }
 0x9cb   :  { %v3244_v55 = vpop.permute.xlu1 %3243 }
 0x9cc   :  { %3258 = vst.msk [vmem:[#allocation3] sm:$0xff] %vm3257_vm7, %v3253_v54  ;;  %v3254_v13 = vmul.f32 %v7694_v20, %v3244_v55 }
 0x9ce   :  { %3259 = vst.msk [vmem:[#allocation3 + $0x8] sm:$0xff] %vm3257_vm7, %v3254_v13 }
 0x9cf   :  { %v3356_v53 = vpop.permute.xlu1 %3355 }
 0x9d0   :  { %v3366_v48 = vmul.f32 %v7694_v20, %v3356_v53 }
 0x9d2   :  { %3371 = vst.msk [vmem:[#allocation3 + $0x8] sm:$0xff] %vm3369_vm8, %v3366_v48 }
 0x9d3   :  { %v3360_v62 = vpop.permute.xlu1 %3359 }
 0x9d4   :  { %v3368_v57 = vmul.f32 %v7660_v7, %v3360_v62 }
 0x9d6   :  { %3373 = vst.msk [vmem:[#allocation3 + $0x18] sm:$0xff] %vm3369_vm8, %v3368_v57 }
 0x9d7   :  { %v8572_v51 = vpop.f32.mrb[72].mxu0 }
 0x9d8   :  { %v8575_v47 = vpop.f32.mrb[80].mxu1  ;;  %v8577_v24 = vpop.f32.mrb[73].mxu0 }
 0x9d9   :  { %8892 = vst [vmem:[#allocation6_spill] sm:$0xff] %v8575_v47  ;;  %v8579_v63 = vpop.f32.mrb[81].mxu1  ;;  %v8581_v44 = vpop.f32.mrb[74].mxu0 }
 0x9da   :  { %v8583_v58 = vpop.f32.mrb[82].mxu1  ;;  %v8585_v43 = vpop.f32.mrb[75].mxu0 }
 0x9db   :  { %8893 = vst [vmem:[#allocation7_spill] sm:$0xff] %v8583_v58  ;;  %v8587_v12 = vpop.f32.mrb[83].mxu1 }
 0x9df   :  { %v6030_v40 = vpop.f32.mrb[76].mxu0 }
 0x9e0   :  { %v4545_v4 = vadd.f32 %v6030_v40, %v4498_v59  ;;  %v4536_v49 = vpop.f32.mrb[77].mxu0  ;;  %v6106_v40 = vld [vmem:[%s8879_s15 + $0x8] sm:$0xff]  }
 0x9e1   :  { %v4537_v8 = vadd.f32 %v4536_v49, %v4498_v59  ;;  %v6031_v15 = vpop.f32.mrb[78].mxu0  ;;  %6042 = vmatprep.subr.bf16.mxu0 %v6106_v40 }
 0x9e2   :  { %v4548_v23 = vadd.f32 %v6031_v15, %v4498_v59  ;;  %v4539_v54 = vpop.f32.mrb[79].mxu0  ;;  %v4553_v13 = vmax.f32 %v4545_v4, 0.0  ;;  %6043 = vmatpush3.bf16.msra.mxu0 %v6106_v40 }
 0x9e3   :  { %v4540_v55 = vadd.f32 %v4539_v54, %v4498_v59  ;;  %v4551_v48 = vmax.f32 %v4537_v8, 0.0  ;;  %v4564_v59 = vrot.slane %v6673_v50, %v7283_v46  ;;  %v3426_v46 = vadd.f32 %v8318_v26, %v8457_v9 }
 0x9e4   :  { %v4554_v53 = vmax.f32 %v4548_v23, 0.0  ;;  %v3434_v50 = vadd.f32 %v8318_v26, %v8453_v56 }
 0x9e5   :  { %v4552_v62 = vmax.f32 %v4540_v55, 0.0  ;;  %v4927_v42 = vmul.f32 -1.442695, %v3426_v46 }
 0x9e6   :  { %v4556_v57 = vpack.c.bf16 %v4554_v53, %v4553_v13  ;;  %v4929_v40 = vmul.f32 -1.442695, %v3434_v50 }
 0x9e7   :  { %v4555_v47 = vpack.c.bf16 %v4552_v62, %v4551_v48  ;;  %6471 = vpow2.f32 %v4927_v42 }
 0x9e8   :  { %6473 = vpow2.f32 %v4929_v40 }
 0x9e9   :  { %6036 = vmatprep.mubr.msk.bf16.mxu1 %vm93_vm0, %v4555_v47 }
 0x9ea   :  { %6037 = vmatmul.mubr.msk.bf16.vlgmr.msra.gmra.mrb[84].mxu1 %vm93_vm0, %v4556_v57 }
 0xabd   :  { %v6038_v4 = vpop.f32.mrb[84].mxu1 }
 0xabe   :  { %v4626_v49 = vadd.f32 %v6038_v4, %v4564_v59  ;;  %v4617_v8 = vpop.f32.mrb[85].mxu1 }
 0xabf   :  { %v4618_v47 = vadd.f32 %v4617_v8, %v4564_v59  ;;  %v6039_v15 = vpop.f32.mrb[86].mxu1 }
 0xac0   :  { %v4629_v23 = vadd.f32 %v6039_v15, %v4564_v59  ;;  %v4620_v54 = vpop.f32.mrb[87].mxu1  ;;  %v4634_v13 = vmax.f32 %v4626_v49, 0.0 }
 0xac1   :  { %v4621_v55 = vadd.f32 %v4620_v54, %v4564_v59  ;;  %v4632_v48 = vmax.f32 %v4618_v47, 0.0  ;;  %v8608_v59 = vld [vmem:[#allocation2] ss:$0 sm:$0xff] }
 0xac2   :  { %v4635_v53 = vmax.f32 %v4629_v23, 0.0  ;;  %v3538_v4 = vadd.f32 %v8608_v59, %v8459_v17  ;;  %v3311_v49 = vadd.f32 %v8608_v59, %v8418_v34  ;;  %v3546_v9 = vadd.f32 %v8608_v59, %v8455_v39 }
 0xac3   :  { %v4633_v62 = vmax.f32 %v4621_v55, 0.0  ;;  %v3319_v15 = vadd.f32 %v8608_v59, %v8413_v41  ;;  %v3650_v39 = vadd.f32 %v8608_v59, %v8497_v35  ;;  %v3423_v41 = vadd.f32 %v8608_v59, %v8448_v60 }
 0xac4   :  { %v4637_v57 = vpack.c.bf16 %v4635_v53, %v4634_v13  ;;  %v4931_v26 = vmul.f32 -1.442695, %v3538_v4  ;;  %v4922_v17 = vmul.f32 -1.442695, %v3311_v49  ;;  %v4933_v13 = vmul.f32 -1.442695, %v3546_v9 }
 0xac5   :  { %v4636_v58 = vpack.c.bf16 %v4633_v62, %v4632_v48  ;;  %v6472_v48 = vpop.eup %6471  ;;  %v4924_v62 = vmul.f32 -1.442695, %v3319_v15  ;;  %v3658_v35 = vadd.f32 %v8608_v59, %v8493_v16  ;;  %v4935_v42 = vmul.f32 -1.442695, %v3650_v39 }
 0xac6   :  { %6475 = vpow2.f32 %v4931_v26  ;;  %v3450_v40 = vadd.f32 1.0, %v6472_v48  ;;  %v6474_v4 = vpop.eup %6473  ;;  %v3431_v60 = vadd.f32 %v8608_v59, %v8444_v27  ;;  %v4926_v49 = vmul.f32 -1.442695, %v3423_v41 }
 0xac7   :  { %6044 = vmatprep.mubr.msk.bf16.mxu0 %vm93_vm0, %v4636_v58  ;;  %v4972_v58 = vld [vmem:[%s8880_s16] ss:$0 sm:$0xff]  ;;  %6477 = vpow2.f32 %v4922_v17  ;;  %v4937_v9 = vmul.f32 -1.442695, %v3658_v35  ;;  %v3762_v26 = vadd.f32 %v8608_v59, %v8499_v14  ;;  %v3535_v15 = vadd.f32 %v8608_v59, %v8451_v25  ;;  %s6722_s16 = smov 22  }
 0xac8   :  { %6045 = vmatmul.mubr.msk.bf16.vlgmr.msra.gmra.mrb[80].mxu0 %vm93_vm0, %v4637_v57  ;;  %6479 = vpow2.f32 %v4933_v13  ;;  %v3647_v25 = vadd.f32 %v8608_v59, %v8488_v10  ;;  %vm3481_vm0 = vcmask 187568  }
 0xac9   :  { %6481 = vpow2.f32 %v4924_v62  ;;  %v4939_v27 = vmul.f32 -1.442695, %v3762_v26  ;;  %v4930_v14 = vmul.f32 -1.442695, %v3535_v15 }
 0xaca   :  { %6483 = vpow2.f32 %v4935_v42 }
 0xacb   :  { %6485 = vrcp.f32 %v3450_v40  ;;  %v3655_v40 = vadd.f32 %v8608_v59, %v8484_v5 }
 0xacc   :  { %6487 = vpow2.f32 %v4926_v49 }
 0xacd   :  { %6489 = vpow2.f32 %v4937_v9  ;;  %v4936_v26 = vmul.f32 -1.442695, %v3655_v40 }
 0xad0   :  { %v6476_v16 = vpop.eup %6475 }
 0xad1   :  { %v6478_v17 = vpop.eup %6477 }
 0xad2   :  { %v3337_v13 = vadd.f32 1.0, %v6478_v17 }
 0xb9b   :  { %v6046_v56 = vpop.f32.mrb[80].mxu0 }
 0xb9c   :  { %v8619_v8 = vadd.f32 %v6046_v56, %v4972_v58  ;;  %v4701_v47 = vpop.f32.mrb[81].mxu0  ;;  %v3452_v56 = vadd.f32 1.0, %v6474_v4  ;;  %v4934_v4 = vmul.f32 -1.442695, %v3647_v25 }
 0xb9d   :  { %v6047_v23 = vpop.f32.mrb[82].mxu0  ;;  %v8623_v54 = vadd.f32 %v4972_v58, %v4701_v47  ;;  %v4928_v47 = vmul.f32 -1.442695, %v3431_v60 }
 0xb9e   :  { %v4704_v34 = vpop.f32.mrb[83].mxu0  ;;  %v4722_v55 = vsel %vm163_vm1, %v8619_v8, -inf  ;;  %v8635_v46 = vadd.f32 %v6047_v23, %v4972_v58  ;;  %6491 = vrcp.f32 %v3452_v56  ;;  %v3562_v23 = vadd.f32 1.0, %v6476_v16 }
 0xb9f   :  { %v8629_v53 = vadd.f32 %v4972_v58, %v4704_v34  ;;  %4723 = vmax.xlane.f32.xlu0 %v4722_v55  ;;  %v4716_v50 = vsel %vm163_vm1, %v8623_v54, -inf  ;;  %v6480_v34 = vpop.eup %6479  ;;  %6493 = vpow2.f32 %v4928_v47  ;;  %v3543_v55 = vadd.f32 %v8608_v59, %v8446_v33 }
 0xba0   :  { %v4725_v58 = vsel %vm163_vm1, %v8635_v46, -inf  ;;  %v6482_v39 = vpop.eup %6481  ;;  %6495 = vpow2.f32 %v4939_v27  ;;  %v3564_v48 = vadd.f32 1.0, %v6480_v34  ;;  %v3759_v56 = vadd.f32 %v8608_v59, %v8491_v0 }
 0xba1   :  { %v4719_v57 = vsel %vm163_vm1, %v8629_v53, -inf  ;;  %6497 = vrcp.f32 %v3562_v23  ;;  %v6484_v62 = vpop.eup %6483  ;;  %v4932_v41 = vmul.f32 -1.442695, %v3543_v55 }
 0xba2   :  { %4720 = vmax.xlane.f32.xlu1 %v4719_v57  ;;  %6499 = vpow2.f32 %v4930_v14  ;;  %v6486_v57 = vpop.eup %6485  ;;  %v3674_v33 = vadd.f32 1.0, %v6484_v62  ;;  %v4938_v27 = vmul.f32 -1.442695, %v3759_v56 }
 0xba3   :  { %4717 = vmax.xlane.f32.xlu0 %v4716_v50  ;;  %v3339_v50 = vadd.f32 1.0, %v6482_v39  ;;  %6501 = vrcp.f32 %v3337_v13  ;;  %v6488_v35 = vpop.eup %6487 }
 0xba4   :  { %6503 = vrcp.f32 %v3564_v48  ;;  %v6490_v42 = vpop.eup %6489  ;;  %v3449_v49 = vadd.f32 1.0, %v6488_v35 }
 0xba5   :  { %6505 = vpow2.f32 %v4932_v41  ;;  %v3676_v10 = vadd.f32 1.0, %v6490_v42 }
 0xba6   :  { %6507 = vrcp.f32 %v3339_v50 }
 0xba7   :  { %4726 = vmax.xlane.f32.xlu0 %v4725_v58  ;;  %6509 = vrcp.f32 %v3674_v33 }
 0xba8   :  { %v6492_v60 = vpop.eup %6491  ;;  %6511 = vpow2.f32 %v4934_v4 }
 0xba9   :  { %v6494_v58 = vpop.eup %6493  ;;  %6513 = vrcp.f32 %v3449_v49 }
 0xbaa   :  { %v6496_v9 = vpop.eup %6495  ;;  %v3451_v47 = vadd.f32 1.0, %v6494_v58  ;;  %6515 = vrcp.f32 %v3676_v10 }
 0xbab   :  { %v6498_v16 = vpop.eup %6497  ;;  %v3786_v17 = vadd.f32 1.0, %v6496_v9  ;;  %6517 = vpow2.f32 %v4936_v26  ;;  %v3767_v26 = vadd.f32 %v8608_v59, %v8486_v6  ;;  %v3871_v6 = vadd.f32 %v8608_v59, %v8521_v30 }
 0xbac   :  { %v6500_v15 = vpop.eup %6499  ;;  %6519 = vrcp.f32 %v3451_v47  ;;  %v3770_v47 = vadd.f32 %v8608_v59, %v8495_v18  ;;  %v3874_v18 = vadd.f32 %v8608_v59, %v8529_v21 }
 0xbad   :  { %v6502_v5 = vpop.eup %6501  ;;  %v3561_v34 = vadd.f32 1.0, %v6500_v15  ;;  %6521 = vrcp.f32 %v3786_v17  ;;  %v4942_v30 = vmul.f32 -1.442695, %v3871_v6 }
 0xbae   :  { %v6504_v23 = vpop.eup %6503  ;;  %6523 = vpow2.f32 %v4938_v27  ;;  %v4940_v27 = vmul.f32 -1.442695, %v3767_v26  ;;  %v4943_v21 = vmul.f32 -1.442695, %v3874_v18 }
 0xbaf   :  { %v6506_v55 = vpop.eup %6505  ;;  %6525 = vrcp.f32 %v3561_v34 }
 0xbb0   :  { %v6508_v0 = vpop.eup %6507  ;;  %v3563_v13 = vadd.f32 1.0, %v6506_v55 }
 0xbb1   :  { %v6510_v14 = vpop.eup %6509 }
 0xbb2   :  { %v6512_v39 = vpop.eup %6511  ;;  %6527 = vrcp.f32 %v3563_v13 }
 0xbb3   :  { %3467 = vrot.lane.b32.xlu1 %v6486_v57, %s6722_s16  ;;  %v6514_v48 = vpop.eup %6513  ;;  %v3673_v41 = vadd.f32 1.0, %v6512_v39 }
 0xbb4   :  { %v6516_v62 = vpop.eup %6515 }
 0xbb5   :  { %v6518_v25 = vpop.eup %6517  ;;  %6529 = vrcp.f32 %v3673_v41  ;;  %v3882_v41 = vadd.f32 %v8608_v59, %v8525_v19 }
 0xbb6   :  { %v6520_v57 = vpop.eup %6519  ;;  %v3675_v35 = vadd.f32 1.0, %v6518_v25 }
 0xbb7   :  { %3471 = vrot.lane.b32.xlu1 %v6492_v60, %s6722_s16  ;;  %v6522_v50 = vpop.eup %6521 }
 0xbb8   :  { %v6524_v33 = vpop.eup %6523  ;;  %6531 = vrcp.f32 %v3675_v35 }
 0xbb9   :  { %v6526_v42 = vpop.eup %6525  ;;  %v3785_v40 = vadd.f32 1.0, %v6524_v33 }
 0xbbb   :  { %3579 = vrot.lane.b32.xlu1 %v6498_v16, %s6723_s10  ;;  %6533 = vrcp.f32 %v3785_v40  ;;  %v3986_v40 = vadd.f32 %v8608_v59, %v8531_v45 }
 0xbbc   :  { %v6528_v4 = vpop.eup %6527 }
 0xbbd   :  { %3353 = vrot.lane.b32.xlu0 %v6502_v5, %s6721_s21 }
 0xbbf   :  { %3583 = vrot.lane.b32.xlu1 %v6504_v23, %s6723_s10  ;;  %v6530_v60 = vpop.eup %6529 }
 0xbc1   :  { %3357 = vrot.lane.b32.xlu0 %v6508_v0, %s6721_s21 }
 0xbc2   :  { %v6532_v49 = vpop.eup %6531 }
 0xbc3   :  { %3691 = vrot.lane.b32.xlu1 %v6510_v14, %s6724_s11 }
 0xbc5   :  { %3465 = vrot.lane.b32.xlu0 %v6514_v48, %s6722_s16  ;;  %v6534_v58 = vpop.eup %6533 }
 0xbc7   :  { %3695 = vrot.lane.b32.xlu1 %v6516_v62, %s6724_s11 }
 0xbc9   :  { %3469 = vrot.lane.b32.xlu0 %v6520_v57, %s6722_s16 }
 0xbcb   :  { %3803 = vrot.lane.b32.xlu1 %v6522_v50, %s6725_s9  ;;  %v3983_v50 = vadd.f32 %v8608_v59, %v8523_v52 }
 0xbcd   :  { %3577 = vrot.lane.b32.xlu0 %v6526_v42, %s6723_s10  ;;  %v4945_v42 = vmul.f32 -1.442695, %v3882_v41 }
 0xbd1   :  { %3581 = vrot.lane.b32.xlu0 %v6528_v4, %s6723_s10 }
 0xbd5   :  { %3689 = vrot.lane.b32.xlu0 %v6530_v60, %s6724_s11 }
 0xbd9   :  { %3693 = vrot.lane.b32.xlu0 %v6532_v49, %s6724_s11 }
 0xbdd   :  { %3801 = vrot.lane.b32.xlu0 %v6534_v58, %s6725_s9 }
 0xc2c   :  { %v4724_v10 = vpop.xlane.xlu0 %4723 }
 0xc2d   :  { %v4730_v9 = vsub.f32 %v8619_v8, %v4724_v10  ;;  %v4941_v8 = vmul.f32 -1.442695, %v3770_v47  ;;  %v4947_v47 = vmul.f32 -1.442695, %v3986_v40 }
 0xc2f   :  { %v4736_v56 = vmul.f32 1.442695, %v4730_v9  ;;  %v4721_v16 = vpop.xlane.xlu1 %4720  ;;  %v4946_v9 = vmul.f32 -1.442695, %v3983_v50 }
 0xc30   :  { %v4729_v15 = vsub.f32 %v8629_v53, %v4721_v16  ;;  %v4718_v5 = vpop.xlane.xlu0 %4717  ;;  %v3994_v16 = vadd.f32 %v8608_v59, %v8527_v3  ;;  %v4098_v3 = vadd.f32 %v8608_v59, %v8561_v2  ;;  %v4095_v2 = vadd.f32 %v8608_v59, %v8553_v38 }
 0xc31   :  { %6535 = vpow2.f32 %v4736_v56  ;;  %v4728_v17 = vsub.f32 %v8623_v54, %v4718_v5  ;;  %v3879_v54 = vadd.f32 %v8608_v59, %v8517_v36 }
 0xc32   :  { %v4734_v23 = vmul.f32 1.442695, %v4729_v15  ;;  %v4950_v50 = vmul.f32 -1.442695, %v4095_v2 }
 0xc33   :  { %v4732_v34 = vmul.f32 1.442695, %v4728_v17  ;;  %v3468_v55 = vpop.permute.xlu1 %3467  ;;  %v4944_v57 = vmul.f32 -1.442695, %v3879_v54 }
 0xc34   :  { %6537 = vpow2.f32 %v4734_v23  ;;  %v3478_v0 = vmul.f32 %v7694_v20, %v3468_v55  ;;  %v4727_v14 = vpop.xlane.xlu0 %4726  ;;  %v3991_v23 = vadd.f32 %v8608_v59, %v8519_v1 }
 0xc35   :  { %6539 = vpow2.f32 %v4732_v34  ;;  %v4731_v53 = vsub.f32 %v8635_v46, %v4727_v14 }
 0xc36   :  { %6541 = vpow2.f32 %v4940_v27  ;;  %3483 = vst.msk [vmem:[#allocation3 + $0x8] sm:$0xff] %vm3481_vm0, %v3478_v0  ;;  %v4949_v0 = vmul.f32 -1.442695, %v3994_v16  ;;  %v4948_v54 = vmul.f32 -1.442695, %v3991_v23 }
 0xc37   :  { %v4738_v13 = vmul.f32 1.442695, %v4731_v53  ;;  %v3472_v39 = vpop.permute.xlu1 %3471  ;;  %6543 = vpow2.f32 %v4941_v8 }
 0xc38   :  { %v3480_v48 = vmul.f32 %v7660_v7, %v3472_v39  ;;  %v3354_v62 = vpop.permute.xlu0 %3353  ;;  %v4106_v39 = vadd.f32 %v8608_v59, %v8557_v28 }
 0xc39   :  { %6545 = vpow2.f32 %v4738_v13  ;;  %v3365_v46 = vmul.f32 %v7656_v11, %v3354_v62 }
 0xc3a   :  { %3485 = vst.msk [vmem:[#allocation3 + $0x18] sm:$0xff] %vm3481_vm0, %v3480_v48  ;;  %6547 = vpow2.f32 %v4942_v30  ;;  %v4951_v30 = vmul.f32 -1.442695, %v4098_v3 }
 0xc3b   :  { %v8694_v25 = vpop.eup %6535  ;;  %3370 = vst.msk [vmem:[#allocation3] sm:$0xff] %vm3369_vm8, %v3365_v46  ;;  %v3580_v36 = vpop.permute.xlu1 %3579  ;;  %6549 = vpow2.f32 %v4943_v21 }
 0xc3c   :  { %v3590_v35 = vmul.f32 %v7694_v20, %v3580_v36  ;;  %v3358_v19 = vpop.permute.xlu0 %3357  ;;  %v4746_v33 = vsel %vm163_vm1, %v8694_v25, 0.0  ;;  %6551 = vpow2.f32 %v4944_v57  ;;  %v4103_v36 = vadd.f32 %v8608_v59, %v8548_v22 }
 0xc3d   :  { %v3367_v4 = vmul.f32 %v7646_v29, %v3358_v19  ;;  %4747 = vadd.xlane.f32.xlu0 %v4746_v33  ;;  %6553 = vpow2.f32 %v4945_v42  ;;  %v4210_v19 = vadd.f32 %v8608_v59, %v8563_v37  ;;  %v4218_v37 = vadd.f32 %v8608_v59, %v8559_v61 }
 0xc3e   :  { %v8705_v60 = vpop.eup %6537  ;;  %3595 = vst.msk [vmem:[#allocation3 + $0x8] sm:$0xff] %vm3593_vm9, %v3590_v35  ;;  %6555 = vpow2.f32 %v4946_v9  ;;  %v4953_v35 = vmul.f32 -1.442695, %v4106_v39  ;;  %v4207_v9 = vadd.f32 %v8608_v59, %v8555_v31  ;;  %v4215_v31 = vadd.f32 %v8608_v59, %v8551_v32 }
 0xc3f   :  { %v8708_v49 = vpop.eup %6539  ;;  %3372 = vst.msk [vmem:[#allocation3 + $0x10] sm:$0xff] %vm3369_vm8, %v3367_v4  ;;  %v3584_v52 = vpop.permute.xlu1 %3583  ;;  %v4743_v58 = vsel %vm163_vm1, %v8705_v60, 0.0  ;;  %6557 = vpow2.f32 %v4947_v47 }
 0xc40   :  { %v6542_v10 = vpop.eup %6541  ;;  %v3592_v45 = vmul.f32 %v7660_v7, %v3584_v52  ;;  %v3466_v26 = vpop.permute.xlu0 %3465  ;;  %v4740_v56 = vsel %vm163_vm1, %v8708_v49, 0.0 }
 0xc41   :  { %v3477_v15 = vmul.f32 %v7656_v11, %v3466_v26  ;;  %4744 = vadd.xlane.f32.xlu0 %v4743_v58  ;;  %4741 = vadd.xlane.f32.xlu1 %v4740_v56  ;;  %v6544_v5 = vpop.eup %6543  ;;  %v3787_v27 = vadd.f32 1.0, %v6542_v10  ;;  %v4952_v10 = vmul.f32 -1.442695, %v4103_v36 }
 0xc42   :  { %3597 = vst.msk [vmem:[#allocation3 + $0x18] sm:$0xff] %vm3593_vm9, %v3592_v45  ;;  %v3788_v18 = vadd.f32 1.0, %v6544_v5  ;;  %v4955_v45 = vmul.f32 -1.442695, %v4210_v19 }
 0xc43   :  { %v8720_v17 = vpop.eup %6545  ;;  %3482 = vst.msk [vmem:[#allocation3] sm:$0xff] %vm3481_vm0, %v3477_v15  ;;  %v3692_v34 = vpop.permute.xlu1 %3691  ;;  %6559 = vrcp.f32 %v3787_v27  ;;  %v4954_v27 = vmul.f32 -1.442695, %v4207_v9 }
 0xc44   :  { %v3702_v55 = vmul.f32 %v7694_v20, %v3692_v34  ;;  %v3470_v8 = vpop.permute.xlu0 %3469  ;;  %v4749_v6 = vsel %vm163_vm1, %v8720_v17, 0.0  ;;  %v6548_v1 = vpop.eup %6547  ;;  %6561 = vpow2.f32 %v4949_v0  ;;  %vm3817_vm1 = vcmask 212168  }
 0xc45   :  { %v3479_v14 = vmul.f32 %v7646_v29, %v3470_v8  ;;  %4750 = vadd.xlane.f32.xlu1 %v4749_v6  ;;  %v6550_v53 = vpop.eup %6549  ;;  %v3897_v41 = vadd.f32 1.0, %v6548_v1  ;;  %6563 = vrcp.f32 %v3788_v18  ;;  %v4957_v34 = vmul.f32 -1.442695, %v4218_v37 }
 0xc46   :  { %3707 = vst.msk [vmem:[#allocation3 + $0x8] sm:$0xff] %vm3705_vm2, %v3702_v55  ;;  %v6552_v46 = vpop.eup %6551  ;;  %v3898_v57 = vadd.f32 1.0, %v6550_v53  ;;  %6565 = vpow2.f32 %v4948_v54  ;;  %v4322_v0 = vadd.f32 %v8608_v59, %v8585_v43  ;;  %v4319_v1 = vadd.f32 %v8608_v59, %v8577_v24 }
 0xc47   :  { %3484 = vst.msk [vmem:[#allocation3 + $0x10] sm:$0xff] %vm3481_vm0, %v3479_v14  ;;  %v3696_v13 = vpop.permute.xlu1 %3695  ;;  %v6554_v38 = vpop.eup %6553  ;;  %6567 = vpow2.f32 %v4951_v30  ;;  %v3899_v40 = vadd.f32 1.0, %v6552_v46  ;;  %v4956_v14 = vmul.f32 -1.442695, %v4215_v31  ;;  %v4330_v30 = vadd.f32 %v8608_v59, %v8581_v44 }
 0xc48   :  { %v3704_v48 = vmul.f32 %v7660_v7, %v3696_v13  ;;  %v3578_v62 = vpop.permute.xlu0 %3577  ;;  %6569 = vrcp.f32 %v3897_v41  ;;  %v6556_v52 = vpop.eup %6555  ;;  %v3900_v58 = vadd.f32 1.0, %v6554_v38  ;;  %v4958_v41 = vmul.f32 -1.442695, %v4319_v1 }
 0xc49   :  { %v3589_v21 = vmul.f32 %v7656_v11, %v3578_v62  ;;  %6571 = vrcp.f32 %v3898_v57  ;;  %v6558_v22 = vpop.eup %6557  ;;  %v4009_v56 = vadd.f32 1.0, %v6556_v52  ;;  %v4327_v62 = vadd.f32 %v8608_v59, %v8572_v51  ;;  %v8894_v52 = vld [vmem:[#allocation7_spill] sm:$0xff] }
 0xc4a   :  { %3709 = vst.msk [vmem:[#allocation3 + $0x18] sm:$0xff] %vm3705_vm2, %v3704_v48  ;;  %6573 = vpow2.f32 %v4950_v50  ;;  %v4010_v15 = vadd.f32 1.0, %v6558_v22  ;;  %v4959_v48 = vmul.f32 -1.442695, %v4322_v0  ;;  %v4961_v44 = vmul.f32 -1.442695, %v4330_v30 }
 0xc4b   :  { %3594 = vst.msk [vmem:[#allocation3] sm:$0xff] %vm3593_vm9, %v3589_v21  ;;  %v3804_v28 = vpop.permute.xlu1 %3803  ;;  %6575 = vpow2.f32 %v4953_v35  ;;  %v4434_v50 = vadd.f32 %v8608_v59, %v8587_v12  ;;  %v4960_v35 = vmul.f32 -1.442695, %v4327_v62  ;;  %v4431_v51 = vadd.f32 %v8608_v59, %v8579_v63  ;;  %v8895_v22 = vld [vmem:[#allocation6_spill] sm:$0xff] }
 0xc4c   :  { %v3814_v33 = vmul.f32 %v7694_v20, %v3804_v28  ;;  %v3582_v42 = vpop.permute.xlu0 %3581  ;;  %6577 = vrcp.f32 %v3899_v40 }
 0xc4d   :  { %v3591_v4 = vmul.f32 %v7646_v29, %v3582_v42  ;;  %v6560_v47 = vpop.eup %6559  ;;  %6579 = vrcp.f32 %v3900_v58  ;;  %v4442_v58 = vadd.f32 %v8608_v59, %v8894_v52  ;;  %v4963_v12 = vmul.f32 -1.442695, %v4434_v50 }
 0xc4e   :  { %3819 = vst.msk [vmem:[#allocation3 + $0x8] sm:$0xff] %vm3817_vm1, %v3814_v33  ;;  %v6562_v5 = vpop.eup %6561  ;;  %6581 = vpow2.f32 %v4952_v10  ;;  %v4439_v10 = vadd.f32 %v8608_v59, %v8895_v22  ;;  %v4962_v63 = vmul.f32 -1.442695, %v4431_v51 }
 0xc4f   :  { %3596 = vst.msk [vmem:[#allocation3 + $0x10] sm:$0xff] %vm3593_vm9, %v3591_v4  ;;  %v6564_v23 = vpop.eup %6563  ;;  %6583 = vpow2.f32 %v4955_v45  ;;  %v4012_v6 = vadd.f32 1.0, %v6562_v5 }
 0xc50   :  { %v3690_v26 = vpop.permute.xlu0 %3689  ;;  %v6566_v3 = vpop.eup %6565  ;;  %6585 = vrcp.f32 %v4009_v56 }
 0xc51   :  { %v3701_v16 = vmul.f32 %v7656_v11, %v3690_v26  ;;  %v6568_v8 = vpop.eup %6567  ;;  %6587 = vrcp.f32 %v4010_v15  ;;  %v4011_v53 = vadd.f32 1.0, %v6566_v3  ;;  %v4964_v15 = vmul.f32 -1.442695, %v4439_v10 }
 0xc52   :  { %v6570_v32 = vpop.eup %6569  ;;  %6589 = vpow2.f32 %v4954_v27  ;;  %v4122_v13 = vadd.f32 1.0, %v6568_v8 }
 0xc53   :  { %3706 = vst.msk [vmem:[#allocation3] sm:$0xff] %vm3705_vm2, %v3701_v16  ;;  %v6572_v18 = vpop.eup %6571  ;;  %6591 = vpow2.f32 %v4957_v34  ;;  %v4965_v16 = vmul.f32 -1.442695, %v4442_v58 }
 0xc54   :  { %v3694_v61 = vpop.permute.xlu0 %3693  ;;  %v6574_v2 = vpop.eup %6573  ;;  %6593 = vrcp.f32 %v4012_v6 }
 0xc55   :  { %v3703_v55 = vmul.f32 %v7646_v29, %v3694_v61  ;;  %v6576_v39 = vpop.eup %6575  ;;  %6595 = vpow2.f32 %v4956_v14  ;;  %v4121_v46 = vadd.f32 1.0, %v6574_v2 }
 0xc56   :  { %3807 = vrot.lane.b32.xlu1 %v6564_v23, %s6725_s9  ;;  %v6578_v24 = vpop.eup %6577  ;;  %6597 = vrcp.f32 %v4011_v53  ;;  %v4124_v38 = vadd.f32 1.0, %v6576_v39 }
 0xc57   :  { %3708 = vst.msk [vmem:[#allocation3 + $0x10] sm:$0xff] %vm3705_vm2, %v3703_v55  ;;  %3805 = vrot.lane.b32.xlu0 %v6560_v47, %s6725_s9  ;;  %v6580_v21 = vpop.eup %6579  ;;  %6599 = vrcp.f32 %v4122_v13 }
 0xc58   :  { %v3802_v54 = vpop.permute.xlu0 %3801  ;;  %v6582_v57 = vpop.eup %6581  ;;  %6601 = vpow2.f32 %v4959_v48 }
 0xc59   :  { %v3813_v43 = vmul.f32 %v7656_v11, %v3802_v54  ;;  %v6584_v36 = vpop.eup %6583  ;;  %6603 = vpow2.f32 %v4958_v41  ;;  %v4123_v33 = vadd.f32 1.0, %v6582_v57 }
 0xc5a   :  { %3915 = vrot.lane.b32.xlu1 %v6572_v18, %s6726_s28  ;;  %v6586_v28 = vpop.eup %6585  ;;  %6605 = vrcp.f32 %v4121_v46  ;;  %v4234_v40 = vadd.f32 1.0, %v6584_v36 }
 0xc5b   :  { %3818 = vst.msk [vmem:[#allocation3] sm:$0xff] %vm3817_vm1, %v3813_v43  ;;  %3913 = vrot.lane.b32.xlu0 %v6570_v32, %s6726_s28  ;;  %v6588_v19 = vpop.eup %6587  ;;  %6607 = vrcp.f32 %v4124_v38 }
 0xc5c   :  { %v6590_v42 = vpop.eup %6589  ;;  %6609 = vpow2.f32 %v4961_v44 }
 0xc5d   :  { %v6592_v4 = vpop.eup %6591  ;;  %6611 = vpow2.f32 %v4960_v35  ;;  %v4233_v37 = vadd.f32 1.0, %v6590_v42 }
 0xc5e   :  { %3919 = vrot.lane.b32.xlu1 %v6580_v21, %s6726_s28  ;;  %v6594_v9 = vpop.eup %6593  ;;  %6613 = vrcp.f32 %v4123_v33  ;;  %v4236_v26 = vadd.f32 1.0, %v6592_v4 }
 0xc5f   :  { %3917 = vrot.lane.b32.xlu0 %v6578_v24, %s6726_s28  ;;  %v6596_v45 = vpop.eup %6595  ;;  %6615 = vrcp.f32 %v4234_v40 }
 0xc60   :  { %v6598_v56 = vpop.eup %6597  ;;  %6617 = vpow2.f32 %v4963_v12  ;;  %v4235_v31 = vadd.f32 1.0, %v6596_v45 }
 0xc61   :  { %v6600_v47 = vpop.eup %6599  ;;  %6619 = vpow2.f32 %v4962_v63 }
 0xc62   :  { %4027 = vrot.lane.b32.xlu1 %v6588_v19, %s6727_s4  ;;  %v6602_v5 = vpop.eup %6601  ;;  %6621 = vrcp.f32 %v4233_v37 }
 0xc63   :  { %4025 = vrot.lane.b32.xlu0 %v6586_v28, %s6727_s4  ;;  %v6604_v59 = vpop.eup %6603  ;;  %6623 = vrcp.f32 %v4236_v26  ;;  %v4346_v34 = vadd.f32 1.0, %v6602_v5 }
 0xc64   :  { %v6606_v27 = vpop.eup %6605  ;;  %6625 = vpow2.f32 %v4965_v16  ;;  %v4345_v3 = vadd.f32 1.0, %v6604_v59 }
 0xc65   :  { %v6608_v23 = vpop.eup %6607  ;;  %6627 = vpow2.f32 %v4964_v15 }
 0xc66   :  { %4031 = vrot.lane.b32.xlu1 %v6594_v9, %s6727_s4  ;;  %v6610_v61 = vpop.eup %6609  ;;  %6629 = vrcp.f32 %v4235_v31 }
 0xc67   :  { %4029 = vrot.lane.b32.xlu0 %v6598_v56, %s6727_s4  ;;  %v6612_v55 = vpop.eup %6611  ;;  %v4348_v0 = vadd.f32 1.0, %v6610_v61  ;;  %6631 = vrcp.f32 %v4346_v34 }
 0xc68   :  { %v6614_v8 = vpop.eup %6613  ;;  %v4347_v14 = vadd.f32 1.0, %v6612_v55  ;;  %6633 = vrcp.f32 %v4345_v3 }
 0xc69   :  { %v6616_v6 = vpop.eup %6615  ;;  %6635 = vrcp.f32 %v4348_v0 }
 0xc6a   :  { %4139 = vrot.lane.b32.xlu1 %v6600_v47, %s6728_s29  ;;  %v6618_v32 = vpop.eup %6617  ;;  %6637 = vrcp.f32 %v4347_v14 }
 0xc6b   :  { %4137 = vrot.lane.b32.xlu0 %v6606_v27, %s6728_s29  ;;  %v6620_v1 = vpop.eup %6619  ;;  %v4458_v54 = vadd.f32 1.0, %v6618_v32 }
 0xc6c   :  { %v6622_v18 = vpop.eup %6621  ;;  %v4457_v13 = vadd.f32 1.0, %v6620_v1 }
 0xc6d   :  { %v6624_v53 = vpop.eup %6623  ;;  %6639 = vrcp.f32 %v4458_v54 }
 0xc6e   :  { %4143 = vrot.lane.b32.xlu1 %v6608_v23, %s6728_s29  ;;  %v6626_v2 = vpop.eup %6625  ;;  %6641 = vrcp.f32 %v4457_v13 }
 0xc6f   :  { %4141 = vrot.lane.b32.xlu0 %v6614_v8, %s6728_s29  ;;  %v6628_v43 = vpop.eup %6627  ;;  %v4460_v30 = vadd.f32 1.0, %v6626_v2 }
 0xc70   :  { %v6630_v39 = vpop.eup %6629  ;;  %v4459_v48 = vadd.f32 1.0, %v6628_v43 }
 0xc71   :  { %v6632_v24 = vpop.eup %6631  ;;  %6643 = vrcp.f32 %v4460_v30 }
 0xc72   :  { %4251 = vrot.lane.b32.xlu1 %v6616_v6, %s6729_s5  ;;  %v6634_v62 = vpop.eup %6633  ;;  %6645 = vrcp.f32 %v4459_v48 }
 0xc73   :  { %4249 = vrot.lane.b32.xlu0 %v6622_v18, %s6729_s5  ;;  %v6636_v41 = vpop.eup %6635 }
 0xc74   :  { %v6638_v21 = vpop.eup %6637 }
 0xc76   :  { %4255 = vrot.lane.b32.xlu1 %v6624_v53, %s6729_s5 }
 0xc77   :  { %4253 = vrot.lane.b32.xlu0 %v6630_v39, %s6729_s5  ;;  %v6640_v46 = vpop.eup %6639 }
 0xc78   :  { %v6642_v57 = vpop.eup %6641 }
 0xc7a   :  { %4363 = vrot.lane.b32.xlu1 %v6632_v24, %s6730_s30 }
 0xc7b   :  { %4361 = vrot.lane.b32.xlu0 %v6634_v62, %s6730_s30  ;;  %v6644_v38 = vpop.eup %6643 }
 0xc7c   :  { %v6646_v36 = vpop.eup %6645 }
 0xc7e   :  { %4367 = vrot.lane.b32.xlu1 %v6636_v41, %s6730_s30 }
 0xc7f   :  { %4365 = vrot.lane.b32.xlu0 %v6638_v21, %s6730_s30 }
 0xc82   :  { %4475 = vrot.lane.b32.xlu1 %v6640_v46, %s6731_s0 }
 0xc83   :  { %4473 = vrot.lane.b32.xlu0 %v6642_v57, %s6731_s0 }
 0xc86   :  { %4479 = vrot.lane.b32.xlu1 %v6644_v38, %s6731_s0 }
 0xc87   :  { %4477 = vrot.lane.b32.xlu0 %v6646_v36, %s6731_s0 }
 0xcca   :  { %v4748_v44 = vpop.xlane.xlu0 %4747 }
 0xcce   :  { %v4742_v50 = vpop.xlane.xlu1 %4741  ;;  %v4745_v28 = vpop.xlane.xlu0 %4744 }
 0xccf   :  { %6647 = vrcp.f32 %v4742_v50 }
 0xcd0   :  { %6649 = vrcp.f32 %v4745_v28 }
 0xcd1   :  { %6651 = vrcp.f32 %v4748_v44 }
 0xcd2   :  { %v4751_v35 = vpop.xlane.xlu1 %4750  ;;  %v3806_v51 = vpop.permute.xlu0 %3805 }
 0xcd3   :  { %6653 = vrcp.f32 %v4751_v35  ;;  %v3815_v19 = vmul.f32 %v7646_v29, %v3806_v51 }
 0xcd5   :  { %3820 = vst.msk [vmem:[#allocation3 + $0x10] sm:$0xff] %vm3817_vm1, %v3815_v19 }
 0xcd6   :  { %v3808_v33 = vpop.permute.xlu1 %3807  ;;  %v3914_v42 = vpop.permute.xlu0 %3913 }
 0xcd7   :  { %v3816_v40 = vmul.f32 %v7660_v7, %v3808_v33  ;;  %v3925_v4 = vmul.f32 %v7656_v11, %v3914_v42 }
 0xcd9   :  { %v6648_v52 = vpop.eup %6647  ;;  %3821 = vst.msk [vmem:[#allocation3 + $0x18] sm:$0xff] %vm3817_vm1, %v3816_v40 }
 0xcda   :  { %3930 = vst.msk [vmem:[#allocation3] sm:$0xff] %vm3929_vm10, %v3925_v4  ;;  %v6650_v58 = vpop.eup %6649  ;;  %v3916_v12 = vpop.permute.xlu1 %3915  ;;  %v4753_v10 = vmul.f32 %v6648_v52, %v8708_v49 }
 0xcdb   :  { %v3918_v22 = vpop.permute.xlu0 %3917  ;;  %v6652_v63 = vpop.eup %6651  ;;  %v3926_v9 = vmul.f32 %v7694_v20, %v3916_v12  ;;  %v4755_v45 = vmul.f32 %v6650_v58, %v8705_v60 }
 0xcdc   :  { %v3927_v37 = vmul.f32 %v7646_v29, %v3918_v22  ;;  %4764 = vrot.lane.b32.xlu0 %v4753_v10, %s6724_s11  ;;  %v4757_v49 = vmul.f32 %v6652_v63, %v8694_v25 }
 0xcdd   :  { %v6654_v26 = vpop.eup %6653  ;;  %3931 = vst.msk [vmem:[#allocation3 + $0x8] sm:$0xff] %vm3929_vm10, %v3926_v9  ;;  %4766 = vrot.lane.b32.xlu1 %v4755_v45, %s6724_s11 }
 0xcde   :  { %3932 = vst.msk [vmem:[#allocation3 + $0x10] sm:$0xff] %vm3929_vm10, %v3927_v37  ;;  %v3920_v56 = vpop.permute.xlu1 %3919  ;;  %v4759_v47 = vmul.f32 %v6654_v26, %v8720_v17 }
 0xcdf   :  { %v4026_v16 = vpop.permute.xlu0 %4025  ;;  %v3928_v15 = vmul.f32 %v7660_v7, %v3920_v56 }
 0xce0   :  { %v4037_v60 = vmul.f32 %v7656_v11, %v4026_v16  ;;  %4768 = vrot.lane.b32.xlu0 %v4757_v49, %s6724_s11 }
 0xce1   :  { %3933 = vst.msk [vmem:[#allocation3 + $0x18] sm:$0xff] %vm3929_vm10, %v3928_v15  ;;  %4770 = vrot.lane.b32.xlu1 %v4759_v47, %s6724_s11 }
 0xce2   :  { %4042 = vst.msk [vmem:[#allocation3] sm:$0xff] %vm4041_vm11, %v4037_v60  ;;  %v4028_v5 = vpop.permute.xlu1 %4027 }
 0xce3   :  { %v4030_v31 = vpop.permute.xlu0 %4029  ;;  %v4038_v59 = vmul.f32 %v7694_v20, %v4028_v5 }
 0xce4   :  { %v4039_v25 = vmul.f32 %v7646_v29, %v4030_v31 }
 0xce5   :  { %4043 = vst.msk [vmem:[#allocation3 + $0x8] sm:$0xff] %vm4041_vm11, %v4038_v59 }
 0xce6   :  { %4044 = vst.msk [vmem:[#allocation3 + $0x10] sm:$0xff] %vm4041_vm11, %v4039_v25  ;;  %v4032_v17 = vpop.permute.xlu1 %4031 }
 0xce7   :  { %v4138_v27 = vpop.permute.xlu0 %4137  ;;  %v4040_v23 = vmul.f32 %v7660_v7, %v4032_v17 }
 0xce8   :  { %v4149_v34 = vmul.f32 %v7656_v11, %v4138_v27 }
 0xce9   :  { %4045 = vst.msk [vmem:[#allocation3 + $0x18] sm:$0xff] %vm4041_vm11, %v4040_v23 }
 0xcea   :  { %4154 = vst.msk [vmem:[#allocation3] sm:$0xff] %vm4153_vm12, %v4149_v34  ;;  %v4140_v61 = vpop.permute.xlu1 %4139 }
 0xceb   :  { %v4142_v3 = vpop.permute.xlu0 %4141  ;;  %v4150_v55 = vmul.f32 %v7694_v20, %v4140_v61 }
 0xcec   :  { %v4151_v8 = vmul.f32 %v7646_v29, %v4142_v3 }
 0xced   :  { %4155 = vst.msk [vmem:[#allocation3 + $0x8] sm:$0xff] %vm4153_vm12, %v4150_v55 }
 0xcee   :  { %4156 = vst.msk [vmem:[#allocation3 + $0x10] sm:$0xff] %vm4153_vm12, %v4151_v8  ;;  %v4144_v6 = vpop.permute.xlu1 %4143 }
 0xcef   :  { %v4250_v0 = vpop.permute.xlu0 %4249  ;;  %v4152_v32 = vmul.f32 %v7660_v7, %v4144_v6 }
 0xcf0   :  { %v4261_v14 = vmul.f32 %v7656_v11, %v4250_v0 }
 0xcf1   :  { %4157 = vst.msk [vmem:[#allocation3 + $0x18] sm:$0xff] %vm4153_vm12, %v4152_v32 }
 0xcf2   :  { %4266 = vst.msk [vmem:[#allocation3] sm:$0xff] %vm4265_vm13, %v4261_v14  ;;  %v4252_v1 = vpop.permute.xlu1 %4251 }
 0xcf3   :  { %v4254_v18 = vpop.permute.xlu0 %4253  ;;  %v4262_v53 = vmul.f32 %v7694_v20, %v4252_v1 }
 0xcf4   :  { %v4263_v54 = vmul.f32 %v7646_v29, %v4254_v18 }
 0xcf5   :  { %4267 = vst.msk [vmem:[#allocation3 + $0x8] sm:$0xff] %vm4265_vm13, %v4262_v53 }
 0xcf6   :  { %4268 = vst.msk [vmem:[#allocation3 + $0x10] sm:$0xff] %vm4265_vm13, %v4263_v54  ;;  %v4256_v2 = vpop.permute.xlu1 %4255 }
 0xcf7   :  { %v4362_v13 = vpop.permute.xlu0 %4361  ;;  %v4264_v43 = vmul.f32 %v7660_v7, %v4256_v2 }
 0xcf8   :  { %v4373_v39 = vmul.f32 %v7656_v11, %v4362_v13 }
 0xcf9   :  { %4269 = vst.msk [vmem:[#allocation3 + $0x18] sm:$0xff] %vm4265_vm13, %v4264_v43 }
 0xcfa   :  { %4378 = vst.msk [vmem:[#allocation3] sm:$0xff] %vm4377_vm14, %v4373_v39  ;;  %v4364_v30 = vpop.permute.xlu1 %4363 }
 0xcfb   :  { %v4366_v48 = vpop.permute.xlu0 %4365  ;;  %v4374_v24 = vmul.f32 %v7694_v20, %v4364_v30 }
 0xcfc   :  { %v4375_v62 = vmul.f32 %v7646_v29, %v4366_v48 }
 0xcfd   :  { %4379 = vst.msk [vmem:[#allocation3 + $0x8] sm:$0xff] %vm4377_vm14, %v4374_v24 }
 0xcfe   :  { %4380 = vst.msk [vmem:[#allocation3 + $0x10] sm:$0xff] %vm4377_vm14, %v4375_v62  ;;  %v4368_v41 = vpop.permute.xlu1 %4367 }
 0xcff   :  { %v4474_v21 = vpop.permute.xlu0 %4473  ;;  %v4376_v46 = vmul.f32 %v7660_v7, %v4368_v41 }
 0xd00   :  { %v4485_v57 = vmul.f32 %v7656_v11, %v4474_v21 }
 0xd01   :  { %4381 = vst.msk [vmem:[#allocation3 + $0x18] sm:$0xff] %vm4377_vm14, %v4376_v46 }
 0xd02   :  { %4490 = vst.msk [vmem:[#allocation3] sm:$0xff] %vm4489_vm15, %v4485_v57  ;;  %v4476_v38 = vpop.permute.xlu1 %4475 }
 0xd03   :  { %v4478_v36 = vpop.permute.xlu0 %4477  ;;  %v4486_v44 = vmul.f32 %v7694_v20, %v4476_v38 }
 0xd04   :  { %v4487_v50 = vmul.f32 %v7646_v29, %v4478_v36 }
 0xd05   :  { %4491 = vst.msk [vmem:[#allocation3 + $0x8] sm:$0xff] %vm4489_vm15, %v4486_v44 }
 0xd06   :  { %4492 = vst.msk [vmem:[#allocation3 + $0x10] sm:$0xff] %vm4489_vm15, %v4487_v50  ;;  %v4480_v28 = vpop.permute.xlu1 %4479 }
 0xd07   :  { %v4488_v35 = vmul.f32 %v7660_v7, %v4480_v28 }
 0xd09   :  { %4493 = vst.msk [vmem:[#allocation3 + $0x18] sm:$0xff] %vm4489_vm15, %v4488_v35 }
 0xd0a   :  { %6686 = shalt.err (!%p6683_p4)
}
 0xd0b   :  { %s6687_s21 = scalar_lea.hbm %s8882_s18, 512 }
 0xd0c   :  { %p6688_p5 = scmp.ne.s32.totalorder %s8882_s18, %s6687_s21  ;;  %p6691_p6 = scmp.lt.u32.totalorder %s6687_s21, %s8882_s18 }
 0xd0e   :  { %p6693_p7 = pnand %p6691_p6, %p6688_p5 }
 0xd10   :  { %6696 = shalt.err (!%p6693_p7)
}
 0xd11   :  { %s6733_s14 = smov 128   ;;  %vm4776_vm3 = vcmask 326848  }
 0xd12   :  { %4794 = dma.vmem_to_hbm [thread:$0]  %s4789_s19, 512, %s8882_s18, [#allocation4], %s6733_s14, %s6733_s14, %s6699_s22  }
 0xd4e   :  { %v4765_v29 = vpop.permute.xlu0 %4764 }
 0xd4f   :  { %v4767_v11 = vpop.permute.xlu1 %4766  ;;  %4777 = vst.msk [vmem:[%s8881_s17] sm:$0xff] %vm4776_vm3, %v4765_v29 }
 0xd50   :  { %4778 = vst.msk [vmem:[%s8881_s17 + $0x8] sm:$0xff] %vm4776_vm3, %v4767_v11 }
 0xd52   :  { %v4769_v7 = vpop.permute.xlu0 %4768 }
 0xd53   :  { %v4771_v20 = vpop.permute.xlu1 %4770  ;;  %4779 = vst.msk [vmem:[%s8881_s17 + $0x10] sm:$0xff] %vm4776_vm3, %v4769_v7 }
 0xd54   :  { %4780 = vst.msk [vmem:[%s8881_s17 + $0x18] sm:$0xff] %vm4776_vm3, %v4771_v20 }
 0xd55   :  { %6697 = dma.done.wait [#allocation4], 512  }
 0xd56   :  { %6698 = vsyncadd [#allocation4], 4294966784 }
 0xd57   :  { %4800 = vsyncpa [#allocation4], 1 }

</bundles_post_ra>
